<compile_context>
chip_gen: v5e
topology: v5e:2x2
jax: 0.10.0
libtpu: 0.0.40
codegen_flags: <defaults>
</compile_context>

<pallas_src>
import functools

import jax
import jax.numpy as jnp
from jax import lax
from jax.experimental import pallas as pl
from jax.experimental.pallas import tpu as pltpu


_ROW_TILE = 256                 # 256 rows amortizes per-grid-step overhead and fills the MXU M dim
_MXU_DTYPE = jnp.bfloat16       # MXU operand dtype (f32 accumulation via preferred_element_type)
_VMEM_LIMIT = 32 * 1024 * 1024  # explicit scoped-VMEM limit, safe on v5e / v6e / v7x
_SINGLE_BUFFER_CONSTS = True    # single-buffer constant-index operands (halves their VMEM)


def _const_spec(block_shape):
    """BlockSpec for an operand whose block index never changes (weights / decay tables)."""
    index_map = lambda *_args: (0,) * len(block_shape)
    if _SINGLE_BUFFER_CONSTS:
        try:
            return pl.BlockSpec(block_shape, index_map, pipeline_mode=pl.Buffered(1))
        except (TypeError, AttributeError):  # older jax without BlockSpec.pipeline_mode
            pass
    return pl.BlockSpec(block_shape, index_map)


def _compiler_params(dimension_semantics):
    return pltpu.CompilerParams(dimension_semantics=dimension_semantics,
                                vmem_limit_bytes=_VMEM_LIMIT)


def _pad_rows(a, tile):
    pad = (-a.shape[0]) % tile
    if pad:
        a = jnp.pad(a, ((0, pad), (0, 0)))
    return a


# ------------------ fused time-mix + 4-way (r, k, v, g) projection kernel ------------------

def _proj4_kernel(x_ref, xs_ref, maa_ref, w_ref, b_ref, r_ref, k_ref, v_ref, g_ref):
    # time-mix on the VPU, four (tm,C)@(C,C) bf16 dots on the MXU (no folded double matmul).
    x = x_ref[...]
    xx = xs_ref[...] - x
    out_refs = (r_ref, k_ref, v_ref, g_ref)
    for p in range(4):                                    # static unroll: r, k, v, g
        xm = (x + xx * maa_ref[p]).astype(_MXU_DTYPE)
        acc = jnp.dot(xm, w_ref[p], preferred_element_type=jnp.float32) + b_ref[p]
        out_refs[p][...] = acc.astype(out_refs[p].dtype)


def proj4_pallas(x2, xs2, maa4, w4, b4):
    """x2, xs2: (M, C) f32; maa4/b4: (4, C) f32; w4: (4, C, C) bf16 -> r, k, v (bf16), g (f32)."""
    M, C = x2.shape
    tm = _ROW_TILE
    x2p, xs2p = _pad_rows(x2, tm), _pad_rows(xs2, tm)
    Mp = x2p.shape[0]
    # r/k/v only ever feed the MXU downstream -> store them bf16 (halves their HBM traffic);
    # g feeds the elementwise silu gate -> keep f32.
    out_dtypes = (_MXU_DTYPE, _MXU_DTYPE, _MXU_DTYPE, jnp.float32)
    # TODO(synk): for production C (>=1024) tile the stacked (4,C,C) weight along the output
    # and K dims (extra parallel/arbitrary grid axes + f32 accumulator scratch) instead of
    # keeping it fully resident per row tile.
    outs = pl.pallas_call(
        _proj4_kernel,
        out_shape=tuple(jax.ShapeDtypeStruct((Mp, C), d) for d in out_dtypes),
        grid=(Mp // tm,),
        in_specs=[pl.BlockSpec((tm, C), lambda i: (i, 0)),
                  pl.BlockSpec((tm, C), lambda i: (i, 0)),
                  _const_spec((4, C)),
                  _const_spec((4, C, C)),
                  _const_spec((4, C))],
        out_specs=[pl.BlockSpec((tm, C), lambda i: (i, 0)) for _ in range(4)],
        compiler_params=_compiler_params(("parallel",)),
    )(x2p, xs2p, maa4, w4, b4)
    if Mp != M:
        outs = tuple(o[:M] for o in outs)
    return outs


# --------------- fused chunked WKV scan + GroupNorm + silu(gate) + output-Linear ---------------

def _wkv_gn_out_kernel(r_ref, k_ref, v_ref, g_ref,
                       wmat_ref, wk_ref, wb_ref, wsbd_ref, mask_ref,
                       oh_ref, oht_ref, gamma_ref, beta_ref, wo_ref, bo_ref,
                       o_ref, state_ref, *, H, N, eps):
    c = pl.program_id(1)

    @pl.when(c == 0)
    def _():
        state_ref[...] = jnp.zeros_like(state_ref)

    r = r_ref[...]                                       # (Q, C) bf16 — one dense load each
    k = k_ref[...]
    v = v_ref[...]
    state = state_ref[...]                               # (C, C) f32, block-diagonal

    # cross-chunk term: ONE wide (Q,C)@(C,C) matmul against the block-diagonal state.
    y = jnp.dot(r, state.astype(r.dtype),
                preferred_element_type=jnp.float32) * wb_ref[...]                  # (Q, C)

    # intra-chunk term per head (static unroll), assembled into ONE lane-dense (Q, C) tile.
    ys = []
    for h in range(H):
        sl = slice(h * N, (h + 1) * N)
        rh, kh, vh = r[:, sl], k[:, sl], v[:, sl]        # in-register slices (no narrow loads)
        a = lax.dot_general(rh, kh, (((1,), (1,)), ((), ())),
                            preferred_element_type=jnp.float32) * wmat_ref[h]      # (Q, Q)
        ys.append(jnp.dot(a.astype(r.dtype), vh, preferred_element_type=jnp.float32))
    y = y + jnp.concatenate(ys, axis=1)                                            # (Q, C)

    # state update: ONE wide (C, C) matmul over the time axis, masked back to the diagonal blocks.
    # TODO(synk): for C > ~512 (head_size >= 64) pair heads instead of the full (C,C) matmul.
    k_dec = (k.astype(jnp.float32) * wk_ref[...]).astype(r.dtype)                  # (Q, C)
    su = lax.dot_general(k_dec, v, (((0,), (0,)), ((), ())),
                         preferred_element_type=jnp.float32)                       # (C, C)
    state_ref[...] = wsbd_ref[...] * state + mask_ref[...] * su

    # fused epilogue: GroupNorm(H groups) -> affine -> * silu(gate) -> @ Wo + bo.
    # Group reductions as one-hot matmuls keep everything lane-aligned (no (Q,H,N) relayout).
    inv_n = 1.0 / N
    mean = jnp.dot(jnp.dot(y, oh_ref[...], preferred_element_type=jnp.float32) * inv_n,
                   oht_ref[...], preferred_element_type=jnp.float32)
    yc = y - mean
    var = jnp.dot(jnp.dot(yc * yc, oh_ref[...], preferred_element_type=jnp.float32) * inv_n,
                  oht_ref[...], preferred_element_type=jnp.float32)
    yn = yc * lax.rsqrt(var + eps)
    g = g_ref[...]
    gated = (yn * gamma_ref[...] + beta_ref[...]) * (g * (1.0 / (1.0 + jnp.exp(-g))))
    out = jnp.dot(gated.astype(wo_ref.dtype), wo_ref[...],
                  preferred_element_type=jnp.float32) + bo_ref[...]
    o_ref[...] = out.astype(o_ref.dtype)


def wkv_gn_out_pallas(r2, k2, v2, g2, decay, gamma, beta, wo, bo, B, T, Q, H, N, eps):
    """r2/k2/v2 (bf16), g2 (f32): (B*T, C) -> final module output (B*T, C) f32."""
    C = H * N
    NC = T // Q
    wmat, wk_full, wb_full, ws_bd, bd_mask = decay
    oh = (jnp.arange(C)[:, None] // N == jnp.arange(H)[None, :]).astype(jnp.float32)   # (C, H)
    rkvg_spec = pl.BlockSpec((Q, C), lambda b, c: (b * NC + c, 0))
    # TODO(synk): on v7x (2 TensorCores) add a second parallel grid axis when B == 1 so the
    # sequential scan does not leave a core idle.
    return pl.pallas_call(
        functools.partial(_wkv_gn_out_kernel, H=H, N=N, eps=eps),
        out_shape=jax.ShapeDtypeStruct((B * T, C), jnp.float32),
        grid=(B, NC),
        in_specs=[rkvg_spec, rkvg_spec, rkvg_spec, rkvg_spec,
                  _const_spec((H, Q, Q)),   # intra-chunk decay (u on diag, w^(i-j-1) below)
                  _const_spec((Q, C)),      # wk: w_h^(Q-1-q) per head column block
                  _const_spec((Q, C)),      # wb: w_h^q      per head column block
                  _const_spec((C, C)),      # ws (w_h^Q) on the block diagonal
                  _const_spec((C, C)),      # block-diagonal mask
                  _const_spec((C, H)),      # GN one-hot group matrix
                  _const_spec((H, C)),      # its transpose
                  _const_spec((1, C)),      # gamma
                  _const_spec((1, C)),      # beta
                  _const_spec((C, C)),      # Wo (bf16)
                  _const_spec((1, C))],     # bo
        out_specs=rkvg_spec,
        scratch_shapes=[pltpu.VMEM((C, C), jnp.float32)],     # per-batch block-diagonal state
        compiler_params=_compiler_params(("parallel", "arbitrary")),
    )(r2, k2, v2, g2, wmat, wk_full, wb_full, ws_bd, bd_mask,
      oh, oh.T, gamma.reshape(1, C), beta.reshape(1, C),
      wo.astype(_MXU_DTYPE), bo.reshape(1, C))


# ----------------------------- decay tensors / parameters (glue) -----------------------------

def build_decay_tensors(time_decay, time_faaaa, Q):
    """Reference-layout decay tensors: Wmat (H,Q,Q), wk (H,1,Q), wb (H,Q,1), ws (H,1,1)."""
    H = time_decay.shape[0]
    w = jnp.exp(-jnp.exp(time_decay.astype(jnp.float32)))    # (H, 1), in (0, 1)
    u = time_faaaa.astype(jnp.float32)                       # (H, 1)
    ws = (w ** Q).reshape(H, 1, 1)
    idx = jnp.arange(Q, dtype=jnp.float32)
    wk = (w ** (Q - 1 - idx)[None, :]).reshape(H, 1, Q)      # w^(Q-1-j)
    wb = (w ** idx[None, :]).reshape(H, Q, 1)                # w^i
    ii = jnp.arange(Q)[:, None]
    jj = jnp.arange(Q)[None, :]
    expo = jnp.maximum(ii - jj - 1, 0).astype(jnp.float32)
    tri = jnp.where((jj < ii)[None], w[:, :, None] ** expo[None], 0.0)
    Wmat = jnp.where((jj == ii)[None], u[:, :, None], tri)   # u on diag, w^(i-j-1) below
    return Wmat, wk, wb, ws


def build_decay_tensors_kernel(time_decay, time_faaaa, Q, H, N):
    """Kernel-layout (lane-dense) decay tensors for (Q, C) tiles and a block-diag (C, C) state."""
    C = H * N
    Wmat, wk, wb, ws = build_decay_tensors(time_decay, time_faaaa, Q)
    wk_full = jnp.repeat(wk.reshape(H, Q).T, N, axis=1)            # (Q, C): w_h^(Q-1-q)
    wb_full = jnp.repeat(wb.reshape(H, Q).T, N, axis=1)            # (Q, C): w_h^q
    head_of = jnp.arange(C) // N
    bd_mask = (head_of[:, None] == head_of[None, :]).astype(jnp.float32)   # (C, C)
    ws_bd = bd_mask * ws.reshape(H)[head_of][None, :]              # (C, C): w_h^Q on diag blocks
    return Wmat, wk_full, wb_full, ws_bd, bd_mask


def init_params(key, n_embd, n_head, n_layer, layer_id):
    C, H = n_embd, n_head
    ratio_0_to_1 = layer_id / (n_layer - 1)
    ratio_1_to_almost0 = 1.0 - layer_id / n_layer
    ddd = jnp.arange(C, dtype=jnp.float32) / C
    time_maa_k = (1.0 - ddd ** ratio_1_to_almost0).reshape(1, 1, C)
    time_maa_v = (1.0 - (ddd ** ratio_1_to_almost0 + 0.3 * ratio_0_to_1)).reshape(1, 1, C)
    time_maa_r = (1.0 - ddd ** (0.5 * ratio_1_to_almost0)).reshape(1, 1, C)
    time_maa_g = (1.0 - ddd ** (0.5 * ratio_1_to_almost0)).reshape(1, 1, C)
    h_idx = jnp.arange(H, dtype=jnp.float32)
    time_decay = (-6.0 + 5.0 * (h_idx / (H - 1)) ** (0.7 + 1.3 * ratio_0_to_1)).reshape(H, 1)
    time_faaaa = (ratio_0_to_1 * (1.0 - h_idx / (H - 1))).reshape(H, 1)

    keys = jax.random.split(key, 12)

    def lin(k1, k2):
        w_t = 0.02 * jax.random.normal(k1, (C, C), jnp.float32)    # stored as W.T (in, out)
        b = 0.01 * jax.random.normal(k2, (C,), jnp.float32)
        return w_t, b

    Wr, br = lin(keys[0], keys[1])
    Wk, bk = lin(keys[2], keys[3])
    Wv, bv = lin(keys[4], keys[5])
    Wg, bg = lin(keys[6], keys[7])
    Wo, bo = lin(keys[8], keys[9])
    gamma = 1.0 + 0.1 * jax.random.normal(keys[10], (C,), jnp.float32)
    beta = 0.1 * jax.random.normal(keys[11], (C,), jnp.float32)
    return dict(time_maa_k=time_maa_k, time_maa_v=time_maa_v,
                time_maa_r=time_maa_r, time_maa_g=time_maa_g,
                time_decay=time_decay, time_faaaa=time_faaaa,
                Wr=Wr, br=br, Wk=Wk, bk=bk, Wv=Wv, bv=bv,
                Wg=Wg, bg=bg, Wo=Wo, bo=bo, gamma=gamma, beta=beta)


def _select_chunk(T):
    # Prefer Q=128: MXU-tile-sized (Q, Q) intra matrices on every generation.  The chunked
    # recurrence is exact for any Q, so the module's forward semantics are preserved.
    for q in (128, 64, 256, 32, 16, 8):
        if T % q == 0:
            return q
    # TODO(synk): ragged T falls back to a single chunk (Q=T); pad T to a multiple of 128 for
    # production shapes instead (a (T, T) intra matrix blows VMEM for long sequences).
    return T


# ----------------------------- full forward (Pallas path) -----------------------------

def rwkv_timemix_forward(params, x, n_head):
    B, T, C = x.shape
    H = n_head
    N = C // H
    Q = _select_chunk(T)

    # time_shift: ZeroPad2d((0,0,1,-1)) == shift the sequence right by one (leading zero row).
    x_shift = jnp.pad(x, ((0, 0), (1, 0), (0, 0)))[:, :T, :]
    x2 = x.reshape(B * T, C)
    xs2 = x_shift.reshape(B * T, C)

    maa4 = jnp.concatenate([params["time_maa_r"].reshape(1, C),
                            params["time_maa_k"].reshape(1, C),
                            params["time_maa_v"].reshape(1, C),
                            params["time_maa_g"].reshape(1, C)], axis=0)           # (4, C)
    w4 = jnp.stack([params["Wr"], params["Wk"], params["Wv"], params["Wg"]]).astype(_MXU_DTYPE)
    b4 = jnp.stack([params["br"], params["bk"], params["bv"], params["bg"]])        # (4, C)

    r2, k2, v2, g2 = proj4_pallas(x2, xs2, maa4, w4, b4)                            # (B*T, C) each

    decay = build_decay_tensors_kernel(params["time_decay"], params["time_faaaa"], Q, H, N)
    eps = 1e-5 * 64
    out2 = wkv_gn_out_pallas(r2, k2, v2, g2, decay, params["gamma"], params["beta"],
                             params["Wo"], params["bo"], B, T, Q, H, N, eps)
    # nn.Dropout(p=0.0) (eval) -> identity
    return out2.reshape(B, T, C)


# ----------------------------- plain-JAX reference (for verification) -----------------------------

def rwkv_timemix_reference(params, x, n_head):
    B, T, C = x.shape
    H = n_head
    N = C // H
    Q = _select_chunk(T)

    x_shift = jnp.pad(x, ((0, 0), (1, 0), (0, 0)))[:, :T, :]
    xx = x_shift - x
    xk = x + xx * params["time_maa_k"]
    xv = x + xx * params["time_maa_v"]
    xr = x + xx * params["time_maa_r"]
    xg = x + xx * params["time_maa_g"]

    def lin(z, Wt, b):
        return z.reshape(B * T, C) @ Wt + b

    r = lin(xr, params["Wr"], params["br"]).reshape(B, T, H, N).transpose(0, 2, 1, 3)
    k = lin(xk, params["Wk"], params["bk"]).reshape(B, T, H, N).transpose(0, 2, 3, 1)
    v = lin(xv, params["Wv"], params["bv"]).reshape(B, T, H, N).transpose(0, 2, 1, 3)
    g = jax.nn.silu(lin(xg, params["Wg"], params["bg"]))

    Wmat, wk, wb, ws = build_decay_tensors(params["time_decay"], params["time_faaaa"], Q)
    Wm = Wmat[None]
    wk_ = wk.reshape(1, H, 1, Q)
    wb_ = wb.reshape(1, H, Q, 1)
    ws_ = ws.reshape(1, H, 1, 1)

    state = jnp.zeros((B, H, N, N), jnp.float32)
    ys = []
    for i in range(T // Q):
        rr = r[:, :, i * Q:(i + 1) * Q, :]
        kk = k[:, :, :, i * Q:(i + 1) * Q]
        vv = v[:, :, i * Q:(i + 1) * Q, :]
        y_c = jnp.matmul(jnp.matmul(rr, kk) * Wm, vv) + jnp.matmul(rr, state) * wb_
        ys.append(y_c)
        state = ws_ * state + jnp.matmul(kk * wk_, vv)
    y = jnp.concatenate(ys, axis=2)                                    # (B, H, T, N)

    y2 = y.transpose(0, 2, 1, 3).reshape(B * T, H, N)
    mean = y2.mean(-1, keepdims=True)
    var = ((y2 - mean) ** 2).mean(-1, keepdims=True)
    eps = 1e-5 * 64
    yn = (y2 - mean) / jnp.sqrt(var + eps)
    yn = yn.reshape(B * T, C) * params["gamma"] + params["beta"]
    out = (yn * g) @ params["Wo"] + params["bo"]
    return out.reshape(B, T, C)


# ----------------------------- main -----------------------------

def _run_and_check(params, x, n_head, ref):
    out = jax.block_until_ready(rwkv_timemix_forward(params, x, n_head))
    assert out.shape == ref.shape
    max_err = float(jnp.max(jnp.abs(out - ref)))
    max_ref = float(jnp.max(jnp.abs(ref)))
    assert max_err <= 2e-2 * max_ref + 1e-3, (max_err, max_ref)
    return out


if __name__ == "__main__":
    # config: n_embd=64, n_head=4 (head_size=16), n_layer=6, layer_id=2, bias=True, dropout=0.0
    B, T, C, H = 2, 384, 64, 4      # T=384 -> Q=128 -> 3 chunks (exercises the state recurrence)
    n_layer, layer_id = 6, 2

    key = jax.random.PRNGKey(0)
    kx, kp = jax.random.split(key)
    x = jax.random.normal(kx, (B, T, C), jnp.float32)
    params = init_params(kp, C, H, n_layer, layer_id)

    ref = jax.block_until_ready(rwkv_timemix_reference(params, x, H))
    try:
        _run_and_check(params, x, H, ref)
    except Exception:
        # Fallback for jax/libtpu versions that reject single-buffered constant operands:
        # retry with default double buffering (same math, slightly larger VMEM footprint).
        _SINGLE_BUFFER_CONSTS = False
        _run_and_check(params, x, H, ref)
    print("KERNEL_OK")
</pallas_src>

<mosaic_0001>
module attributes {stable_mosaic.version = 11 : i64} {
  func.func @_proj4_kernel(%arg0: i32, %arg1: memref<256x64xf32, #tpu.memory_space<vmem>>, %arg2: memref<256x64xf32, #tpu.memory_space<vmem>>, %arg3: memref<4x64xf32, #tpu.memory_space<vmem>>, %arg4: memref<4x64x64xbf16, #tpu.memory_space<vmem>>, %arg5: memref<4x64xf32, #tpu.memory_space<vmem>>, %arg6: memref<256x64xbf16, #tpu.memory_space<vmem>>, %arg7: memref<256x64xbf16, #tpu.memory_space<vmem>>, %arg8: memref<256x64xbf16, #tpu.memory_space<vmem>>, %arg9: memref<256x64xf32, #tpu.memory_space<vmem>>) attributes {dimension_semantics = [#tpu.dimension_semantics<parallel>], iteration_bounds = array<i64: 3>, scalar_prefetch = 0 : i64, scratch_operands = 0 : i64, tpu.core_type = #tpu.core_type<tc>, window_params = [{transform_indices = @transform_0, window_bounds = array<i64: 256, 64>}, {transform_indices = @transform_1, window_bounds = array<i64: 256, 64>}, {pipeline_mode = #tpu.pipeline_mode<synchronous>, transform_indices = @transform_2, window_bounds = array<i64: 4, 64>}, {pipeline_mode = #tpu.pipeline_mode<synchronous>, transform_indices = @transform_3, window_bounds = array<i64: 4, 64, 64>}, {pipeline_mode = #tpu.pipeline_mode<synchronous>, transform_indices = @transform_4, window_bounds = array<i64: 4, 64>}, {transform_indices = @transform_5, window_bounds = array<i64: 256, 64>}, {transform_indices = @transform_6, window_bounds = array<i64: 256, 64>}, {transform_indices = @transform_7, window_bounds = array<i64: 256, 64>}, {transform_indices = @transform_8, window_bounds = array<i64: 256, 64>}]} {
    %c0 = arith.constant 0 : index
    %c0_0 = arith.constant 0 : index
    %0 = vector.load %arg1[%c0, %c0_0] : memref<256x64xf32, #tpu.memory_space<vmem>>, vector<256x64xf32>
    %c0_1 = arith.constant 0 : index
    %c0_2 = arith.constant 0 : index
    %1 = vector.load %arg2[%c0_1, %c0_2] : memref<256x64xf32, #tpu.memory_space<vmem>>, vector<256x64xf32>
    %2 = arith.subf %1, %0 : vector<256x64xf32>
    %c0_3 = arith.constant 0 : index
    %c0_4 = arith.constant 0 : index
    %3 = vector.load %arg3[%c0_3, %c0_4] : memref<4x64xf32, #tpu.memory_space<vmem>>, vector<1x64xf32>
    %4 = vector.shape_cast %3 : vector<1x64xf32> to vector<64xf32>
    %5 = vector.shape_cast %4 : vector<64xf32> to vector<1x64xf32>
    %6 = vector.broadcast %5 : vector<1x64xf32> to vector<256x64xf32>
    %7 = arith.mulf %2, %6 : vector<256x64xf32>
    %8 = arith.addf %0, %7 : vector<256x64xf32>
    %9 = arith.truncf %8 : vector<256x64xf32> to vector<256x64xbf16>
    %c0_5 = arith.constant 0 : index
    %c0_6 = arith.constant 0 : index
    %c0_7 = arith.constant 0 : index
    %10 = vector.load %arg4[%c0_5, %c0_6, %c0_7] : memref<4x64x64xbf16, #tpu.memory_space<vmem>>, vector<1x64x64xbf16>
    %11 = vector.shape_cast %10 : vector<1x64x64xbf16> to vector<64x64xbf16>
    %cst = arith.constant dense<0.000000e+00> : vector<256x64xf32>
    %12 = tpu.matmul %9, %11, %cst {dimension_numbers = #tpu.dot_dimension_numbers<[1], [0], [0], [1], [0, 0, 1, 1], [], []>} : vector<256x64xbf16>, vector<64x64xbf16>, vector<256x64xf32> -> vector<256x64xf32>
    %c0_8 = arith.constant 0 : index
    %c0_9 = arith.constant 0 : index
    %13 = vector.load %arg5[%c0_8, %c0_9] : memref<4x64xf32, #tpu.memory_space<vmem>>, vector<1x64xf32>
    %14 = vector.shape_cast %13 : vector<1x64xf32> to vector<64xf32>
    %15 = vector.shape_cast %14 : vector<64xf32> to vector<1x64xf32>
    %16 = vector.broadcast %15 : vector<1x64xf32> to vector<256x64xf32>
    %17 = arith.addf %12, %16 : vector<256x64xf32>
    %18 = arith.truncf %17 : vector<256x64xf32> to vector<256x64xbf16>
    %c0_10 = arith.constant 0 : index
    %c0_11 = arith.constant 0 : index
    %19 = vector.load %arg6[%c0_10, %c0_11] : memref<256x64xbf16, #tpu.memory_space<vmem>>, vector<256x64xbf16>
    tpu.vector_store %arg6[%c0_10, %c0_11], %18 {strides = array<i32>} : memref<256x64xbf16, #tpu.memory_space<vmem>>, vector<256x64xbf16>,
    %c1 = arith.constant 1 : index
    %c0_12 = arith.constant 0 : index
    %20 = vector.load %arg3[%c1, %c0_12] : memref<4x64xf32, #tpu.memory_space<vmem>>, vector<1x64xf32>
    %21 = vector.shape_cast %20 : vector<1x64xf32> to vector<64xf32>
    %22 = vector.shape_cast %21 : vector<64xf32> to vector<1x64xf32>
    %23 = vector.broadcast %22 : vector<1x64xf32> to vector<256x64xf32>
    %24 = arith.mulf %2, %23 : vector<256x64xf32>
    %25 = arith.addf %0, %24 : vector<256x64xf32>
    %26 = arith.truncf %25 : vector<256x64xf32> to vector<256x64xbf16>
    %c1_13 = arith.constant 1 : index
    %c0_14 = arith.constant 0 : index
    %c0_15 = arith.constant 0 : index
    %27 = vector.load %arg4[%c1_13, %c0_14, %c0_15] : memref<4x64x64xbf16, #tpu.memory_space<vmem>>, vector<1x64x64xbf16>
    %28 = vector.shape_cast %27 : vector<1x64x64xbf16> to vector<64x64xbf16>
    %cst_16 = arith.constant dense<0.000000e+00> : vector<256x64xf32>
    %29 = tpu.matmul %26, %28, %cst_16 {dimension_numbers = #tpu.dot_dimension_numbers<[1], [0], [0], [1], [0, 0, 1, 1], [], []>} : vector<256x64xbf16>, vector<64x64xbf16>, vector<256x64xf32> -> vector<256x64xf32>
    %c1_17 = arith.constant 1 : index
    %c0_18 = arith.constant 0 : index
    %30 = vector.load %arg5[%c1_17, %c0_18] : memref<4x64xf32, #tpu.memory_space<vmem>>, vector<1x64xf32>
    %31 = vector.shape_cast %30 : vector<1x64xf32> to vector<64xf32>
    %32 = vector.shape_cast %31 : vector<64xf32> to vector<1x64xf32>
    %33 = vector.broadcast %32 : vector<1x64xf32> to vector<256x64xf32>
    %34 = arith.addf %29, %33 : vector<256x64xf32>
    %35 = arith.truncf %34 : vector<256x64xf32> to vector<256x64xbf16>
    %c0_19 = arith.constant 0 : index
    %c0_20 = arith.constant 0 : index
    %36 = vector.load %arg7[%c0_19, %c0_20] : memref<256x64xbf16, #tpu.memory_space<vmem>>, vector<256x64xbf16>
    tpu.vector_store %arg7[%c0_19, %c0_20], %35 {strides = array<i32>} : memref<256x64xbf16, #tpu.memory_space<vmem>>, vector<256x64xbf16>,
    %c2 = arith.constant 2 : index
    %c0_21 = arith.constant 0 : index
    %37 = vector.load %arg3[%c2, %c0_21] : memref<4x64xf32, #tpu.memory_space<vmem>>, vector<1x64xf32>
    %38 = vector.shape_cast %37 : vector<1x64xf32> to vector<64xf32>
    %39 = vector.shape_cast %38 : vector<64xf32> to vector<1x64xf32>
    %40 = vector.broadcast %39 : vector<1x64xf32> to vector<256x64xf32>
    %41 = arith.mulf %2, %40 : vector<256x64xf32>
    %42 = arith.addf %0, %41 : vector<256x64xf32>
    %43 = arith.truncf %42 : vector<256x64xf32> to vector<256x64xbf16>
    %c2_22 = arith.constant 2 : index
    %c0_23 = arith.constant 0 : index
    %c0_24 = arith.constant 0 : index
    %44 = vector.load %arg4[%c2_22, %c0_23, %c0_24] : memref<4x64x64xbf16, #tpu.memory_space<vmem>>, vector<1x64x64xbf16>
    %45 = vector.shape_cast %44 : vector<1x64x64xbf16> to vector<64x64xbf16>
    %cst_25 = arith.constant dense<0.000000e+00> : vector<256x64xf32>
    %46 = tpu.matmul %43, %45, %cst_25 {dimension_numbers = #tpu.dot_dimension_numbers<[1], [0], [0], [1], [0, 0, 1, 1], [], []>} : vector<256x64xbf16>, vector<64x64xbf16>, vector<256x64xf32> -> vector<256x64xf32>
    %c2_26 = arith.constant 2 : index
    %c0_27 = arith.constant 0 : index
    %47 = vector.load %arg5[%c2_26, %c0_27] : memref<4x64xf32, #tpu.memory_space<vmem>>, vector<1x64xf32>
    %48 = vector.shape_cast %47 : vector<1x64xf32> to vector<64xf32>
    %49 = vector.shape_cast %48 : vector<64xf32> to vector<1x64xf32>
    %50 = vector.broadcast %49 : vector<1x64xf32> to vector<256x64xf32>
    %51 = arith.addf %46, %50 : vector<256x64xf32>
    %52 = arith.truncf %51 : vector<256x64xf32> to vector<256x64xbf16>
    %c0_28 = arith.constant 0 : index
    %c0_29 = arith.constant 0 : index
    %53 = vector.load %arg8[%c0_28, %c0_29] : memref<256x64xbf16, #tpu.memory_space<vmem>>, vector<256x64xbf16>
    tpu.vector_store %arg8[%c0_28, %c0_29], %52 {strides = array<i32>} : memref<256x64xbf16, #tpu.memory_space<vmem>>, vector<256x64xbf16>,
    %c3 = arith.constant 3 : index
    %c0_30 = arith.constant 0 : index
    %54 = vector.load %arg3[%c3, %c0_30] : memref<4x64xf32, #tpu.memory_space<vmem>>, vector<1x64xf32>
    %55 = vector.shape_cast %54 : vector<1x64xf32> to vector<64xf32>
    %56 = vector.shape_cast %55 : vector<64xf32> to vector<1x64xf32>
    %57 = vector.broadcast %56 : vector<1x64xf32> to vector<256x64xf32>
    %58 = arith.mulf %2, %57 : vector<256x64xf32>
    %59 = arith.addf %0, %58 : vector<256x64xf32>
    %60 = arith.truncf %59 : vector<256x64xf32> to vector<256x64xbf16>
    %c3_31 = arith.constant 3 : index
    %c0_32 = arith.constant 0 : index
    %c0_33 = arith.constant 0 : index
    %61 = vector.load %arg4[%c3_31, %c0_32, %c0_33] : memref<4x64x64xbf16, #tpu.memory_space<vmem>>, vector<1x64x64xbf16>
    %62 = vector.shape_cast %61 : vector<1x64x64xbf16> to vector<64x64xbf16>
    %cst_34 = arith.constant dense<0.000000e+00> : vector<256x64xf32>
    %63 = tpu.matmul %60, %62, %cst_34 {dimension_numbers = #tpu.dot_dimension_numbers<[1], [0], [0], [1], [0, 0, 1, 1], [], []>} : vector<256x64xbf16>, vector<64x64xbf16>, vector<256x64xf32> -> vector<256x64xf32>
    %c3_35 = arith.constant 3 : index
    %c0_36 = arith.constant 0 : index
    %64 = vector.load %arg5[%c3_35, %c0_36] : memref<4x64xf32, #tpu.memory_space<vmem>>, vector<1x64xf32>
    %65 = vector.shape_cast %64 : vector<1x64xf32> to vector<64xf32>
    %66 = vector.shape_cast %65 : vector<64xf32> to vector<1x64xf32>
    %67 = vector.broadcast %66 : vector<1x64xf32> to vector<256x64xf32>
    %68 = arith.addf %63, %67 : vector<256x64xf32>
    %c0_37 = arith.constant 0 : index
    %c0_38 = arith.constant 0 : index
    %69 = vector.load %arg9[%c0_37, %c0_38] : memref<256x64xf32, #tpu.memory_space<vmem>>, vector<256x64xf32>
    tpu.vector_store %arg9[%c0_37, %c0_38], %68 {strides = array<i32>} : memref<256x64xf32, #tpu.memory_space<vmem>>, vector<256x64xf32>,
    return
  }
  func.func @transform_0(%arg0: i32) -> (i32, i32) {
    %c0_i32 = arith.constant 0 : i32
    %c0_i32_0 = arith.constant 0 : i32
    return %arg0, %c0_i32 : i32, i32
  }
  func.func @transform_1(%arg0: i32) -> (i32, i32) {
    %c0_i32 = arith.constant 0 : i32
    %c0_i32_0 = arith.constant 0 : i32
    return %arg0, %c0_i32 : i32, i32
  }
  func.func @transform_2(%arg0: i32) -> (i32, i32) {
    %c0_i32 = arith.constant 0 : i32
    %c0_i32_0 = arith.constant 0 : i32
    %c0_i32_1 = arith.constant 0 : i32
    return %c0_i32, %c0_i32_0 : i32, i32
  }
  func.func @transform_3(%arg0: i32) -> (i32, i32, i32) {
    %c0_i32 = arith.constant 0 : i32
    %c0_i32_0 = arith.constant 0 : i32
    %c0_i32_1 = arith.constant 0 : i32
    %c0_i32_2 = arith.constant 0 : i32
    return %c0_i32, %c0_i32_0, %c0_i32_1 : i32, i32, i32
  }
  func.func @transform_4(%arg0: i32) -> (i32, i32) {
    %c0_i32 = arith.constant 0 : i32
    %c0_i32_0 = arith.constant 0 : i32
    %c0_i32_1 = arith.constant 0 : i32
    return %c0_i32, %c0_i32_0 : i32, i32
  }
  func.func @transform_5(%arg0: i32) -> (i32, i32) {
    %c0_i32 = arith.constant 0 : i32
    %c0_i32_0 = arith.constant 0 : i32
    return %arg0, %c0_i32 : i32, i32
  }
  func.func @transform_6(%arg0: i32) -> (i32, i32) {
    %c0_i32 = arith.constant 0 : i32
    %c0_i32_0 = arith.constant 0 : i32
    return %arg0, %c0_i32 : i32, i32
  }
  func.func @transform_7(%arg0: i32) -> (i32, i32) {
    %c0_i32 = arith.constant 0 : i32
    %c0_i32_0 = arith.constant 0 : i32
    return %arg0, %c0_i32 : i32, i32
  }
  func.func @transform_8(%arg0: i32) -> (i32, i32) {
    %c0_i32 = arith.constant 0 : i32
    %c0_i32_0 = arith.constant 0 : i32
    return %arg0, %c0_i32 : i32, i32
  }
}

module attributes {stable_mosaic.version = 11 : i64} {
  func.func @_proj4_kernel(%arg0: i32, %arg1: memref<256x64xf32, #tpu.memory_space<vmem>>, %arg2: memref<256x64xf32, #tpu.memory_space<vmem>>, %arg3: memref<4x64xf32, #tpu.memory_space<vmem>>, %arg4: memref<4x64x64xbf16, #tpu.memory_space<vmem>>, %arg5: memref<4x64xf32, #tpu.memory_space<vmem>>, %arg6: memref<256x64xbf16, #tpu.memory_space<vmem>>, %arg7: memref<256x64xbf16, #tpu.memory_space<vmem>>, %arg8: memref<256x64xbf16, #tpu.memory_space<vmem>>, %arg9: memref<256x64xf32, #tpu.memory_space<vmem>>) attributes {dimension_semantics = [#tpu.dimension_semantics<parallel>], iteration_bounds = array<i64: 3>, scalar_prefetch = 0 : i64, scratch_operands = 0 : i64, tpu.core_type = #tpu.core_type<tc>, window_params = [{transform_indices = @transform_0, window_bounds = array<i64: 256, 64>}, {transform_indices = @transform_1, window_bounds = array<i64: 256, 64>}, {pipeline_mode = #tpu.pipeline_mode<synchronous>, transform_indices = @transform_2, window_bounds = array<i64: 4, 64>}, {pipeline_mode = #tpu.pipeline_mode<synchronous>, transform_indices = @transform_3, window_bounds = array<i64: 4, 64, 64>}, {pipeline_mode = #tpu.pipeline_mode<synchronous>, transform_indices = @transform_4, window_bounds = array<i64: 4, 64>}, {transform_indices = @transform_5, window_bounds = array<i64: 256, 64>}, {transform_indices = @transform_6, window_bounds = array<i64: 256, 64>}, {transform_indices = @transform_7, window_bounds = array<i64: 256, 64>}, {transform_indices = @transform_8, window_bounds = array<i64: 256, 64>}]} {
    %c0 = arith.constant 0 : index
    %c0_0 = arith.constant 0 : index
    %0 = vector.load %arg1[%c0, %c0_0] : memref<256x64xf32, #tpu.memory_space<vmem>>, vector<256x64xf32>
    %c0_1 = arith.constant 0 : index
    %c0_2 = arith.constant 0 : index
    %1 = vector.load %arg2[%c0_1, %c0_2] : memref<256x64xf32, #tpu.memory_space<vmem>>, vector<256x64xf32>
    %2 = arith.subf %1, %0 : vector<256x64xf32>
    %c0_3 = arith.constant 0 : index
    %c0_4 = arith.constant 0 : index
    %3 = vector.load %arg3[%c0_3, %c0_4] : memref<4x64xf32, #tpu.memory_space<vmem>>, vector<1x64xf32>
    %4 = vector.shape_cast %3 : vector<1x64xf32> to vector<64xf32>
    %5 = vector.shape_cast %4 : vector<64xf32> to vector<1x64xf32>
    %6 = vector.broadcast %5 : vector<1x64xf32> to vector<256x64xf32>
    %7 = arith.mulf %2, %6 : vector<256x64xf32>
    %8 = arith.addf %0, %7 : vector<256x64xf32>
    %9 = arith.truncf %8 : vector<256x64xf32> to vector<256x64xbf16>
    %c0_5 = arith.constant 0 : index
    %c0_6 = arith.constant 0 : index
    %c0_7 = arith.constant 0 : index
    %10 = vector.load %arg4[%c0_5, %c0_6, %c0_7] : memref<4x64x64xbf16, #tpu.memory_space<vmem>>, vector<1x64x64xbf16>
    %11 = vector.shape_cast %10 : vector<1x64x64xbf16> to vector<64x64xbf16>
    %cst = arith.constant dense<0.000000e+00> : vector<256x64xf32>
    %12 = tpu.matmul %9, %11, %cst {dimension_numbers = #tpu.dot_dimension_numbers<[1], [0], [0], [1], [0, 0, 1, 1], [], []>} : vector<256x64xbf16>, vector<64x64xbf16>, vector<256x64xf32> -> vector<256x64xf32>
    %c0_8 = arith.constant 0 : index
    %c0_9 = arith.constant 0 : index
    %13 = vector.load %arg5[%c0_8, %c0_9] : memref<4x64xf32, #tpu.memory_space<vmem>>, vector<1x64xf32>
    %14 = vector.shape_cast %13 : vector<1x64xf32> to vector<64xf32>
    %15 = vector.shape_cast %14 : vector<64xf32> to vector<1x64xf32>
    %16 = vector.broadcast %15 : vector<1x64xf32> to vector<256x64xf32>
    %17 = arith.addf %12, %16 : vector<256x64xf32>
    %18 = arith.truncf %17 : vector<256x64xf32> to vector<256x64xbf16>
    %c0_10 = arith.constant 0 : index
    %c0_11 = arith.constant 0 : index
    %19 = vector.load %arg6[%c0_10, %c0_11] : memref<256x64xbf16, #tpu.memory_space<vmem>>, vector<256x64xbf16>
    tpu.vector_store %arg6[%c0_10, %c0_11], %18 {strides = array<i32>} : memref<256x64xbf16, #tpu.memory_space<vmem>>, vector<256x64xbf16>,
    %c1 = arith.constant 1 : index
    %c0_12 = arith.constant 0 : index
    %20 = vector.load %arg3[%c1, %c0_12] : memref<4x64xf32, #tpu.memory_space<vmem>>, vector<1x64xf32>
    %21 = vector.shape_cast %20 : vector<1x64xf32> to vector<64xf32>
    %22 = vector.shape_cast %21 : vector<64xf32> to vector<1x64xf32>
    %23 = vector.broadcast %22 : vector<1x64xf32> to vector<256x64xf32>
    %24 = arith.mulf %2, %23 : vector<256x64xf32>
    %25 = arith.addf %0, %24 : vector<256x64xf32>
    %26 = arith.truncf %25 : vector<256x64xf32> to vector<256x64xbf16>
    %c1_13 = arith.constant 1 : index
    %c0_14 = arith.constant 0 : index
    %c0_15 = arith.constant 0 : index
    %27 = vector.load %arg4[%c1_13, %c0_14, %c0_15] : memref<4x64x64xbf16, #tpu.memory_space<vmem>>, vector<1x64x64xbf16>
    %28 = vector.shape_cast %27 : vector<1x64x64xbf16> to vector<64x64xbf16>
    %cst_16 = arith.constant dense<0.000000e+00> : vector<256x64xf32>
    %29 = tpu.matmul %26, %28, %cst_16 {dimension_numbers = #tpu.dot_dimension_numbers<[1], [0], [0], [1], [0, 0, 1, 1], [], []>} : vector<256x64xbf16>, vector<64x64xbf16>, vector<256x64xf32> -> vector<256x64xf32>
    %c1_17 = arith.constant 1 : index
    %c0_18 = arith.constant 0 : index
    %30 = vector.load %arg5[%c1_17, %c0_18] : memref<4x64xf32, #tpu.memory_space<vmem>>, vector<1x64xf32>
    %31 = vector.shape_cast %30 : vector<1x64xf32> to vector<64xf32>
    %32 = vector.shape_cast %31 : vector<64xf32> to vector<1x64xf32>
    %33 = vector.broadcast %32 : vector<1x64xf32> to vector<256x64xf32>
    %34 = arith.addf %29, %33 : vector<256x64xf32>
    %35 = arith.truncf %34 : vector<256x64xf32> to vector<256x64xbf16>
    %c0_19 = arith.constant 0 : index
    %c0_20 = arith.constant 0 : index
    %36 = vector.load %arg7[%c0_19, %c0_20] : memref<256x64xbf16, #tpu.memory_space<vmem>>, vector<256x64xbf16>
    tpu.vector_store %arg7[%c0_19, %c0_20], %35 {strides = array<i32>} : memref<256x64xbf16, #tpu.memory_space<vmem>>, vector<256x64xbf16>,
    %c2 = arith.constant 2 : index
    %c0_21 = arith.constant 0 : index
    %37 = vector.load %arg3[%c2, %c0_21] : memref<4x64xf32, #tpu.memory_space<vmem>>, vector<1x64xf32>
    %38 = vector.shape_cast %37 : vector<1x64xf32> to vector<64xf32>
    %39 = vector.shape_cast %38 : vector<64xf32> to vector<1x64xf32>
    %40 = vector.broadcast %39 : vector<1x64xf32> to vector<256x64xf32>
    %41 = arith.mulf %2, %40 : vector<256x64xf32>
    %42 = arith.addf %0, %41 : vector<256x64xf32>
    %43 = arith.truncf %42 : vector<256x64xf32> to vector<256x64xbf16>
    %c2_22 = arith.constant 2 : index
    %c0_23 = arith.constant 0 : index
    %c0_24 = arith.constant 0 : index
    %44 = vector.load %arg4[%c2_22, %c0_23, %c0_24] : memref<4x64x64xbf16, #tpu.memory_space<vmem>>, vector<1x64x64xbf16>
    %45 = vector.shape_cast %44 : vector<1x64x64xbf16> to vector<64x64xbf16>
    %cst_25 = arith.constant dense<0.000000e+00> : vector<256x64xf32>
    %46 = tpu.matmul %43, %45, %cst_25 {dimension_numbers = #tpu.dot_dimension_numbers<[1], [0], [0], [1], [0, 0, 1, 1], [], []>} : vector<256x64xbf16>, vector<64x64xbf16>, vector<256x64xf32> -> vector<256x64xf32>
    %c2_26 = arith.constant 2 : index
    %c0_27 = arith.constant 0 : index
    %47 = vector.load %arg5[%c2_26, %c0_27] : memref<4x64xf32, #tpu.memory_space<vmem>>, vector<1x64xf32>
    %48 = vector.shape_cast %47 : vector<1x64xf32> to vector<64xf32>
    %49 = vector.shape_cast %48 : vector<64xf32> to vector<1x64xf32>
    %50 = vector.broadcast %49 : vector<1x64xf32> to vector<256x64xf32>
    %51 = arith.addf %46, %50 : vector<256x64xf32>
    %52 = arith.truncf %51 : vector<256x64xf32> to vector<256x64xbf16>
    %c0_28 = arith.constant 0 : index
    %c0_29 = arith.constant 0 : index
    %53 = vector.load %arg8[%c0_28, %c0_29] : memref<256x64xbf16, #tpu.memory_space<vmem>>, vector<256x64xbf16>
    tpu.vector_store %arg8[%c0_28, %c0_29], %52 {strides = array<i32>} : memref<256x64xbf16, #tpu.memory_space<vmem>>, vector<256x64xbf16>,
    %c3 = arith.constant 3 : index
    %c0_30 = arith.constant 0 : index
    %54 = vector.load %arg3[%c3, %c0_30] : memref<4x64xf32, #tpu.memory_space<vmem>>, vector<1x64xf32>
    %55 = vector.shape_cast %54 : vector<1x64xf32> to vector<64xf32>
    %56 = vector.shape_cast %55 : vector<64xf32> to vector<1x64xf32>
    %57 = vector.broadcast %56 : vector<1x64xf32> to vector<256x64xf32>
    %58 = arith.mulf %2, %57 : vector<256x64xf32>
    %59 = arith.addf %0, %58 : vector<256x64xf32>
    %60 = arith.truncf %59 : vector<256x64xf32> to vector<256x64xbf16>
    %c3_31 = arith.constant 3 : index
    %c0_32 = arith.constant 0 : index
    %c0_33 = arith.constant 0 : index
    %61 = vector.load %arg4[%c3_31, %c0_32, %c0_33] : memref<4x64x64xbf16, #tpu.memory_space<vmem>>, vector<1x64x64xbf16>
    %62 = vector.shape_cast %61 : vector<1x64x64xbf16> to vector<64x64xbf16>
    %cst_34 = arith.constant dense<0.000000e+00> : vector<256x64xf32>
    %63 = tpu.matmul %60, %62, %cst_34 {dimension_numbers = #tpu.dot_dimension_numbers<[1], [0], [0], [1], [0, 0, 1, 1], [], []>} : vector<256x64xbf16>, vector<64x64xbf16>, vector<256x64xf32> -> vector<256x64xf32>
    %c3_35 = arith.constant 3 : index
    %c0_36 = arith.constant 0 : index
    %64 = vector.load %arg5[%c3_35, %c0_36] : memref<4x64xf32, #tpu.memory_space<vmem>>, vector<1x64xf32>
    %65 = vector.shape_cast %64 : vector<1x64xf32> to vector<64xf32>
    %66 = vector.shape_cast %65 : vector<64xf32> to vector<1x64xf32>
    %67 = vector.broadcast %66 : vector<1x64xf32> to vector<256x64xf32>
    %68 = arith.addf %63, %67 : vector<256x64xf32>
    %c0_37 = arith.constant 0 : index
    %c0_38 = arith.constant 0 : index
    %69 = vector.load %arg9[%c0_37, %c0_38] : memref<256x64xf32, #tpu.memory_space<vmem>>, vector<256x64xf32>
    tpu.vector_store %arg9[%c0_37, %c0_38], %68 {strides = array<i32>} : memref<256x64xf32, #tpu.memory_space<vmem>>, vector<256x64xf32>,
    return
  }
  func.func @transform_0(%arg0: i32) -> (i32, i32) {
    %c0_i32 = arith.constant 0 : i32
    %c0_i32_0 = arith.constant 0 : i32
    return %arg0, %c0_i32 : i32, i32
  }
  func.func @transform_1(%arg0: i32) -> (i32, i32) {
    %c0_i32 = arith.constant 0 : i32
    %c0_i32_0 = arith.constant 0 : i32
    return %arg0, %c0_i32 : i32, i32
  }
  func.func @transform_2(%arg0: i32) -> (i32, i32) {
    %c0_i32 = arith.constant 0 : i32
    %c0_i32_0 = arith.constant 0 : i32
    %c0_i32_1 = arith.constant 0 : i32
    return %c0_i32, %c0_i32_0 : i32, i32
  }
  func.func @transform_3(%arg0: i32) -> (i32, i32, i32) {
    %c0_i32 = arith.constant 0 : i32
    %c0_i32_0 = arith.constant 0 : i32
    %c0_i32_1 = arith.constant 0 : i32
    %c0_i32_2 = arith.constant 0 : i32
    return %c0_i32, %c0_i32_0, %c0_i32_1 : i32, i32, i32
  }
  func.func @transform_4(%arg0: i32) -> (i32, i32) {
    %c0_i32 = arith.constant 0 : i32
    %c0_i32_0 = arith.constant 0 : i32
    %c0_i32_1 = arith.constant 0 : i32
    return %c0_i32, %c0_i32_0 : i32, i32
  }
  func.func @transform_5(%arg0: i32) -> (i32, i32) {
    %c0_i32 = arith.constant 0 : i32
    %c0_i32_0 = arith.constant 0 : i32
    return %arg0, %c0_i32 : i32, i32
  }
  func.func @transform_6(%arg0: i32) -> (i32, i32) {
    %c0_i32 = arith.constant 0 : i32
    %c0_i32_0 = arith.constant 0 : i32
    return %arg0, %c0_i32 : i32, i32
  }
  func.func @transform_7(%arg0: i32) -> (i32, i32) {
    %c0_i32 = arith.constant 0 : i32
    %c0_i32_0 = arith.constant 0 : i32
    return %arg0, %c0_i32 : i32, i32
  }
  func.func @transform_8(%arg0: i32) -> (i32, i32) {
    %c0_i32 = arith.constant 0 : i32
    %c0_i32_0 = arith.constant 0 : i32
    return %arg0, %c0_i32 : i32, i32
  }
}

</mosaic_0001>

<bundles_post_ra>
// kernel: tpu_custom_call.1
= control target key start
LH: loop header
LB: loop body
LE: loop exit
PB: predicated region body
PF: predicated region fallthrough
CT: control target
= control target key end

     0   :  { %s2143_s27 = smov 0   ;;  %s2980_s0 = inlined_call_operand.vmem [shape: f32[768,64], index: 0, kind: input, shape index: {}]   ;;  %s2981_s1 = inlined_call_operand.vmem [shape: f32[768,64], index: 1, kind: input, shape index: {}]   ;;  %s2982_s2 = inlined_call_operand.vmem [shape: f32[4,64], index: 2, kind: input, shape index: {}]   ;;  %s2983_s3 = inlined_call_operand.vmem [shape: bf16[4,64,64], index: 3, kind: input, shape index: {}]   ;;  %s2984_s4 = inlined_call_operand.vmem [shape: f32[4,64], index: 4, kind: input, shape index: {}]   ;;  %s2985_s5 = inlined_call_operand.vmem [shape: bf16[768,64], index: 5, kind: output, shape index: {0}]   ;;  %s2986_s6 = inlined_call_operand.vmem [shape: bf16[768,64], index: 6, kind: output, shape index: {1}]   ;;  %s2987_s7 = inlined_call_operand.vmem [shape: bf16[768,64], index: 7, kind: output, shape index: {2}]   ;;  %s2988_s8 = inlined_call_operand.vmem [shape: f32[768,64], index: 8, kind: output, shape index: {3}]  }
   0x1 LB: > { %s1879_s28 = sadd.s32 4294967295, %s2096_s27   ;;  %p1883_p0 = scmp.ge.s32.totalorder %s2096_s27, 1  ;;  %s2096_s27 = sphi %s2143_s27, %s19_s27  }
   0x2   : > { %p281_p1 = scmp.lt.s32.totalorder %s2096_s27, 4 }
   0x4   : > { %p282_p2 = pnand %p1883_p0, %p281_p1 }
   0x5   : > { %s1884_s13 = sshll.u32 (!%p282_p2), %s1879_s28, 5 }
   0x6   : > { %285 = sbr.rel (%p282_p2) target bundleno = 414 (0x19e), region = 40  ;;  %p336_p3 = scmp.lt.s32.totalorder (!%p282_p2), %s1884_s13, 95 }
   0xb   : > { %v2053_v0 = vld [vmem:[%s2983_s3 + $0x18] sm:$0xff]  ;;  %v2052_v4 = vld [vmem:[%s2983_s3 + $0x10] sm:$0xff]  ;;  %s2990_s13 = smov (!%p336_p3, %s1884_s13), 95  ;;  %v2051_v8 = vld [vmem:[%s2983_s3 + $0x8] sm:$0xff]  ;;  %vm584_vm0 = vcmask 523264   ;;  %vm754_vm1 = vcmask 519168  }
   0xc   : > { %v2057_v1 = vld [vmem:[%s2983_s3 + $0x38] sm:$0xff]  ;;  %637 = vmatpush.bf16.msra.mxu0 %v2053_v0  ;;  %v2056_v5 = vld [vmem:[%s2983_s3 + $0x30] sm:$0xff]  ;;  %v2055_v9 = vld [vmem:[%s2983_s3 + $0x28] sm:$0xff]  ;;  %s2190_s11 = sshll.u32 %s2990_s13, 3  ;;  %s2387_s22 = sshll.u32 %s2990_s13, 2 }
   0xd   : > { %v2061_v2 = vld [vmem:[%s2983_s3 + $0x58] sm:$0xff]  ;;  %956 = vmatpush.bf16.msra.mxu1 %v2057_v1  ;;  %v2060_v6 = vld [vmem:[%s2983_s3 + $0x50] sm:$0xff]  ;;  %v2059_v10 = vld [vmem:[%s2983_s3 + $0x48] sm:$0xff]  ;;  %s2201_s17 = scalar_lea.vmem %s2980_s0, %s2190_s11  ;;  %s2207_s20 = scalar_lea.vmem %s2981_s1, %s2190_s11 }
   0xe   : > { %v2065_v3 = vld [vmem:[%s2983_s3 + $0x78] sm:$0xff]  ;;  %1274 = vmatpush.bf16.msra.mxu2 %v2061_v2  ;;  %v2064_v7 = vld [vmem:[%s2983_s3 + $0x70] sm:$0xff]  ;;  %v2063_v11 = vld [vmem:[%s2983_s3 + $0x68] sm:$0xff]  ;;  %s2399_s13 = scalar_lea.vmem %s2985_s5, %s2387_s22  ;;  %s2405_s28 = scalar_lea.vmem %s2986_s6, %s2387_s22 }
   0xf   : > { %1592 = vmatpush.bf16.msra.mxu3 %v2065_v3  ;;  %v2195_v12 = vld [vmem:[%s2982_s2] ss:$0 sm:$0xff]  ;;  %v2212_v13 = vld [vmem:[%s2982_s2 + $0x1] ss:$0 sm:$0xff]  ;;  %v373_v15 = vld [vmem:[%s2201_s17 + $0x8] sm:$0xff]  ;;  %s2436_s15 = scalar_lea.vmem %s2987_s7, %s2387_s22  ;;  %s2446_s19 = scalar_lea.vmem %s2988_s8, %s2190_s11 }
  0x10   : > { %638 = vmatpush.bf16.msra.mxu0 %v2052_v4  ;;  %v372_v14 = vld [vmem:[%s2201_s17] sm:$0xff]  ;;  %v405_v17 = vld [vmem:[%s2207_s20 + $0x8] sm:$0xff]  ;;  %v374_v40 = vld [vmem:[%s2201_s17 + $0x10] sm:$0xff] }
  0x11   : > { %957 = vmatpush.bf16.msra.mxu1 %v2056_v5  ;;  %v404_v16 = vld [vmem:[%s2207_s20] sm:$0xff]  ;;  %v437_v20 = vsub.f32 %v405_v17, %v373_v15  ;;  %v375_v42 = vld [vmem:[%s2201_s17 + $0x18] sm:$0xff]  ;;  %v406_v43 = vld [vmem:[%s2207_s20 + $0x10] sm:$0xff] }
  0x12   : > { %1275 = vmatpush.bf16.msra.mxu2 %v2060_v6  ;;  %v436_v18 = vsub.f32 %v404_v16, %v372_v14  ;;  %v2221_v19 = vld [vmem:[%s2982_s2 + $0x2] ss:$0 sm:$0xff]  ;;  %v2226_v21 = vld [vmem:[%s2982_s2 + $0x3] ss:$0 sm:$0xff]  ;;  %v407_v44 = vld [vmem:[%s2207_s20 + $0x18] sm:$0xff]  ;;  %v438_v49 = vsub.f32 %v406_v43, %v374_v40 }
  0x13   : > { %1593 = vmatpush.bf16.msra.mxu3 %v2064_v7  ;;  %v2050_v22 = vld [vmem:[%s2983_s3] sm:$0xff]  ;;  %v471_v29 = vmul.f32 %v2195_v12, %v437_v20  ;;  %v790_v30 = vmul.f32 %v2212_v13, %v437_v20  ;;  %v1108_v31 = vmul.f32 %v2221_v19, %v437_v20  ;;  %v1426_v39 = vmul.f32 %v2226_v21, %v437_v20 }
  0x14   : > { %639 = vmatpush.bf16.msra.mxu0 %v2051_v8  ;;  %v2054_v23 = vld [vmem:[%s2983_s3 + $0x20] sm:$0xff]  ;;  %v470_v24 = vmul.f32 %v2195_v12, %v436_v18  ;;  %v789_v25 = vmul.f32 %v2212_v13, %v436_v18  ;;  %v1107_v26 = vmul.f32 %v2221_v19, %v436_v18  ;;  %v1425_v35 = vmul.f32 %v2226_v21, %v436_v18  ;;  %v377_v8 = vld [vmem:[%s2201_s17 + $0x28] sm:$0xff] }
  0x15   : > { %958 = vmatpush.bf16.msra.mxu1 %v2055_v9  ;;  %v2058_v27 = vld [vmem:[%s2983_s3 + $0x40] sm:$0xff]  ;;  %v503_v36 = vadd.f32 %v471_v29, %v373_v15  ;;  %v822_v37 = vadd.f32 %v790_v30, %v373_v15  ;;  %v1140_v38 = vadd.f32 %v1108_v31, %v373_v15  ;;  %v1458_v48 = vadd.f32 %v1426_v39, %v373_v15  ;;  %v410_v39 = vld [vmem:[%s2207_s20 + $0x30] sm:$0xff] }
  0x16   : > { %1276 = vmatpush.bf16.msra.mxu2 %v2059_v10  ;;  %v2062_v28 = vld [vmem:[%s2983_s3 + $0x60] sm:$0xff]  ;;  %v502_v32 = vadd.f32 %v470_v24, %v372_v14  ;;  %v821_v33 = vadd.f32 %v789_v25, %v372_v14  ;;  %v1139_v34 = vadd.f32 %v1107_v26, %v372_v14  ;;  %v1457_v41 = vadd.f32 %v1425_v35, %v372_v14  ;;  %v409_v10 = vld [vmem:[%s2207_s20 + $0x28] sm:$0xff] }
  0x17   : > { %1594 = vmatpush.bf16.msra.mxu3 %v2063_v11  ;;  %v439_v50 = vsub.f32 %v407_v44, %v375_v42  ;;  %v472_v52 = vmul.f32 %v2195_v12, %v438_v49  ;;  %v791_v54 = vmul.f32 %v2212_v13, %v438_v49  ;;  %v1109_v56 = vmul.f32 %v2221_v19, %v438_v49  ;;  %v376_v6 = vld [vmem:[%s2201_s17 + $0x20] sm:$0xff] }
  0x18   : > { %640 = vmatpush.bf16.msra.mxu0 %v2050_v22  ;;  %v534_v45 = vpack.c.bf16 %v503_v36, %v502_v32  ;;  %v853_v46 = vpack.c.bf16 %v822_v37, %v821_v33  ;;  %v1171_v47 = vpack.c.bf16 %v1140_v38, %v1139_v34  ;;  %v1489_v51 = vpack.c.bf16 %v1458_v48, %v1457_v41  ;;  %v408_v9 = vld [vmem:[%s2207_s20 + $0x20] sm:$0xff]  ;;  %v378_v36 = vld [vmem:[%s2201_s17 + $0x30] sm:$0xff]  ;;  %v379_v38 = vld [vmem:[%s2201_s17 + $0x38] sm:$0xff] }
  0x19   : > { %959 = vmatpush.bf16.msra.mxu1 %v2054_v23  ;;  %v473_v53 = vmul.f32 %v2195_v12, %v439_v50  ;;  %v792_v55 = vmul.f32 %v2212_v13, %v439_v50  ;;  %v1110_v57 = vmul.f32 %v2221_v19, %v439_v50  ;;  %v1427_v58 = vmul.f32 %v2226_v21, %v438_v49 }
  0x1a   : > { %1277 = vmatpush.bf16.msra.mxu2 %v2058_v27  ;;  %v1428_v59 = vmul.f32 %v2226_v21, %v439_v50  ;;  %v504_v60 = vadd.f32 %v472_v52, %v374_v40  ;;  %v823_v62 = vadd.f32 %v791_v54, %v374_v40  ;;  %v1141_v0 = vadd.f32 %v1109_v56, %v374_v40 }
  0x1b   : > { %1595 = vmatpush.bf16.msra.mxu3 %v2062_v28  ;;  %1912 = vmatmul.msk.bf16.vlgmr.msra.gmra.mxu0 %vm584_vm0, %v534_v45  ;;  %v505_v61 = vadd.f32 %v473_v53, %v375_v42  ;;  %v824_v63 = vadd.f32 %v792_v55, %v375_v42  ;;  %v1142_v1 = vadd.f32 %v1110_v57, %v375_v42 }
  0x1c   : > { %1952 = vmatmul.msk.bf16.vlgmr.msra.gmra.mxu1 %vm584_vm0, %v853_v46  ;;  %v1459_v2 = vadd.f32 %v1427_v58, %v374_v40  ;;  %v1460_v3 = vadd.f32 %v1428_v59, %v375_v42  ;;  %v440_v14 = vsub.f32 %v408_v9, %v376_v6  ;;  %v441_v15 = vsub.f32 %v409_v10, %v377_v8  ;;  %v411_v40 = vld [vmem:[%s2207_s20 + $0x38] sm:$0xff] }
  0x1d   : > { %1992 = vmatmul.msk.bf16.vlgmr.msra.gmra.mxu2 %vm584_vm0, %v1171_v47  ;;  %v535_v4 = vpack.c.bf16 %v505_v61, %v504_v60  ;;  %v854_v5 = vpack.c.bf16 %v824_v63, %v823_v62  ;;  %v1172_v7 = vpack.c.bf16 %v1142_v1, %v1141_v0  ;;  %v442_v42 = vsub.f32 %v410_v39, %v378_v36  ;;  %v380_v62 = vld [vmem:[%s2201_s17 + $0x40] sm:$0xff]  ;;  %v381_v0 = vld [vmem:[%s2201_s17 + $0x48] sm:$0xff] }
  0x1e   : > { %2032 = vmatmul.msk.bf16.vlgmr.msra.gmra.mxu3 %vm584_vm0, %v1489_v51  ;;  %v1490_v11 = vpack.c.bf16 %v1460_v3, %v1459_v2  ;;  %v474_v16 = vmul.f32 %v2195_v12, %v440_v14  ;;  %v475_v17 = vmul.f32 %v2195_v12, %v441_v15  ;;  %v793_v18 = vmul.f32 %v2212_v13, %v440_v14  ;;  %v412_v1 = vld [vmem:[%s2207_s20 + $0x40] sm:$0xff]  ;;  %v413_v2 = vld [vmem:[%s2207_s20 + $0x48] sm:$0xff] }
  0x1f   : > { %v794_v20 = vmul.f32 %v2212_v13, %v441_v15  ;;  %v1111_v22 = vmul.f32 %v2221_v19, %v440_v14  ;;  %v1112_v23 = vmul.f32 %v2221_v19, %v441_v15  ;;  %v1429_v24 = vmul.f32 %v2226_v21, %v440_v14 }
  0x20   : > { %v1430_v25 = vmul.f32 %v2226_v21, %v441_v15  ;;  %v506_v26 = vadd.f32 %v474_v16, %v376_v6  ;;  %v507_v27 = vadd.f32 %v475_v17, %v377_v8  ;;  %v825_v28 = vadd.f32 %v793_v18, %v376_v6 }
  0x21   : > { %v826_v29 = vadd.f32 %v794_v20, %v377_v8  ;;  %v1143_v30 = vadd.f32 %v1111_v22, %v376_v6  ;;  %v1144_v31 = vadd.f32 %v1112_v23, %v377_v8  ;;  %v1461_v32 = vadd.f32 %v1429_v24, %v376_v6 }
  0x22   : > { %v1462_v33 = vadd.f32 %v1430_v25, %v377_v8  ;;  %v536_v34 = vpack.c.bf16 %v507_v27, %v506_v26  ;;  %v443_v43 = vsub.f32 %v411_v40, %v379_v38  ;;  %v476_v44 = vmul.f32 %v2195_v12, %v442_v42 }
  0x23   : > { %v855_v35 = vpack.c.bf16 %v826_v29, %v825_v28  ;;  %v1173_v37 = vpack.c.bf16 %v1144_v31, %v1143_v30  ;;  %v795_v46 = vmul.f32 %v2212_v13, %v442_v42  ;;  %v1113_v48 = vmul.f32 %v2221_v19, %v442_v42  ;;  %v382_v28 = vld [vmem:[%s2201_s17 + $0x50] sm:$0xff]  ;;  %v383_v30 = vld [vmem:[%s2201_s17 + $0x58] sm:$0xff] }
  0x24   : > { %v1491_v41 = vpack.c.bf16 %v1462_v33, %v1461_v32  ;;  %v477_v45 = vmul.f32 %v2195_v12, %v443_v43  ;;  %v796_v47 = vmul.f32 %v2212_v13, %v443_v43  ;;  %v1114_v49 = vmul.f32 %v2221_v19, %v443_v43  ;;  %v414_v31 = vld [vmem:[%s2207_s20 + $0x50] sm:$0xff]  ;;  %v415_v32 = vld [vmem:[%s2207_s20 + $0x58] sm:$0xff] }
  0x25   : > { %v1431_v50 = vmul.f32 %v2226_v21, %v442_v42  ;;  %v1432_v51 = vmul.f32 %v2226_v21, %v443_v43  ;;  %v508_v52 = vadd.f32 %v476_v44, %v378_v36  ;;  %v827_v54 = vadd.f32 %v795_v46, %v378_v36 }
  0x26   : > { %v509_v53 = vadd.f32 %v477_v45, %v379_v38  ;;  %v828_v55 = vadd.f32 %v796_v47, %v379_v38  ;;  %v1145_v56 = vadd.f32 %v1113_v48, %v378_v36  ;;  %v1146_v57 = vadd.f32 %v1114_v49, %v379_v38 }
  0x27   : > { %v1463_v58 = vadd.f32 %v1431_v50, %v378_v36  ;;  %v1464_v59 = vadd.f32 %v1432_v51, %v379_v38 }
  0x28   : > { %v537_v60 = vpack.c.bf16 %v509_v53, %v508_v52  ;;  %v856_v61 = vpack.c.bf16 %v828_v55, %v827_v54  ;;  %v1174_v63 = vpack.c.bf16 %v1146_v57, %v1145_v56  ;;  %v384_v54 = vld [vmem:[%s2201_s17 + $0x60] sm:$0xff]  ;;  %v385_v56 = vld [vmem:[%s2201_s17 + $0x68] sm:$0xff] }
  0x29   : > { %v1492_v3 = vpack.c.bf16 %v1464_v59, %v1463_v58  ;;  %v416_v57 = vld [vmem:[%s2207_s20 + $0x60] sm:$0xff]  ;;  %v417_v58 = vld [vmem:[%s2207_s20 + $0x68] sm:$0xff] }
  0x2b   : > { %1913 = vmatmul.msk.bf16.gmra.mxu0 %vm584_vm0, %v535_v4  ;;  %v444_v4 = vsub.f32 %v412_v1, %v380_v62 }
  0x2c   : > { %1953 = vmatmul.msk.bf16.gmra.mxu1 %vm584_vm0, %v854_v5  ;;  %v445_v5 = vsub.f32 %v413_v2, %v381_v0 }
  0x2d   : > { %1993 = vmatmul.msk.bf16.gmra.mxu2 %vm584_vm0, %v1172_v7  ;;  %v478_v6 = vmul.f32 %v2195_v12, %v444_v4  ;;  %v797_v8 = vmul.f32 %v2212_v13, %v444_v4  ;;  %v1115_v10 = vmul.f32 %v2221_v19, %v444_v4  ;;  %v1433_v14 = vmul.f32 %v2226_v21, %v444_v4 }
  0x2e   : > { %2033 = vmatmul.msk.bf16.gmra.mxu3 %vm584_vm0, %v1490_v11  ;;  %v479_v7 = vmul.f32 %v2195_v12, %v445_v5  ;;  %v798_v9 = vmul.f32 %v2212_v13, %v445_v5  ;;  %v1116_v11 = vmul.f32 %v2221_v19, %v445_v5  ;;  %v1434_v15 = vmul.f32 %v2226_v21, %v445_v5 }
  0x2f   : > { %v510_v16 = vadd.f32 %v478_v6, %v380_v62  ;;  %v829_v18 = vadd.f32 %v797_v8, %v380_v62  ;;  %v1147_v22 = vadd.f32 %v1115_v10, %v380_v62  ;;  %v1465_v24 = vadd.f32 %v1433_v14, %v380_v62 }
  0x30   : > { %v511_v17 = vadd.f32 %v479_v7, %v381_v0  ;;  %v830_v20 = vadd.f32 %v798_v9, %v381_v0  ;;  %v1148_v23 = vadd.f32 %v1116_v11, %v381_v0  ;;  %v1466_v25 = vadd.f32 %v1434_v15, %v381_v0 }
  0x32   : > { %v538_v26 = vpack.c.bf16 %v511_v17, %v510_v16  ;;  %v857_v27 = vpack.c.bf16 %v830_v20, %v829_v18  ;;  %v1175_v29 = vpack.c.bf16 %v1148_v23, %v1147_v22  ;;  %v1493_v33 = vpack.c.bf16 %v1466_v25, %v1465_v24  ;;  %v386_v18 = vld [vmem:[%s2201_s17 + $0x70] sm:$0xff]  ;;  %v387_v22 = vld [vmem:[%s2201_s17 + $0x78] sm:$0xff] }
  0x33   : > { %v418_v23 = vld [vmem:[%s2207_s20 + $0x70] sm:$0xff]  ;;  %v419_v24 = vld [vmem:[%s2207_s20 + $0x78] sm:$0xff] }
  0x3b   : > { %1914 = vmatmul.msk.bf16.gmra.mxu0 %vm584_vm0, %v536_v34  ;;  %v446_v34 = vsub.f32 %v414_v31, %v382_v28 }
  0x3c   : > { %1954 = vmatmul.msk.bf16.gmra.mxu1 %vm584_vm0, %v855_v35  ;;  %v447_v35 = vsub.f32 %v415_v32, %v383_v30 }
  0x3d   : > { %1994 = vmatmul.msk.bf16.gmra.mxu2 %vm584_vm0, %v1173_v37  ;;  %v480_v36 = vmul.f32 %v2195_v12, %v446_v34  ;;  %v799_v38 = vmul.f32 %v2212_v13, %v446_v34  ;;  %v1117_v40 = vmul.f32 %v2221_v19, %v446_v34  ;;  %v1435_v42 = vmul.f32 %v2226_v21, %v446_v34 }
  0x3e   : > { %2034 = vmatmul.msk.bf16.gmra.mxu3 %vm584_vm0, %v1491_v41  ;;  %v481_v37 = vmul.f32 %v2195_v12, %v447_v35  ;;  %v800_v39 = vmul.f32 %v2212_v13, %v447_v35  ;;  %v1118_v41 = vmul.f32 %v2221_v19, %v447_v35  ;;  %v1436_v43 = vmul.f32 %v2226_v21, %v447_v35 }
  0x3f   : > { %v512_v44 = vadd.f32 %v480_v36, %v382_v28  ;;  %v831_v46 = vadd.f32 %v799_v38, %v382_v28  ;;  %v1149_v48 = vadd.f32 %v1117_v40, %v382_v28  ;;  %v1467_v50 = vadd.f32 %v1435_v42, %v382_v28 }
  0x40   : > { %v513_v45 = vadd.f32 %v481_v37, %v383_v30  ;;  %v832_v47 = vadd.f32 %v800_v39, %v383_v30  ;;  %v1150_v49 = vadd.f32 %v1118_v41, %v383_v30  ;;  %v1468_v51 = vadd.f32 %v1436_v43, %v383_v30 }
  0x42   : > { %v539_v52 = vpack.c.bf16 %v513_v45, %v512_v44  ;;  %v858_v53 = vpack.c.bf16 %v832_v47, %v831_v46  ;;  %v1176_v55 = vpack.c.bf16 %v1150_v49, %v1149_v48  ;;  %v1494_v59 = vpack.c.bf16 %v1468_v51, %v1467_v50  ;;  %v388_v46 = vld [vmem:[%s2201_s17 + $0x80] sm:$0xff]  ;;  %v389_v48 = vld [vmem:[%s2201_s17 + $0x88] sm:$0xff] }
  0x43   : > { %v420_v49 = vld [vmem:[%s2207_s20 + $0x80] sm:$0xff]  ;;  %v421_v50 = vld [vmem:[%s2207_s20 + $0x88] sm:$0xff] }
  0x4b   : > { %1915 = vmatmul.msk.bf16.gmra.mxu0 %vm584_vm0, %v537_v60  ;;  %v448_v60 = vsub.f32 %v416_v57, %v384_v54 }
  0x4c   : > { %1955 = vmatmul.msk.bf16.gmra.mxu1 %vm584_vm0, %v856_v61  ;;  %v449_v61 = vsub.f32 %v417_v58, %v385_v56 }
  0x4d   : > { %1995 = vmatmul.msk.bf16.gmra.mxu2 %vm584_vm0, %v1174_v63  ;;  %v482_v62 = vmul.f32 %v2195_v12, %v448_v60  ;;  %v801_v0 = vmul.f32 %v2212_v13, %v448_v60  ;;  %v1119_v2 = vmul.f32 %v2221_v19, %v448_v60  ;;  %v1437_v4 = vmul.f32 %v2226_v21, %v448_v60 }
  0x4e   : > { %2035 = vmatmul.msk.bf16.gmra.mxu3 %vm584_vm0, %v1492_v3  ;;  %v483_v63 = vmul.f32 %v2195_v12, %v449_v61  ;;  %v802_v1 = vmul.f32 %v2212_v13, %v449_v61  ;;  %v1120_v3 = vmul.f32 %v2221_v19, %v449_v61  ;;  %v1438_v5 = vmul.f32 %v2226_v21, %v449_v61 }
  0x4f   : > { %v514_v6 = vadd.f32 %v482_v62, %v384_v54  ;;  %v833_v8 = vadd.f32 %v801_v0, %v384_v54  ;;  %v1151_v10 = vadd.f32 %v1119_v2, %v384_v54  ;;  %v1469_v14 = vadd.f32 %v1437_v4, %v384_v54  ;;  %v2379_v4 = vld [vmem:[%s2984_s4] ss:$0 sm:$0xff] }
  0x50   : > { %v515_v7 = vadd.f32 %v483_v63, %v385_v56  ;;  %v834_v9 = vadd.f32 %v802_v1, %v385_v56  ;;  %v1152_v11 = vadd.f32 %v1120_v3, %v385_v56  ;;  %v1470_v15 = vadd.f32 %v1438_v5, %v385_v56  ;;  %v2384_v5 = vld [vmem:[%s2984_s4 + $0x1] ss:$0 sm:$0xff] }
  0x52   : > { %v540_v16 = vpack.c.bf16 %v515_v7, %v514_v6  ;;  %v859_v17 = vpack.c.bf16 %v834_v9, %v833_v8  ;;  %v1177_v20 = vpack.c.bf16 %v1152_v11, %v1151_v10  ;;  %v1495_v25 = vpack.c.bf16 %v1470_v15, %v1469_v14  ;;  %v390_v10 = vld [vmem:[%s2201_s17 + $0x90] sm:$0xff] }
  0x53   : > { %v422_v11 = vld [vmem:[%s2207_s20 + $0x90] sm:$0xff] }
  0x5b   : > { %1916 = vmatmul.msk.bf16.gmra.mxu0 %vm584_vm0, %v538_v26  ;;  %v450_v26 = vsub.f32 %v418_v23, %v386_v18 }
  0x5c   : > { %1956 = vmatmul.msk.bf16.gmra.mxu1 %vm584_vm0, %v857_v27  ;;  %v451_v27 = vsub.f32 %v419_v24, %v387_v22  ;;  %v454_v24 = vsub.f32 %v422_v11, %v390_v10 }
  0x5d   : > { %1996 = vmatmul.msk.bf16.gmra.mxu2 %vm584_vm0, %v1175_v29  ;;  %v484_v28 = vmul.f32 %v2195_v12, %v450_v26  ;;  %v803_v30 = vmul.f32 %v2212_v13, %v450_v26  ;;  %v1121_v32 = vmul.f32 %v2221_v19, %v450_v26  ;;  %v1439_v34 = vmul.f32 %v2226_v21, %v450_v26 }
  0x5e   : > { %2036 = vmatmul.msk.bf16.gmra.mxu3 %vm584_vm0, %v1493_v33  ;;  %v485_v29 = vmul.f32 %v2195_v12, %v451_v27  ;;  %v804_v31 = vmul.f32 %v2212_v13, %v451_v27  ;;  %v1122_v33 = vmul.f32 %v2221_v19, %v451_v27  ;;  %v1440_v35 = vmul.f32 %v2226_v21, %v451_v27 }
  0x5f   : > { %v516_v36 = vadd.f32 %v484_v28, %v386_v18  ;;  %v835_v38 = vadd.f32 %v803_v30, %v386_v18  ;;  %v1153_v40 = vadd.f32 %v1121_v32, %v386_v18  ;;  %v1471_v42 = vadd.f32 %v1439_v34, %v386_v18  ;;  %v423_v18 = vld [vmem:[%s2207_s20 + $0x98] sm:$0xff]  ;;  %v2413_v28 = vld [vmem:[%s2984_s4 + $0x2] ss:$0 sm:$0xff] }
  0x60   : > { %v517_v37 = vadd.f32 %v485_v29, %v387_v22  ;;  %v836_v39 = vadd.f32 %v804_v31, %v387_v22  ;;  %v1154_v41 = vadd.f32 %v1122_v33, %v387_v22  ;;  %v1472_v43 = vadd.f32 %v1440_v35, %v387_v22  ;;  %v2423_v29 = vld [vmem:[%s2984_s4 + $0x3] ss:$0 sm:$0xff] }
  0x61   : > { %v488_v30 = vmul.f32 %v2195_v12, %v454_v24  ;;  %v807_v31 = vmul.f32 %v2212_v13, %v454_v24 }
  0x62   : > { %v541_v44 = vpack.c.bf16 %v517_v37, %v516_v36  ;;  %v860_v45 = vpack.c.bf16 %v836_v39, %v835_v38  ;;  %v1178_v47 = vpack.c.bf16 %v1154_v41, %v1153_v40  ;;  %v1496_v51 = vpack.c.bf16 %v1472_v43, %v1471_v42 }
  0x63   : > { %v1125_v38 = vmul.f32 %v2221_v19, %v454_v24  ;;  %v1443_v43 = vmul.f32 %v2226_v21, %v454_v24 }
  0x6b   : > { %1917 = vmatmul.msk.bf16.gmra.mxu0 %vm584_vm0, %v539_v52  ;;  %v452_v52 = vsub.f32 %v420_v49, %v388_v46 }
  0x6c   : > { %1957 = vmatmul.msk.bf16.gmra.mxu1 %vm584_vm0, %v858_v53  ;;  %v453_v53 = vsub.f32 %v421_v50, %v389_v48 }
  0x6d   : > { %1997 = vmatmul.msk.bf16.gmra.mxu2 %vm584_vm0, %v1176_v55  ;;  %v486_v54 = vmul.f32 %v2195_v12, %v452_v52  ;;  %v805_v56 = vmul.f32 %v2212_v13, %v452_v52  ;;  %v1123_v58 = vmul.f32 %v2221_v19, %v452_v52  ;;  %v1441_v60 = vmul.f32 %v2226_v21, %v452_v52 }
  0x6e   : > { %2037 = vmatmul.msk.bf16.gmra.mxu3 %vm584_vm0, %v1494_v59  ;;  %v487_v55 = vmul.f32 %v2195_v12, %v453_v53  ;;  %v806_v57 = vmul.f32 %v2212_v13, %v453_v53  ;;  %v1124_v59 = vmul.f32 %v2221_v19, %v453_v53  ;;  %v1442_v61 = vmul.f32 %v2226_v21, %v453_v53 }
  0x6f   : > { %v518_v62 = vadd.f32 %v486_v54, %v388_v46  ;;  %v837_v0 = vadd.f32 %v805_v56, %v388_v46  ;;  %v1155_v2 = vadd.f32 %v1123_v58, %v388_v46  ;;  %v1473_v6 = vadd.f32 %v1441_v60, %v388_v46  ;;  %v393_v58 = vld [vmem:[%s2201_s17 + $0xa8] sm:$0xff] }
  0x70   : > { %v519_v63 = vadd.f32 %v487_v55, %v389_v48  ;;  %v838_v1 = vadd.f32 %v806_v57, %v389_v48  ;;  %v1156_v3 = vadd.f32 %v1124_v59, %v389_v48  ;;  %v1474_v7 = vadd.f32 %v1442_v61, %v389_v48  ;;  %v392_v55 = vld [vmem:[%s2201_s17 + $0xa0] sm:$0xff]  ;;  %v425_v60 = vld [vmem:[%s2207_s20 + $0xa8] sm:$0xff] }
  0x71   : > { %v839_v48 = vadd.f32 %v807_v31, %v390_v10  ;;  %v1157_v53 = vadd.f32 %v1125_v38, %v390_v10  ;;  %v1475_v56 = vadd.f32 %v1443_v43, %v390_v10  ;;  %v424_v59 = vld [vmem:[%s2207_s20 + $0xa0] sm:$0xff] }
  0x72   : > { %v542_v8 = vpack.c.bf16 %v519_v63, %v518_v62  ;;  %v861_v9 = vpack.c.bf16 %v838_v1, %v837_v0  ;;  %v1497_v23 = vpack.c.bf16 %v1474_v7, %v1473_v6 }
  0x7b   : > { %1918 = vmatmul.msk.bf16.gmra.mxu0 %vm584_vm0, %v540_v16  ;;  %v1179_v16 = vpack.c.bf16 %v1156_v3, %v1155_v2 }
  0x7c   : > { %1958 = vmatmul.msk.bf16.gmra.mxu1 %vm584_vm0, %v859_v17  ;;  %v391_v17 = vld [vmem:[%s2201_s17 + $0x98] sm:$0xff] }
  0x7d   : > { %1998 = vmatmul.msk.bf16.gmra.mxu2 %vm584_vm0, %v1177_v20  ;;  %v455_v27 = vsub.f32 %v423_v18, %v391_v17 }
  0x7e   : > { %2038 = vmatmul.msk.bf16.gmra.mxu3 %vm584_vm0, %v1495_v25 }
  0x7f   : > { %v489_v33 = vmul.f32 %v2195_v12, %v455_v27  ;;  %v808_v34 = vmul.f32 %v2212_v13, %v455_v27  ;;  %v1126_v39 = vmul.f32 %v2221_v19, %v455_v27 }
  0x81   : > { %v840_v52 = vadd.f32 %v808_v34, %v391_v17  ;;  %v1158_v54 = vadd.f32 %v1126_v39, %v391_v17 }
  0x83   : > { %v862_v63 = vpack.c.bf16 %v840_v52, %v839_v48  ;;  %v1180_v3 = vpack.c.bf16 %v1158_v54, %v1157_v53  ;;  %v427_v52 = vld [vmem:[%s2207_s20 + $0xb8] sm:$0xff] }
  0x8b   : > { %1919 = vmatmul.msk.bf16.gmra.mxu0 %vm584_vm0, %v541_v44  ;;  %v1444_v44 = vmul.f32 %v2226_v21, %v455_v27 }
  0x8c   : > { %1959 = vmatmul.msk.bf16.gmra.mxu1 %vm584_vm0, %v860_v45 }
  0x8d   : > { %1999 = vmatmul.msk.bf16.gmra.mxu2 %vm584_vm0, %v1178_v47  ;;  %v520_v47 = vadd.f32 %v488_v30, %v390_v10  ;;  %v1476_v57 = vadd.f32 %v1444_v44, %v391_v17  ;;  %v457_v10 = vsub.f32 %v425_v60, %v393_v58 }
  0x8e   : > { %2039 = vmatmul.msk.bf16.gmra.mxu3 %vm584_vm0, %v1496_v51  ;;  %v521_v51 = vadd.f32 %v489_v33, %v391_v17 }
  0x8f   : > { %v810_v24 = vmul.f32 %v2212_v13, %v457_v10  ;;  %v1128_v31 = vmul.f32 %v2221_v19, %v457_v10 }
  0x90   : > { %v543_v62 = vpack.c.bf16 %v521_v51, %v520_v47  ;;  %v394_v47 = vld [vmem:[%s2201_s17 + $0xb0] sm:$0xff] }
  0x91   : > { %v842_v44 = vadd.f32 %v810_v24, %v393_v58  ;;  %v426_v51 = vld [vmem:[%s2207_s20 + $0xb0] sm:$0xff] }
  0x98   : > { %v642_v14 = vpop.f32.mrf.mxu0 }
  0x99   : > { %v961_v15 = vpop.f32.mrf.mxu1  ;;  %v643_v20 = vadd.f32 %v2379_v4, %v642_v14 }
  0x9a   : > { %v962_v22 = vadd.f32 %v2384_v5, %v961_v15  ;;  %v1498_v15 = vpack.c.bf16 %v1476_v57, %v1475_v56 }
  0x9b   : > { %v722_v25 = vpack.c.bf16 %v643_v20, %v643_v20  ;;  %1920 = vmatmul.msk.bf16.gmra.mxu0 %vm584_vm0, %v542_v8  ;;  %v491_v20 = vmul.f32 %v2195_v12, %v457_v10 }
  0x9c   : > { %v1041_v26 = vpack.c.bf16 %v962_v22, %v962_v22  ;;  %1960 = vmatmul.msk.bf16.gmra.mxu1 %vm584_vm0, %v861_v9  ;;  %v456_v9 = vsub.f32 %v424_v59, %v392_v55 }
  0x9d   : > { %2000 = vmatmul.msk.bf16.gmra.mxu2 %vm584_vm0, %v1179_v16  ;;  %755 = vst.msk [vmem:[%s2399_s13] sm:$0xf] %vm754_vm1, %v722_v25 }
  0x9e   : > { %1073 = vst.msk [vmem:[%s2405_s28] sm:$0xf] %vm754_vm1, %v1041_v26  ;;  %2040 = vmatmul.msk.bf16.gmra.mxu3 %vm584_vm0, %v1497_v23  ;;  %v490_v18 = vmul.f32 %v2195_v12, %v456_v9  ;;  %v809_v23 = vmul.f32 %v2212_v13, %v456_v9  ;;  %v1127_v30 = vmul.f32 %v2221_v19, %v456_v9 }
  0x9f   : > { %v1445_v39 = vmul.f32 %v2226_v21, %v456_v9 }
  0xa0   : > { %v1279_v32 = vpop.f32.mrf.mxu2  ;;  %v644_v36 = vpop.f32.mrf.mxu0  ;;  %v841_v43 = vadd.f32 %v809_v23, %v392_v55 }
  0xa1   : > { %v1280_v35 = vadd.f32 %v2413_v28, %v1279_v32  ;;  %v963_v37 = vpop.f32.mrf.mxu1  ;;  %v1597_v40 = vpop.f32.mrf.mxu3  ;;  %v645_v41 = vadd.f32 %v2379_v4, %v644_v36  ;;  %v523_v36 = vadd.f32 %v491_v20, %v393_v58  ;;  %v1477_v48 = vadd.f32 %v1445_v39, %v392_v55  ;;  %v396_v39 = vld [vmem:[%s2201_s17 + $0xc0] sm:$0xff] }
  0xa2   : > { %v964_v42 = vadd.f32 %v2384_v5, %v963_v37  ;;  %v1598_v46 = vadd.f32 %v2423_v29, %v1597_v40  ;;  %v1446_v40 = vmul.f32 %v2226_v21, %v457_v10  ;;  %v863_v56 = vpack.c.bf16 %v842_v44, %v841_v43  ;;  %v428_v43 = vld [vmem:[%s2207_s20 + $0xc0] sm:$0xff]  ;;  %v429_v44 = vld [vmem:[%s2207_s20 + $0xc8] sm:$0xff] }
  0xa3   : > { %v1359_v45 = vpack.c.bf16 %v1280_v35, %v1280_v35  ;;  %v723_v49 = vpack.c.bf16 %v645_v41, %v645_v41  ;;  %v522_v35 = vadd.f32 %v490_v18, %v392_v55 }
  0xa4   : > { %v1042_v50 = vpack.c.bf16 %v964_v42, %v964_v42  ;;  %1677 = vst.msk [vmem:[%s2446_s19] sm:$0xff] %vm584_vm0, %v1598_v46  ;;  %v1160_v46 = vadd.f32 %v1128_v31, %v393_v58 }
  0xa5   : > { %1391 = vst.msk [vmem:[%s2436_s15] sm:$0xf] %vm754_vm1, %v1359_v45  ;;  %v1159_v45 = vadd.f32 %v1127_v30, %v392_v55  ;;  %v544_v54 = vpack.c.bf16 %v523_v36, %v522_v35 }
  0xa6   : > { %756 = vst.msk [vmem:[%s2399_s13 + $0x4] sm:$0xf] %vm754_vm1, %v723_v49  ;;  %v1478_v49 = vadd.f32 %v1446_v40, %v393_v58  ;;  %v458_v58 = vsub.f32 %v426_v51, %v394_v47 }
  0xa7   : > { %1074 = vst.msk [vmem:[%s2405_s28 + $0x4] sm:$0xf] %vm754_vm1, %v1042_v50  ;;  %v395_v50 = vld [vmem:[%s2201_s17 + $0xb8] sm:$0xff] }
  0xa8   : > { %v1281_v61 = vpop.f32.mrf.mxu2  ;;  %v647_v1 = vpop.f32.mrf.mxu0  ;;  %v1129_v18 = vmul.f32 %v2221_v19, %v458_v58  ;;  %v1447_v31 = vmul.f32 %v2226_v21, %v458_v58 }
  0xa9   : > { %v1282_v0 = vadd.f32 %v2413_v28, %v1281_v61  ;;  %v966_v2 = vpop.f32.mrf.mxu1  ;;  %v1599_v6 = vpop.f32.mrf.mxu3  ;;  %v648_v7 = vadd.f32 %v2379_v4, %v647_v1  ;;  %v1181_v61 = vpack.c.bf16 %v1160_v46, %v1159_v45 }
  0xaa   : > { %v967_v8 = vadd.f32 %v2384_v5, %v966_v2  ;;  %v1600_v14 = vadd.f32 %v2423_v29, %v1599_v6  ;;  %v1479_v40 = vadd.f32 %v1447_v31, %v394_v47  ;;  %v2579_v31 = vld [vmem:[%s2201_s17 + $0xd8] sm:$0xff] }
  0xab   : > { %v1360_v11 = vpack.c.bf16 %v1282_v0, %v1282_v0  ;;  %v724_v16 = vpack.c.bf16 %v648_v7, %v648_v7  ;;  %1921 = vmatmul.msk.bf16.gmra.mxu0 %vm584_vm0, %v543_v62  ;;  %v459_v0 = vsub.f32 %v427_v52, %v395_v50 }
  0xac   : > { %v1043_v17 = vpack.c.bf16 %v967_v8, %v967_v8  ;;  %1961 = vmatmul.msk.bf16.gmra.mxu1 %vm584_vm0, %v862_v63  ;;  %1678 = vst.msk [vmem:[%s2446_s19 + $0x8] sm:$0xff] %vm584_vm0, %v1600_v14  ;;  %v492_v8 = vmul.f32 %v2195_v12, %v458_v58 }
  0xad   : > { %1392 = vst.msk [vmem:[%s2436_s15 + $0x4] sm:$0xf] %vm754_vm1, %v1360_v11  ;;  %2001 = vmatmul.msk.bf16.gmra.mxu2 %vm584_vm0, %v1180_v3  ;;  %v1499_v3 = vpack.c.bf16 %v1478_v49, %v1477_v48  ;;  %v493_v9 = vmul.f32 %v2195_v12, %v459_v0  ;;  %v811_v11 = vmul.f32 %v2212_v13, %v458_v58 }
  0xae   : > { %757 = vst.msk [vmem:[%s2399_s13 + $0x8] sm:$0xf] %vm754_vm1, %v724_v16  ;;  %2041 = vmatmul.msk.bf16.gmra.mxu3 %vm584_vm0, %v1498_v15  ;;  %v812_v14 = vmul.f32 %v2212_v13, %v459_v0  ;;  %v1130_v20 = vmul.f32 %v2221_v19, %v459_v0 }
  0xaf   : > { %1075 = vst.msk [vmem:[%s2405_s28 + $0x8] sm:$0xf] %vm754_vm1, %v1043_v17  ;;  %v843_v35 = vadd.f32 %v811_v11, %v394_v47 }
  0xb0   : > { %v1284_v22 = vpop.f32.mrf.mxu2  ;;  %v649_v26 = vpop.f32.mrf.mxu0  ;;  %v844_v36 = vadd.f32 %v812_v14, %v395_v50 }
  0xb1   : > { %v1285_v25 = vadd.f32 %v2413_v28, %v1284_v22  ;;  %v968_v27 = vpop.f32.mrf.mxu1  ;;  %v1602_v32 = vpop.f32.mrf.mxu3  ;;  %v650_v33 = vadd.f32 %v2379_v4, %v649_v26  ;;  %v525_v26 = vadd.f32 %v493_v9, %v395_v50 }
  0xb2   : > { %v969_v34 = vadd.f32 %v2384_v5, %v968_v27  ;;  %v1603_v38 = vadd.f32 %v2423_v29, %v1602_v32  ;;  %v1448_v32 = vmul.f32 %v2226_v21, %v459_v0  ;;  %v864_v48 = vpack.c.bf16 %v844_v36, %v843_v35 }
  0xb3   : > { %v1361_v37 = vpack.c.bf16 %v1285_v25, %v1285_v25  ;;  %v725_v41 = vpack.c.bf16 %v650_v33, %v650_v33  ;;  %v524_v25 = vadd.f32 %v492_v8, %v394_v47 }
  0xb4   : > { %v1044_v42 = vpack.c.bf16 %v969_v34, %v969_v34  ;;  %1679 = vst.msk [vmem:[%s2446_s19 + $0x10] sm:$0xff] %vm584_vm0, %v1603_v38  ;;  %v1162_v38 = vadd.f32 %v1130_v20, %v395_v50 }
  0xb5   : > { %1393 = vst.msk [vmem:[%s2436_s15 + $0x8] sm:$0xf] %vm754_vm1, %v1361_v37  ;;  %v1161_v37 = vadd.f32 %v1129_v18, %v394_v47  ;;  %v545_v46 = vpack.c.bf16 %v525_v26, %v524_v25  ;;  %v2574_v26 = vld [vmem:[%s2201_s17 + $0xd0] sm:$0xff] }
  0xb6   : > { %758 = vst.msk [vmem:[%s2399_s13 + $0xc] sm:$0xf] %vm754_vm1, %v725_v41  ;;  %v1480_v41 = vadd.f32 %v1448_v32, %v395_v50  ;;  %v460_v50 = vsub.f32 %v428_v43, %v396_v39  ;;  %v431_v32 = vld [vmem:[%s2207_s20 + $0xd8] sm:$0xff] }
  0xb7   : > { %1076 = vst.msk [vmem:[%s2405_s28 + $0xc] sm:$0xf] %vm754_vm1, %v1044_v42  ;;  %v397_v42 = vld [vmem:[%s2201_s17 + $0xc8] sm:$0xff] }
  0xb8   : > { %v1286_v53 = vpop.f32.mrf.mxu2  ;;  %v652_v59 = vpop.f32.mrf.mxu0  ;;  %v1131_v8 = vmul.f32 %v2221_v19, %v460_v50 }
  0xb9   : > { %v1287_v57 = vadd.f32 %v2413_v28, %v1286_v53  ;;  %v971_v60 = vpop.f32.mrf.mxu1  ;;  %v1604_v62 = vpop.f32.mrf.mxu3  ;;  %v653_v63 = vadd.f32 %v2379_v4, %v652_v59  ;;  %v1182_v53 = vpack.c.bf16 %v1162_v38, %v1161_v37 }
  0xba   : > { %v972_v55 = vadd.f32 %v2384_v5, %v971_v60  ;;  %v1605_v2 = vadd.f32 %v2423_v29, %v1604_v62 }
  0xbb   : > { %v1362_v1 = vpack.c.bf16 %v1287_v57, %v1287_v57  ;;  %v726_v6 = vpack.c.bf16 %v653_v63, %v653_v63  ;;  %1922 = vmatmul.msk.bf16.gmra.mxu0 %vm584_vm0, %v544_v54  ;;  %v461_v57 = vsub.f32 %v429_v44, %v397_v42  ;;  %v463_v44 = vsub.f32 %v431_v32, %v2579_v31 }
  0xbc   : > { %v1045_v7 = vpack.c.bf16 %v972_v55, %v972_v55  ;;  %1962 = vmatmul.msk.bf16.gmra.mxu1 %vm584_vm0, %v863_v56  ;;  %1680 = vst.msk [vmem:[%s2446_s19 + $0x18] sm:$0xff] %vm584_vm0, %v1605_v2  ;;  %v494_v55 = vmul.f32 %v2195_v12, %v460_v50 }
  0xbd   : > { %1394 = vst.msk [vmem:[%s2436_s15 + $0xc] sm:$0xf] %vm754_vm1, %v1362_v1  ;;  %2002 = vmatmul.msk.bf16.gmra.mxu2 %vm584_vm0, %v1181_v61  ;;  %v1500_v61 = vpack.c.bf16 %v1480_v41, %v1479_v40  ;;  %v495_v58 = vmul.f32 %v2195_v12, %v461_v57  ;;  %v813_v1 = vmul.f32 %v2212_v13, %v460_v50 }
  0xbe   : > { %759 = vst.msk [vmem:[%s2399_s13 + $0x10] sm:$0xf] %vm754_vm1, %v726_v6  ;;  %2042 = vmatmul.msk.bf16.gmra.mxu3 %vm584_vm0, %v1499_v3  ;;  %v814_v2 = vmul.f32 %v2212_v13, %v461_v57  ;;  %v1132_v12 = vmul.f32 %v2221_v19, %v461_v57  ;;  %v526_v14 = vadd.f32 %v494_v55, %v396_v39 }
  0xbf   : > { %1077 = vst.msk [vmem:[%s2405_s28 + $0x10] sm:$0xf] %vm754_vm1, %v1045_v7  ;;  %v1450_v19 = vmul.f32 %v2226_v21, %v461_v57 }
  0xc0   : > { %v1289_v10 = vpop.f32.mrf.mxu2  ;;  %v654_v16 = vpop.f32.mrf.mxu0  ;;  %v1164_v25 = vadd.f32 %v1132_v12, %v397_v42 }
  0xc1   : > { %v1290_v15 = vadd.f32 %v2413_v28, %v1289_v10  ;;  %v973_v17 = vpop.f32.mrf.mxu1  ;;  %v1607_v22 = vpop.f32.mrf.mxu3  ;;  %v655_v23 = vadd.f32 %v2379_v4, %v654_v16 }
  0xc2   : > { %v974_v24 = vadd.f32 %v2384_v5, %v973_v17  ;;  %v1608_v30 = vadd.f32 %v2423_v29, %v1607_v22  ;;  %v1449_v17 = vmul.f32 %v2226_v21, %v460_v50  ;;  %v845_v22 = vadd.f32 %v813_v1, %v396_v39  ;;  %v430_v21 = vld [vmem:[%s2207_s20 + $0xd0] sm:$0xff] }
  0xc3   : > { %v1363_v27 = vpack.c.bf16 %v1290_v15, %v1290_v15  ;;  %v727_v33 = vpack.c.bf16 %v655_v23, %v655_v23  ;;  %v527_v15 = vadd.f32 %v495_v58, %v397_v42  ;;  %v846_v23 = vadd.f32 %v814_v2, %v397_v42 }
  0xc4   : > { %v1046_v34 = vpack.c.bf16 %v974_v24, %v974_v24  ;;  %1681 = vst.msk [vmem:[%s2446_s19 + $0x20] sm:$0xff] %vm584_vm0, %v1608_v30  ;;  %v1163_v24 = vadd.f32 %v1131_v8, %v396_v39  ;;  %v1482_v30 = vadd.f32 %v1450_v19, %v397_v42  ;;  %v462_v43 = vsub.f32 %v430_v21, %v2574_v26  ;;  %v2633_v8 = vld [vmem:[%s2982_s2 + $0x3] ss:$0 sm:$0xff] }
  0xc5   : > { %1395 = vst.msk [vmem:[%s2436_s15 + $0x10] sm:$0xf] %vm754_vm1, %v1363_v27  ;;  %v1481_v27 = vadd.f32 %v1449_v17, %v396_v39  ;;  %v865_v35 = vpack.c.bf16 %v846_v23, %v845_v22  ;;  %v400_v17 = vld [vmem:[%s2201_s17 + $0xe0] sm:$0xff]  ;;  %v433_v23 = vld [vmem:[%s2207_s20 + $0xe8] sm:$0xff] }
  0xc6   : > { %760 = vst.msk [vmem:[%s2399_s13 + $0x14] sm:$0xf] %vm754_vm1, %v727_v33  ;;  %v1183_v40 = vpack.c.bf16 %v1164_v25, %v1163_v24  ;;  %v1451_v12 = vmul.f32 %v2633_v8, %v462_v43  ;;  %v432_v22 = vld [vmem:[%s2207_s20 + $0xe0] sm:$0xff] }
  0xc7   : > { %1078 = vst.msk [vmem:[%s2405_s28 + $0x14] sm:$0xf] %vm754_vm1, %v1046_v34  ;;  %v546_v34 = vpack.c.bf16 %v527_v15, %v526_v14 }
  0xc8   : > { %v1291_v45 = vpop.f32.mrf.mxu2  ;;  %v657_v51 = vpop.f32.mrf.mxu0  ;;  %v1483_v19 = vadd.f32 %v1451_v12, %v2574_v26  ;;  %v402_v12 = vld [vmem:[%s2201_s17 + $0xf0] sm:$0xff] }
  0xc9   : > { %v1292_v49 = vadd.f32 %v2413_v28, %v1291_v45  ;;  %v976_v52 = vpop.f32.mrf.mxu1  ;;  %v1609_v54 = vpop.f32.mrf.mxu3  ;;  %v658_v56 = vadd.f32 %v2379_v4, %v657_v51 }
  0xca   : > { %v977_v47 = vadd.f32 %v2384_v5, %v976_v52  ;;  %v1610_v60 = vadd.f32 %v2423_v29, %v1609_v54  ;;  %v2601_v52 = vld [vmem:[%s2982_s2] ss:$0 sm:$0xff] }
  0xcb   : > { %v1364_v59 = vpack.c.bf16 %v1292_v49, %v1292_v49  ;;  %v728_v62 = vpack.c.bf16 %v658_v56, %v658_v56  ;;  %1923 = vmatmul.msk.bf16.gmra.mxu0 %vm584_vm0, %v545_v46  ;;  %v497_v54 = vmul.f32 %v2601_v52, %v463_v44 }
  0xcc   : > { %v1047_v63 = vpack.c.bf16 %v977_v47, %v977_v47  ;;  %1963 = vmatmul.msk.bf16.gmra.mxu1 %vm584_vm0, %v864_v48  ;;  %1682 = vst.msk [vmem:[%s2446_s19 + $0x28] sm:$0xff] %vm584_vm0, %v1610_v60  ;;  %v1501_v48 = vpack.c.bf16 %v1482_v30, %v1481_v27  ;;  %v2613_v47 = vld [vmem:[%s2982_s2 + $0x1] ss:$0 sm:$0xff] }
  0xcd   : > { %1396 = vst.msk [vmem:[%s2436_s15 + $0x14] sm:$0xf] %vm754_vm1, %v1364_v59  ;;  %2003 = vmatmul.msk.bf16.gmra.mxu2 %vm584_vm0, %v1182_v53  ;;  %v496_v53 = vmul.f32 %v2601_v52, %v462_v43  ;;  %v815_v50 = vmul.f32 %v2613_v47, %v462_v43  ;;  %v816_v57 = vmul.f32 %v2613_v47, %v463_v44 }
  0xce   : > { %761 = vst.msk [vmem:[%s2399_s13 + $0x18] sm:$0xf] %vm754_vm1, %v728_v62  ;;  %2043 = vmatmul.msk.bf16.gmra.mxu3 %vm584_vm0, %v1500_v61  ;;  %v2621_v62 = vld [vmem:[%s2982_s2 + $0x2] ss:$0 sm:$0xff] }
  0xcf   : > { %1079 = vst.msk [vmem:[%s2405_s28 + $0x18] sm:$0xf] %vm754_vm1, %v1047_v63  ;;  %v1133_v63 = vmul.f32 %v2621_v62, %v462_v43  ;;  %v1134_v55 = vmul.f32 %v2621_v62, %v463_v44  ;;  %v528_v2 = vadd.f32 %v496_v53, %v2574_v26  ;;  %v847_v14 = vadd.f32 %v815_v50, %v2574_v26 }
  0xd0   : > { %v1294_v0 = vpop.f32.mrf.mxu2  ;;  %v659_v6 = vpop.f32.mrf.mxu0  ;;  %v848_v15 = vadd.f32 %v816_v57, %v2579_v31 }
  0xd1   : > { %v1295_v3 = vadd.f32 %v2413_v28, %v1294_v0  ;;  %v978_v7 = vpop.f32.mrf.mxu1  ;;  %v1612_v9 = vpop.f32.mrf.mxu3  ;;  %v660_v10 = vadd.f32 %v2379_v4, %v659_v6 }
  0xd2   : > { %v979_v11 = vadd.f32 %v2384_v5, %v978_v7  ;;  %v1613_v16 = vadd.f32 %v2423_v29, %v1612_v9  ;;  %v1452_v9 = vmul.f32 %v2633_v8, %v463_v44  ;;  %v866_v27 = vpack.c.bf16 %v848_v15, %v847_v14  ;;  %v434_v14 = vld [vmem:[%s2207_s20 + $0xf0] sm:$0xff]  ;;  %v435_v15 = vld [vmem:[%s2207_s20 + $0xf8] sm:$0xff] }
  0xd3   : > { %v1365_v13 = vpack.c.bf16 %v1295_v3, %v1295_v3  ;;  %v729_v18 = vpack.c.bf16 %v660_v10, %v660_v10  ;;  %v529_v3 = vadd.f32 %v497_v54, %v2579_v31 }
  0xd4   : > { %v1048_v20 = vpack.c.bf16 %v979_v11, %v979_v11  ;;  %1683 = vst.msk [vmem:[%s2446_s19 + $0x30] sm:$0xff] %vm584_vm0, %v1613_v16  ;;  %v1166_v16 = vadd.f32 %v1134_v55, %v2579_v31 }
  0xd5   : > { %1397 = vst.msk [vmem:[%s2436_s15 + $0x18] sm:$0xf] %vm754_vm1, %v1365_v13  ;;  %v1165_v13 = vadd.f32 %v1133_v63, %v2574_v26  ;;  %v547_v25 = vpack.c.bf16 %v529_v3, %v528_v2 }
  0xd6   : > { %762 = vst.msk [vmem:[%s2399_s13 + $0x1c] sm:$0xf] %vm754_vm1, %v729_v18  ;;  %v1484_v18 = vadd.f32 %v1452_v9, %v2579_v31 }
  0xd7   : > { %1080 = vst.msk [vmem:[%s2405_s28 + $0x1c] sm:$0xf] %vm754_vm1, %v1048_v20  ;;  %v401_v20 = vld [vmem:[%s2201_s17 + $0xe8] sm:$0xff] }
  0xd8   : > { %v1296_v33 = vpop.f32.mrf.mxu2  ;;  %v662_v37 = vpop.f32.mrf.mxu0 }
  0xd9   : > { %v1297_v36 = vadd.f32 %v2413_v28, %v1296_v33  ;;  %v981_v38 = vpop.f32.mrf.mxu1  ;;  %v1614_v41 = vpop.f32.mrf.mxu3  ;;  %v663_v39 = vadd.f32 %v2379_v4, %v662_v37  ;;  %v1184_v33 = vpack.c.bf16 %v1166_v16, %v1165_v13 }
  0xda   : > { %v982_v42 = vadd.f32 %v2384_v5, %v981_v38  ;;  %v1615_v46 = vadd.f32 %v2423_v29, %v1614_v41 }
  0xdb   : > { %v1366_v45 = vpack.c.bf16 %v1297_v36, %v1297_v36  ;;  %v730_v49 = vpack.c.bf16 %v663_v39, %v663_v39  ;;  %1924 = vmatmul.msk.bf16.gmra.mxu0 %vm584_vm0, %v546_v34  ;;  %v465_v36 = vsub.f32 %v433_v23, %v401_v20 }
  0xdc   : > { %v1049_v51 = vpack.c.bf16 %v982_v42, %v982_v42  ;;  %1964 = vmatmul.msk.bf16.gmra.mxu1 %vm584_vm0, %v865_v35  ;;  %1684 = vst.msk [vmem:[%s2446_s19 + $0x38] sm:$0xff] %vm584_vm0, %v1615_v46  ;;  %v464_v35 = vsub.f32 %v432_v22, %v400_v17 }
  0xdd   : > { %1398 = vst.msk [vmem:[%s2436_s15 + $0x1c] sm:$0xf] %vm754_vm1, %v1366_v45  ;;  %2004 = vmatmul.msk.bf16.gmra.mxu2 %vm584_vm0, %v1183_v40  ;;  %v1502_v40 = vpack.c.bf16 %v1484_v18, %v1483_v19  ;;  %v499_v43 = vmul.f32 %v2601_v52, %v465_v36  ;;  %v818_v46 = vmul.f32 %v2613_v47, %v465_v36 }
  0xde   : > { %763 = vst.msk [vmem:[%s2399_s13 + $0x20] sm:$0xf] %vm754_vm1, %v730_v49  ;;  %2044 = vmatmul.msk.bf16.gmra.mxu3 %vm584_vm0, %v1501_v48  ;;  %v498_v42 = vmul.f32 %v2601_v52, %v464_v35  ;;  %v817_v45 = vmul.f32 %v2613_v47, %v464_v35  ;;  %v1135_v53 = vmul.f32 %v2621_v62, %v464_v35 }
  0xdf   : > { %1081 = vst.msk [vmem:[%s2405_s28 + $0x20] sm:$0xf] %vm754_vm1, %v1049_v51  ;;  %v1136_v54 = vmul.f32 %v2621_v62, %v465_v36  ;;  %v1453_v55 = vmul.f32 %v2633_v8, %v464_v35  ;;  %v850_v3 = vadd.f32 %v818_v46, %v401_v20 }
  0xe0   : > { %v1299_v56 = vpop.f32.mrf.mxu2  ;;  %v664_v60 = vpop.f32.mrf.mxu0  ;;  %v849_v2 = vadd.f32 %v817_v45, %v400_v17 }
  0xe1   : > { %v1300_v59 = vadd.f32 %v2413_v28, %v1299_v56  ;;  %v983_v61 = vpop.f32.mrf.mxu1  ;;  %v1617_v58 = vpop.f32.mrf.mxu3  ;;  %v665_v0 = vadd.f32 %v2379_v4, %v664_v60  ;;  %v531_v60 = vadd.f32 %v499_v43, %v401_v20  ;;  %v1485_v9 = vadd.f32 %v1453_v55, %v400_v17 }
  0xe2   : > { %v984_v1 = vadd.f32 %v2384_v5, %v983_v61  ;;  %v1618_v7 = vadd.f32 %v2423_v29, %v1617_v58  ;;  %v1454_v58 = vmul.f32 %v2633_v8, %v465_v36  ;;  %v867_v19 = vpack.c.bf16 %v850_v3, %v849_v2 }
  0xe3   : > { %v1367_v6 = vpack.c.bf16 %v1300_v59, %v1300_v59  ;;  %v731_v10 = vpack.c.bf16 %v665_v0, %v665_v0  ;;  %v530_v59 = vadd.f32 %v498_v42, %v400_v17 }
  0xe4   : > { %v1050_v11 = vpack.c.bf16 %v984_v1, %v984_v1  ;;  %1685 = vst.msk [vmem:[%s2446_s19 + $0x40] sm:$0xff] %vm584_vm0, %v1618_v7  ;;  %v1168_v7 = vadd.f32 %v1136_v54, %v401_v20 }
  0xe5   : > { %1399 = vst.msk [vmem:[%s2436_s15 + $0x20] sm:$0xf] %vm754_vm1, %v1367_v6  ;;  %v1167_v6 = vadd.f32 %v1135_v53, %v400_v17  ;;  %v548_v16 = vpack.c.bf16 %v531_v60, %v530_v59 }
  0xe6   : > { %764 = vst.msk [vmem:[%s2399_s13 + $0x24] sm:$0xf] %vm754_vm1, %v731_v10  ;;  %v1486_v10 = vadd.f32 %v1454_v58, %v401_v20  ;;  %v466_v20 = vsub.f32 %v434_v14, %v402_v12 }
  0xe7   : > { %1082 = vst.msk [vmem:[%s2405_s28 + $0x24] sm:$0xf] %vm754_vm1, %v1050_v11  ;;  %v403_v11 = vld [vmem:[%s2201_s17 + $0xf8] sm:$0xff] }
  0xe8   : > { %v1301_v24 = vpop.f32.mrf.mxu2  ;;  %v667_v21 = vpop.f32.mrf.mxu0  ;;  %v1137_v42 = vmul.f32 %v2621_v62, %v466_v20 }
  0xe9   : > { %v1302_v30 = vadd.f32 %v2413_v28, %v1301_v24  ;;  %v986_v32 = vpop.f32.mrf.mxu1  ;;  %v1619_v34 = vpop.f32.mrf.mxu3  ;;  %v668_v26 = vadd.f32 %v2379_v4, %v667_v21  ;;  %v1185_v24 = vpack.c.bf16 %v1168_v7, %v1167_v6 }
  0xea   : > { %v987_v31 = vadd.f32 %v2384_v5, %v986_v32  ;;  %v1620_v38 = vadd.f32 %v2423_v29, %v1619_v34 }
  0xeb   : > { %v1368_v37 = vpack.c.bf16 %v1302_v30, %v1302_v30  ;;  %v732_v41 = vpack.c.bf16 %v668_v26, %v668_v26  ;;  %1925 = vmatmul.msk.bf16.gmra.mxu0 %vm584_vm0, %v547_v25  ;;  %v467_v30 = vsub.f32 %v435_v15, %v403_v11 }
  0xec   : > { %v1051_v39 = vpack.c.bf16 %v987_v31, %v987_v31  ;;  %1965 = vmatmul.msk.bf16.gmra.mxu1 %vm584_vm0, %v866_v27  ;;  %1686 = vst.msk [vmem:[%s2446_s19 + $0x48] sm:$0xff] %vm584_vm0, %v1620_v38  ;;  %v500_v31 = vmul.f32 %v2601_v52, %v466_v20 }
  0xed   : > { %1400 = vst.msk [vmem:[%s2436_s15 + $0x24] sm:$0xf] %vm754_vm1, %v1368_v37  ;;  %2005 = vmatmul.msk.bf16.gmra.mxu2 %vm584_vm0, %v1184_v33  ;;  %v1503_v33 = vpack.c.bf16 %v1486_v10, %v1485_v9  ;;  %v501_v35 = vmul.f32 %v2601_v52, %v467_v30  ;;  %v819_v37 = vmul.f32 %v2613_v47, %v466_v20 }
  0xee   : > { %765 = vst.msk [vmem:[%s2399_s13 + $0x28] sm:$0xf] %vm754_vm1, %v732_v41  ;;  %2045 = vmatmul.msk.bf16.gmra.mxu3 %vm584_vm0, %v1502_v40  ;;  %v820_v38 = vmul.f32 %v2613_v47, %v467_v30  ;;  %v1138_v52 = vmul.f32 %v2621_v62, %v467_v30  ;;  %v532_v46 = vadd.f32 %v500_v31, %v402_v12 }
  0xef   : > { %1083 = vst.msk [vmem:[%s2405_s28 + $0x28] sm:$0xf] %vm754_vm1, %v1051_v39  ;;  %v1456_v53 = vmul.f32 %v2633_v8, %v467_v30  ;;  %v851_v62 = vadd.f32 %v819_v37, %v402_v12 }
  0xf0   : > { %v1304_v44 = vpop.f32.mrf.mxu2  ;;  %v669_v49 = vpop.f32.mrf.mxu0  ;;  %v1170_v59 = vadd.f32 %v1138_v52, %v403_v11 }
  0xf1   : > { %v1305_v48 = vadd.f32 %v2413_v28, %v1304_v44  ;;  %v988_v51 = vpop.f32.mrf.mxu1  ;;  %v1622_v56 = vpop.f32.mrf.mxu3  ;;  %v670_v50 = vadd.f32 %v2379_v4, %v669_v49 }
  0xf2   : > { %v989_v57 = vadd.f32 %v2384_v5, %v988_v51  ;;  %v1623_v63 = vadd.f32 %v2423_v29, %v1622_v56  ;;  %v1455_v51 = vmul.f32 %v2633_v8, %v466_v20 }
  0xf3   : > { %v1369_v61 = vpack.c.bf16 %v1305_v48, %v1305_v48  ;;  %v733_v0 = vpack.c.bf16 %v670_v50, %v670_v50  ;;  %v533_v48 = vadd.f32 %v501_v35, %v403_v11  ;;  %v852_v50 = vadd.f32 %v820_v38, %v403_v11 }
  0xf4   : > { %v1052_v1 = vpack.c.bf16 %v989_v57, %v989_v57  ;;  %1687 = vst.msk [vmem:[%s2446_s19 + $0x50] sm:$0xff] %vm584_vm0, %v1623_v63  ;;  %v1169_v57 = vadd.f32 %v1137_v42, %v402_v12  ;;  %v1487_v60 = vadd.f32 %v1455_v51, %v402_v12 }
  0xf5   : > { %1401 = vst.msk [vmem:[%s2436_s15 + $0x28] sm:$0xf] %vm754_vm1, %v1369_v61  ;;  %v1488_v61 = vadd.f32 %v1456_v53, %v403_v11  ;;  %v549_v55 = vpack.c.bf16 %v533_v48, %v532_v46  ;;  %v868_v8 = vpack.c.bf16 %v852_v50, %v851_v62 }
  0xf6   : > { %766 = vst.msk [vmem:[%s2399_s13 + $0x2c] sm:$0xf] %vm754_vm1, %v733_v0  ;;  %v1186_v2 = vpack.c.bf16 %v1170_v59, %v1169_v57 }
  0xf7   : > { %1084 = vst.msk [vmem:[%s2405_s28 + $0x2c] sm:$0xf] %vm754_vm1, %v1052_v1  ;;  %v1504_v10 = vpack.c.bf16 %v1488_v61, %v1487_v60 }
  0xf8   : > { %v1306_v13 = vpop.f32.mrf.mxu2  ;;  %v672_v22 = vpop.f32.mrf.mxu0 }
  0xf9   : > { %v1307_v18 = vadd.f32 %v2413_v28, %v1306_v13  ;;  %v991_v23 = vpop.f32.mrf.mxu1  ;;  %v1624_v25 = vpop.f32.mrf.mxu3  ;;  %v673_v27 = vadd.f32 %v2379_v4, %v672_v22 }
  0xfa   : > { %v992_v17 = vadd.f32 %v2384_v5, %v991_v23  ;;  %v1625_v32 = vadd.f32 %v2423_v29, %v1624_v25 }
  0xfb   : > { %v1370_v21 = vpack.c.bf16 %v1307_v18, %v1307_v18  ;;  %v734_v34 = vpack.c.bf16 %v673_v27, %v673_v27  ;;  %1926 = vmatmul.msk.bf16.gmra.mxu0 %vm584_vm0, %v548_v16 }
  0xfc   : > { %v1053_v26 = vpack.c.bf16 %v992_v17, %v992_v17  ;;  %1966 = vmatmul.msk.bf16.gmra.mxu1 %vm584_vm0, %v867_v19  ;;  %1688 = vst.msk [vmem:[%s2446_s19 + $0x58] sm:$0xff] %vm584_vm0, %v1625_v32 }
  0xfd   : > { %1402 = vst.msk [vmem:[%s2436_s15 + $0x2c] sm:$0xf] %vm754_vm1, %v1370_v21  ;;  %2006 = vmatmul.msk.bf16.gmra.mxu2 %vm584_vm0, %v1185_v24 }
  0xfe   : > { %767 = vst.msk [vmem:[%s2399_s13 + $0x30] sm:$0xf] %vm754_vm1, %v734_v34  ;;  %2046 = vmatmul.msk.bf16.gmra.mxu3 %vm584_vm0, %v1503_v33 }
  0xff   : > { %1085 = vst.msk [vmem:[%s2405_s28 + $0x30] sm:$0xf] %vm754_vm1, %v1053_v26 }
 0x100   : > { %v1309_v36 = vpop.f32.mrf.mxu2  ;;  %v674_v41 = vpop.f32.mrf.mxu0 }
 0x101   : > { %v1310_v40 = vadd.f32 %v2413_v28, %v1309_v36  ;;  %v993_v39 = vpop.f32.mrf.mxu1  ;;  %v1627_v43 = vpop.f32.mrf.mxu3  ;;  %v675_v44 = vadd.f32 %v2379_v4, %v674_v41 }
 0x102   : > { %v994_v45 = vadd.f32 %v2384_v5, %v993_v39  ;;  %v1628_v49 = vadd.f32 %v2423_v29, %v1627_v43 }
 0x103   : > { %v1371_v47 = vpack.c.bf16 %v1310_v40, %v1310_v40  ;;  %v735_v54 = vpack.c.bf16 %v675_v44, %v675_v44 }
 0x104   : > { %v1054_v56 = vpack.c.bf16 %v994_v45, %v994_v45  ;;  %1689 = vst.msk [vmem:[%s2446_s19 + $0x60] sm:$0xff] %vm584_vm0, %v1628_v49 }
 0x105   : > { %1403 = vst.msk [vmem:[%s2436_s15 + $0x30] sm:$0xf] %vm754_vm1, %v1371_v47 }
 0x106   : > { %768 = vst.msk [vmem:[%s2399_s13 + $0x34] sm:$0xf] %vm754_vm1, %v735_v54 }
 0x107   : > { %1086 = vst.msk [vmem:[%s2405_s28 + $0x34] sm:$0xf] %vm754_vm1, %v1054_v56 }
 0x108   : > { %v1311_v63 = vpop.f32.mrf.mxu2  ;;  %v677_v0 = vpop.f32.mrf.mxu0 }
 0x109   : > { %v1312_v58 = vadd.f32 %v2413_v28, %v1311_v63  ;;  %v996_v1 = vpop.f32.mrf.mxu1  ;;  %v1629_v3 = vpop.f32.mrf.mxu3  ;;  %v678_v6 = vadd.f32 %v2379_v4, %v677_v0  ;;  %v2805_v0 = vld [vmem:[%s2984_s4 + $0x1] ss:$0 sm:$0xff] }
 0x10a   : > { %v997_v7 = vadd.f32 %v2384_v5, %v996_v1  ;;  %v1630_v9 = vadd.f32 %v2423_v29, %v1629_v3 }
 0x10b   : > { %v1372_v12 = vpack.c.bf16 %v1312_v58, %v1312_v58  ;;  %v736_v11 = vpack.c.bf16 %v678_v6, %v678_v6  ;;  %1927 = vmatmul.msk.bf16.gmra.mxu0 %vm584_vm0, %v549_v55 }
 0x10c   : > { %v1055_v14 = vpack.c.bf16 %v997_v7, %v997_v7  ;;  %1967 = vmatmul.msk.bf16.gmra.mxu1 %vm584_vm0, %v868_v8  ;;  %1690 = vst.msk [vmem:[%s2446_s19 + $0x68] sm:$0xff] %vm584_vm0, %v1630_v9  ;;  %v2799_v8 = vld [vmem:[%s2984_s4] ss:$0 sm:$0xff] }
 0x10d   : > { %1404 = vst.msk [vmem:[%s2436_s15 + $0x34] sm:$0xf] %vm754_vm1, %v1372_v12  ;;  %2007 = vmatmul.msk.bf16.gmra.mxu2 %vm584_vm0, %v1186_v2 }
 0x10e   : > { %769 = vst.msk [vmem:[%s2399_s13 + $0x38] sm:$0xf] %vm754_vm1, %v736_v11  ;;  %2047 = vmatmul.msk.bf16.gmra.mxu3 %vm584_vm0, %v1504_v10 }
 0x10f   : > { %1087 = vst.msk [vmem:[%s2405_s28 + $0x38] sm:$0xf] %vm754_vm1, %v1055_v14 }
 0x110   : > { %v1314_v15 = vpop.f32.mrf.mxu2  ;;  %v679_v16 = vpop.f32.mrf.mxu0 }
 0x111   : > { %v1315_v13 = vadd.f32 %v2413_v28, %v1314_v15  ;;  %v998_v19 = vpop.f32.mrf.mxu1  ;;  %v1632_v18 = vpop.f32.mrf.mxu3  ;;  %v680_v22 = vadd.f32 %v2379_v4, %v679_v16 }
 0x112   : > { %v999_v23 = vadd.f32 %v2384_v5, %v998_v19  ;;  %v1633_v25 = vadd.f32 %v2423_v29, %v1632_v18 }
 0x113   : > { %v1373_v24 = vpack.c.bf16 %v1315_v13, %v1315_v13  ;;  %v737_v27 = vpack.c.bf16 %v680_v22, %v680_v22 }
 0x114   : > { %v1056_v17 = vpack.c.bf16 %v999_v23, %v999_v23  ;;  %1691 = vst.msk [vmem:[%s2446_s19 + $0x70] sm:$0xff] %vm584_vm0, %v1633_v25  ;;  %v2832_v23 = vld [vmem:[%s2984_s4 + $0x2] ss:$0 sm:$0xff] }
 0x115   : > { %1405 = vst.msk [vmem:[%s2436_s15 + $0x38] sm:$0xf] %vm754_vm1, %v1373_v24 }
 0x116   : > { %770 = vst.msk [vmem:[%s2399_s13 + $0x3c] sm:$0xf] %vm754_vm1, %v737_v27 }
 0x117   : > { %1088 = vst.msk [vmem:[%s2405_s28 + $0x3c] sm:$0xf] %vm754_vm1, %v1056_v17 }
 0x118   : > { %v1316_v20 = vpop.f32.mrf.mxu2  ;;  %v682_v21 = vpop.f32.mrf.mxu0 }
 0x119   : > { %v1317_v30 = vadd.f32 %v2413_v28, %v1316_v20  ;;  %v1001_v32 = vpop.f32.mrf.mxu1  ;;  %v1634_v33 = vpop.f32.mrf.mxu3  ;;  %v683_v34 = vadd.f32 %v2379_v4, %v682_v21  ;;  %v2840_v21 = vld [vmem:[%s2984_s4 + $0x3] ss:$0 sm:$0xff] }
 0x11a   : > { %v1002_v26 = vadd.f32 %v2384_v5, %v1001_v32  ;;  %v1635_v35 = vadd.f32 %v2423_v29, %v1634_v33 }
 0x11b   : > { %v1374_v31 = vpack.c.bf16 %v1317_v30, %v1317_v30  ;;  %v738_v36 = vpack.c.bf16 %v683_v34, %v683_v34 }
 0x11c   : > { %v1057_v37 = vpack.c.bf16 %v1002_v26, %v1002_v26  ;;  %1692 = vst.msk [vmem:[%s2446_s19 + $0x78] sm:$0xff] %vm584_vm0, %v1635_v35 }
 0x11d   : > { %1406 = vst.msk [vmem:[%s2436_s15 + $0x3c] sm:$0xf] %vm754_vm1, %v1374_v31 }
 0x11e   : > { %771 = vst.msk [vmem:[%s2399_s13 + $0x40] sm:$0xf] %vm754_vm1, %v738_v36 }
 0x11f   : > { %1089 = vst.msk [vmem:[%s2405_s28 + $0x40] sm:$0xf] %vm754_vm1, %v1057_v37 }
 0x120   : > { %v1319_v38 = vpop.f32.mrf.mxu2  ;;  %v684_v41 = vpop.f32.mrf.mxu0 }
 0x121   : > { %v1320_v40 = vadd.f32 %v2413_v28, %v1319_v38  ;;  %v1003_v39 = vpop.f32.mrf.mxu1  ;;  %v1637_v42 = vpop.f32.mrf.mxu3  ;;  %v685_v52 = vadd.f32 %v2379_v4, %v684_v41 }
 0x122   : > { %v1004_v43 = vadd.f32 %v2384_v5, %v1003_v39  ;;  %v1638_v45 = vadd.f32 %v2423_v29, %v1637_v42 }
 0x123   : > { %v1375_v44 = vpack.c.bf16 %v1320_v40, %v1320_v40  ;;  %v739_v46 = vpack.c.bf16 %v685_v52, %v685_v52 }
 0x124   : > { %v1058_v48 = vpack.c.bf16 %v1004_v43, %v1004_v43  ;;  %1693 = vst.msk [vmem:[%s2446_s19 + $0x80] sm:$0xff] %vm584_vm0, %v1638_v45 }
 0x125   : > { %1407 = vst.msk [vmem:[%s2436_s15 + $0x40] sm:$0xf] %vm754_vm1, %v1375_v44 }
 0x126   : > { %772 = vst.msk [vmem:[%s2399_s13 + $0x44] sm:$0xf] %vm754_vm1, %v739_v46 }
 0x127   : > { %1090 = vst.msk [vmem:[%s2405_s28 + $0x44] sm:$0xf] %vm754_vm1, %v1058_v48 }
 0x128   : > { %v1321_v47 = vpop.f32.mrf.mxu2  ;;  %v687_v51 = vpop.f32.mrf.mxu0 }
 0x129   : > { %v1322_v49 = vadd.f32 %v2413_v28, %v1321_v47  ;;  %v1006_v53 = vpop.f32.mrf.mxu1  ;;  %v1639_v54 = vpop.f32.mrf.mxu3  ;;  %v688_v56 = vadd.f32 %v2379_v4, %v687_v51 }
 0x12a   : > { %v1007_v62 = vadd.f32 %v2384_v5, %v1006_v53  ;;  %v1640_v57 = vadd.f32 %v2423_v29, %v1639_v54 }
 0x12b   : > { %v1376_v50 = vpack.c.bf16 %v1322_v49, %v1322_v49  ;;  %v740_v59 = vpack.c.bf16 %v688_v56, %v688_v56 }
 0x12c   : > { %v1059_v60 = vpack.c.bf16 %v1007_v62, %v1007_v62  ;;  %1694 = vst.msk [vmem:[%s2446_s19 + $0x88] sm:$0xff] %vm584_vm0, %v1640_v57 }
 0x12d   : > { %1408 = vst.msk [vmem:[%s2436_s15 + $0x44] sm:$0xf] %vm754_vm1, %v1376_v50 }
 0x12e   : > { %773 = vst.msk [vmem:[%s2399_s13 + $0x48] sm:$0xf] %vm754_vm1, %v740_v59 }
 0x12f   : > { %1091 = vst.msk [vmem:[%s2405_s28 + $0x48] sm:$0xf] %vm754_vm1, %v1059_v60 }
 0x130   : > { %v1324_v61 = vpop.f32.mrf.mxu2  ;;  %v689_v5 = vpop.f32.mrf.mxu0 }
 0x131   : > { %v1325_v4 = vadd.f32 %v2413_v28, %v1324_v61  ;;  %v1008_v63 = vpop.f32.mrf.mxu1  ;;  %v1642_v55 = vpop.f32.mrf.mxu3  ;;  %v690_v58 = vadd.f32 %v2799_v8, %v689_v5 }
 0x132   : > { %v1009_v1 = vadd.f32 %v2805_v0, %v1008_v63  ;;  %v1643_v3 = vadd.f32 %v2423_v29, %v1642_v55 }
 0x133   : > { %v1377_v2 = vpack.c.bf16 %v1325_v4, %v1325_v4  ;;  %v741_v6 = vpack.c.bf16 %v690_v58, %v690_v58 }
 0x134   : > { %v1060_v7 = vpack.c.bf16 %v1009_v1, %v1009_v1  ;;  %1695 = vst.msk [vmem:[%s2446_s19 + $0x90] sm:$0xff] %vm584_vm0, %v1643_v3 }
 0x135   : > { %1409 = vst.msk [vmem:[%s2436_s15 + $0x48] sm:$0xf] %vm754_vm1, %v1377_v2 }
 0x136   : > { %774 = vst.msk [vmem:[%s2399_s13 + $0x4c] sm:$0xf] %vm754_vm1, %v741_v6 }
 0x137   : > { %1092 = vst.msk [vmem:[%s2405_s28 + $0x4c] sm:$0xf] %vm754_vm1, %v1060_v7 }
 0x138   : > { %v1326_v12 = vpop.f32.mrf.mxu2  ;;  %v692_v10 = vpop.f32.mrf.mxu0 }
 0x139   : > { %v1327_v9 = vadd.f32 %v2413_v28, %v1326_v12  ;;  %v1011_v11 = vpop.f32.mrf.mxu1  ;;  %v1644_v14 = vpop.f32.mrf.mxu3  ;;  %v693_v15 = vadd.f32 %v2799_v8, %v692_v10 }
 0x13a   : > { %v1012_v13 = vadd.f32 %v2805_v0, %v1011_v11  ;;  %v1645_v19 = vadd.f32 %v2423_v29, %v1644_v14 }
 0x13b   : > { %v1378_v16 = vpack.c.bf16 %v1327_v9, %v1327_v9  ;;  %v742_v18 = vpack.c.bf16 %v693_v15, %v693_v15 }
 0x13c   : > { %v1061_v22 = vpack.c.bf16 %v1012_v13, %v1012_v13  ;;  %1696 = vst.msk [vmem:[%s2446_s19 + $0x98] sm:$0xff] %vm584_vm0, %v1645_v19 }
 0x13d   : > { %1410 = vst.msk [vmem:[%s2436_s15 + $0x4c] sm:$0xf] %vm754_vm1, %v1378_v16 }
 0x13e   : > { %775 = vst.msk [vmem:[%s2399_s13 + $0x50] sm:$0xf] %vm754_vm1, %v742_v18 }
 0x13f   : > { %1093 = vst.msk [vmem:[%s2405_s28 + $0x50] sm:$0xf] %vm754_vm1, %v1061_v22 }
 0x140   : > { %v1329_v28 = vpop.f32.mrf.mxu2  ;;  %v694_v24 = vpop.f32.mrf.mxu0 }
 0x141   : > { %v1330_v29 = vadd.f32 %v2832_v23, %v1329_v28  ;;  %v1013_v25 = vpop.f32.mrf.mxu1  ;;  %v1647_v27 = vpop.f32.mrf.mxu3  ;;  %v695_v17 = vadd.f32 %v2799_v8, %v694_v24 }
 0x142   : > { %v1014_v20 = vadd.f32 %v2805_v0, %v1013_v25  ;;  %v1648_v32 = vadd.f32 %v2840_v21, %v1647_v27 }
 0x143   : > { %v1379_v30 = vpack.c.bf16 %v1330_v29, %v1330_v29  ;;  %v743_v33 = vpack.c.bf16 %v695_v17, %v695_v17 }
 0x144   : > { %v1062_v34 = vpack.c.bf16 %v1014_v20, %v1014_v20  ;;  %1697 = vst.msk [vmem:[%s2446_s19 + $0xa0] sm:$0xff] %vm584_vm0, %v1648_v32 }
 0x145   : > { %1411 = vst.msk [vmem:[%s2436_s15 + $0x50] sm:$0xf] %vm754_vm1, %v1379_v30 }
 0x146   : > { %776 = vst.msk [vmem:[%s2399_s13 + $0x54] sm:$0xf] %vm754_vm1, %v743_v33 }
 0x147   : > { %1094 = vst.msk [vmem:[%s2405_s28 + $0x54] sm:$0xf] %vm754_vm1, %v1062_v34 }
 0x148   : > { %v1331_v26 = vpop.f32.mrf.mxu2  ;;  %v697_v35 = vpop.f32.mrf.mxu0 }
 0x149   : > { %v1332_v31 = vadd.f32 %v2832_v23, %v1331_v26  ;;  %v1016_v36 = vpop.f32.mrf.mxu1  ;;  %v1649_v37 = vpop.f32.mrf.mxu3  ;;  %v698_v38 = vadd.f32 %v2799_v8, %v697_v35 }
 0x14a   : > { %v1017_v40 = vadd.f32 %v2805_v0, %v1016_v36  ;;  %v1650_v39 = vadd.f32 %v2840_v21, %v1649_v37 }
 0x14b   : > { %v1380_v41 = vpack.c.bf16 %v1332_v31, %v1332_v31  ;;  %v744_v42 = vpack.c.bf16 %v698_v38, %v698_v38 }
 0x14c   : > { %v1063_v52 = vpack.c.bf16 %v1017_v40, %v1017_v40  ;;  %1698 = vst.msk [vmem:[%s2446_s19 + $0xa8] sm:$0xff] %vm584_vm0, %v1650_v39 }
 0x14d   : > { %1412 = vst.msk [vmem:[%s2436_s15 + $0x54] sm:$0xf] %vm754_vm1, %v1380_v41 }
 0x14e   : > { %777 = vst.msk [vmem:[%s2399_s13 + $0x58] sm:$0xf] %vm754_vm1, %v744_v42 }
 0x14f   : > { %1095 = vst.msk [vmem:[%s2405_s28 + $0x58] sm:$0xf] %vm754_vm1, %v1063_v52 }
 0x150   : > { %v1334_v43 = vpop.f32.mrf.mxu2  ;;  %v699_v45 = vpop.f32.mrf.mxu0 }
 0x151   : > { %v1335_v44 = vadd.f32 %v2832_v23, %v1334_v43  ;;  %v1018_v46 = vpop.f32.mrf.mxu1  ;;  %v1652_v48 = vpop.f32.mrf.mxu3  ;;  %v700_v47 = vadd.f32 %v2799_v8, %v699_v45 }
 0x152   : > { %v1019_v49 = vadd.f32 %v2805_v0, %v1018_v46  ;;  %v1653_v53 = vadd.f32 %v2840_v21, %v1652_v48 }
 0x153   : > { %v1381_v51 = vpack.c.bf16 %v1335_v44, %v1335_v44  ;;  %v745_v54 = vpack.c.bf16 %v700_v47, %v700_v47 }
 0x154   : > { %v1064_v56 = vpack.c.bf16 %v1019_v49, %v1019_v49  ;;  %1699 = vst.msk [vmem:[%s2446_s19 + $0xb0] sm:$0xff] %vm584_vm0, %v1653_v53 }
 0x155   : > { %1413 = vst.msk [vmem:[%s2436_s15 + $0x58] sm:$0xf] %vm754_vm1, %v1381_v51 }
 0x156   : > { %778 = vst.msk [vmem:[%s2399_s13 + $0x5c] sm:$0xf] %vm754_vm1, %v745_v54 }
 0x157   : > { %1096 = vst.msk [vmem:[%s2405_s28 + $0x5c] sm:$0xf] %vm754_vm1, %v1064_v56 }
 0x158   : > { %v1336_v62 = vpop.f32.mrf.mxu2  ;;  %v702_v57 = vpop.f32.mrf.mxu0 }
 0x159   : > { %v1337_v50 = vadd.f32 %v2832_v23, %v1336_v62  ;;  %v1021_v59 = vpop.f32.mrf.mxu1  ;;  %v1654_v60 = vpop.f32.mrf.mxu3  ;;  %v703_v61 = vadd.f32 %v2799_v8, %v702_v57 }
 0x15a   : > { %v1022_v4 = vadd.f32 %v2805_v0, %v1021_v59  ;;  %v1655_v63 = vadd.f32 %v2840_v21, %v1654_v60 }
 0x15b   : > { %v1382_v5 = vpack.c.bf16 %v1337_v50, %v1337_v50  ;;  %v746_v55 = vpack.c.bf16 %v703_v61, %v703_v61 }
 0x15c   : > { %v1065_v58 = vpack.c.bf16 %v1022_v4, %v1022_v4  ;;  %1700 = vst.msk [vmem:[%s2446_s19 + $0xb8] sm:$0xff] %vm584_vm0, %v1655_v63 }
 0x15d   : > { %1414 = vst.msk [vmem:[%s2436_s15 + $0x5c] sm:$0xf] %vm754_vm1, %v1382_v5 }
 0x15e   : > { %779 = vst.msk [vmem:[%s2399_s13 + $0x60] sm:$0xf] %vm754_vm1, %v746_v55 }
 0x15f   : > { %1097 = vst.msk [vmem:[%s2405_s28 + $0x60] sm:$0xf] %vm754_vm1, %v1065_v58 }
 0x160   : > { %v1339_v1 = vpop.f32.mrf.mxu2  ;;  %v704_v3 = vpop.f32.mrf.mxu0 }
 0x161   : > { %v1340_v2 = vadd.f32 %v2832_v23, %v1339_v1  ;;  %v1023_v6 = vpop.f32.mrf.mxu1  ;;  %v1657_v7 = vpop.f32.mrf.mxu3  ;;  %v705_v12 = vadd.f32 %v2799_v8, %v704_v3 }
 0x162   : > { %v1024_v9 = vadd.f32 %v2805_v0, %v1023_v6  ;;  %v1658_v11 = vadd.f32 %v2840_v21, %v1657_v7 }
 0x163   : > { %v1383_v10 = vpack.c.bf16 %v1340_v2, %v1340_v2  ;;  %v747_v14 = vpack.c.bf16 %v705_v12, %v705_v12 }
 0x164   : > { %v1066_v15 = vpack.c.bf16 %v1024_v9, %v1024_v9  ;;  %1701 = vst.msk [vmem:[%s2446_s19 + $0xc0] sm:$0xff] %vm584_vm0, %v1658_v11 }
 0x165   : > { %1415 = vst.msk [vmem:[%s2436_s15 + $0x60] sm:$0xf] %vm754_vm1, %v1383_v10 }
 0x166   : > { %780 = vst.msk [vmem:[%s2399_s13 + $0x64] sm:$0xf] %vm754_vm1, %v747_v14 }
 0x167   : > { %1098 = vst.msk [vmem:[%s2405_s28 + $0x64] sm:$0xf] %vm754_vm1, %v1066_v15 }
 0x168   : > { %v1341_v13 = vpop.f32.mrf.mxu2  ;;  %v707_v19 = vpop.f32.mrf.mxu0 }
 0x169   : > { %v1342_v16 = vadd.f32 %v2832_v23, %v1341_v13  ;;  %v1026_v18 = vpop.f32.mrf.mxu1  ;;  %v1659_v22 = vpop.f32.mrf.mxu3  ;;  %v708_v28 = vadd.f32 %v2799_v8, %v707_v19 }
 0x16a   : > { %v1027_v29 = vadd.f32 %v2805_v0, %v1026_v18  ;;  %v1660_v25 = vadd.f32 %v2840_v21, %v1659_v22 }
 0x16b   : > { %v1384_v24 = vpack.c.bf16 %v1342_v16, %v1342_v16  ;;  %v748_v27 = vpack.c.bf16 %v708_v28, %v708_v28 }
 0x16c   : > { %v1067_v17 = vpack.c.bf16 %v1027_v29, %v1027_v29  ;;  %1702 = vst.msk [vmem:[%s2446_s19 + $0xc8] sm:$0xff] %vm584_vm0, %v1660_v25 }
 0x16d   : > { %1416 = vst.msk [vmem:[%s2436_s15 + $0x64] sm:$0xf] %vm754_vm1, %v1384_v24 }
 0x16e   : > { %781 = vst.msk [vmem:[%s2399_s13 + $0x68] sm:$0xf] %vm754_vm1, %v748_v27 }
 0x16f   : > { %1099 = vst.msk [vmem:[%s2405_s28 + $0x68] sm:$0xf] %vm754_vm1, %v1067_v17 }
 0x170   : > { %v1344_v20 = vpop.f32.mrf.mxu2  ;;  %v709_v32 = vpop.f32.mrf.mxu0 }
 0x171   : > { %v1345_v30 = vadd.f32 %v2832_v23, %v1344_v20  ;;  %v1028_v33 = vpop.f32.mrf.mxu1  ;;  %v1662_v34 = vpop.f32.mrf.mxu3  ;;  %v710_v26 = vadd.f32 %v2799_v8, %v709_v32 }
 0x172   : > { %v1029_v31 = vadd.f32 %v2805_v0, %v1028_v33  ;;  %v1663_v36 = vadd.f32 %v2840_v21, %v1662_v34 }
 0x173   : > { %v1385_v35 = vpack.c.bf16 %v1345_v30, %v1345_v30  ;;  %v749_v37 = vpack.c.bf16 %v710_v26, %v710_v26 }
 0x174   : > { %v1068_v38 = vpack.c.bf16 %v1029_v31, %v1029_v31  ;;  %1703 = vst.msk [vmem:[%s2446_s19 + $0xd0] sm:$0xff] %vm584_vm0, %v1663_v36 }
 0x175   : > { %1417 = vst.msk [vmem:[%s2436_s15 + $0x68] sm:$0xf] %vm754_vm1, %v1385_v35 }
 0x176   : > { %782 = vst.msk [vmem:[%s2399_s13 + $0x6c] sm:$0xf] %vm754_vm1, %v749_v37 }
 0x177   : > { %1100 = vst.msk [vmem:[%s2405_s28 + $0x6c] sm:$0xf] %vm754_vm1, %v1068_v38 }
 0x178   : > { %v1346_v40 = vpop.f32.mrf.mxu2  ;;  %v712_v39 = vpop.f32.mrf.mxu0 }
 0x179   : > { %v1347_v41 = vadd.f32 %v2832_v23, %v1346_v40  ;;  %v1031_v42 = vpop.f32.mrf.mxu1  ;;  %v1664_v52 = vpop.f32.mrf.mxu3  ;;  %v713_v43 = vadd.f32 %v2799_v8, %v712_v39 }
 0x17a   : > { %v1032_v44 = vadd.f32 %v2805_v0, %v1031_v42  ;;  %v1665_v46 = vadd.f32 %v2840_v21, %v1664_v52 }
 0x17b   : > { %v1386_v45 = vpack.c.bf16 %v1347_v41, %v1347_v41  ;;  %v750_v48 = vpack.c.bf16 %v713_v43, %v713_v43 }
 0x17c   : > { %v1069_v47 = vpack.c.bf16 %v1032_v44, %v1032_v44  ;;  %1704 = vst.msk [vmem:[%s2446_s19 + $0xd8] sm:$0xff] %vm584_vm0, %v1665_v46 }
 0x17d   : > { %1418 = vst.msk [vmem:[%s2436_s15 + $0x6c] sm:$0xf] %vm754_vm1, %v1386_v45 }
 0x17e   : > { %783 = vst.msk [vmem:[%s2399_s13 + $0x70] sm:$0xf] %vm754_vm1, %v750_v48 }
 0x17f   : > { %1101 = vst.msk [vmem:[%s2405_s28 + $0x70] sm:$0xf] %vm754_vm1, %v1069_v47 }
 0x180   : > { %v1349_v49 = vpop.f32.mrf.mxu2  ;;  %v714_v53 = vpop.f32.mrf.mxu0 }
 0x181   : > { %v1350_v51 = vadd.f32 %v2832_v23, %v1349_v49  ;;  %v1033_v54 = vpop.f32.mrf.mxu1  ;;  %v1667_v56 = vpop.f32.mrf.mxu3  ;;  %v715_v62 = vadd.f32 %v2799_v8, %v714_v53 }
 0x182   : > { %v1034_v50 = vadd.f32 %v2805_v0, %v1033_v54  ;;  %v1668_v59 = vadd.f32 %v2840_v21, %v1667_v56 }
 0x183   : > { %v1387_v57 = vpack.c.bf16 %v1350_v51, %v1350_v51  ;;  %v751_v60 = vpack.c.bf16 %v715_v62, %v715_v62 }
 0x184   : > { %v1070_v61 = vpack.c.bf16 %v1034_v50, %v1034_v50  ;;  %1705 = vst.msk [vmem:[%s2446_s19 + $0xe0] sm:$0xff] %vm584_vm0, %v1668_v59 }
 0x185   : > { %1419 = vst.msk [vmem:[%s2436_s15 + $0x70] sm:$0xf] %vm754_vm1, %v1387_v57 }
 0x186   : > { %784 = vst.msk [vmem:[%s2399_s13 + $0x74] sm:$0xf] %vm754_vm1, %v751_v60 }
 0x187   : > { %1102 = vst.msk [vmem:[%s2405_s28 + $0x74] sm:$0xf] %vm754_vm1, %v1070_v61 }
 0x188   : > { %v1351_v4 = vpop.f32.mrf.mxu2  ;;  %v717_v63 = vpop.f32.mrf.mxu0 }
 0x189   : > { %v1352_v5 = vadd.f32 %v2832_v23, %v1351_v4  ;;  %v1036_v55 = vpop.f32.mrf.mxu1  ;;  %v1669_v58 = vpop.f32.mrf.mxu3  ;;  %v718_v1 = vadd.f32 %v2799_v8, %v717_v63 }
 0x18a   : > { %v1037_v2 = vadd.f32 %v2805_v0, %v1036_v55  ;;  %v1670_v6 = vadd.f32 %v2840_v21, %v1669_v58 }
 0x18b   : > { %v1388_v3 = vpack.c.bf16 %v1352_v5, %v1352_v5  ;;  %v752_v7 = vpack.c.bf16 %v718_v1, %v718_v1 }
 0x18c   : > { %v1071_v12 = vpack.c.bf16 %v1037_v2, %v1037_v2  ;;  %1706 = vst.msk [vmem:[%s2446_s19 + $0xe8] sm:$0xff] %vm584_vm0, %v1670_v6 }
 0x18d   : > { %1420 = vst.msk [vmem:[%s2436_s15 + $0x74] sm:$0xf] %vm754_vm1, %v1388_v3 }
 0x18e   : > { %785 = vst.msk [vmem:[%s2399_s13 + $0x78] sm:$0xf] %vm754_vm1, %v752_v7 }
 0x18f   : > { %1103 = vst.msk [vmem:[%s2405_s28 + $0x78] sm:$0xf] %vm754_vm1, %v1071_v12 }
 0x190   : > { %v1354_v9 = vpop.f32.mrf.mxu2  ;;  %v719_v11 = vpop.f32.mrf.mxu0 }
 0x191   : > { %v1355_v10 = vadd.f32 %v2832_v23, %v1354_v9  ;;  %v1038_v14 = vpop.f32.mrf.mxu1  ;;  %v1672_v15 = vpop.f32.mrf.mxu3  ;;  %v720_v13 = vadd.f32 %v2799_v8, %v719_v11 }
 0x192   : > { %v1039_v16 = vadd.f32 %v2805_v0, %v1038_v14  ;;  %v1673_v18 = vadd.f32 %v2840_v21, %v1672_v15 }
 0x193   : > { %v1389_v19 = vpack.c.bf16 %v1355_v10, %v1355_v10  ;;  %v753_v22 = vpack.c.bf16 %v720_v13, %v720_v13 }
 0x194   : > { %v1072_v28 = vpack.c.bf16 %v1039_v16, %v1039_v16  ;;  %1707 = vst.msk [vmem:[%s2446_s19 + $0xf0] sm:$0xff] %vm584_vm0, %v1673_v18 }
 0x195   : > { %1421 = vst.msk [vmem:[%s2436_s15 + $0x78] sm:$0xf] %vm754_vm1, %v1389_v19 }
 0x196   : > { %786 = vst.msk [vmem:[%s2399_s13 + $0x7c] sm:$0xf] %vm754_vm1, %v753_v22 }
 0x197   : > { %1104 = vst.msk [vmem:[%s2405_s28 + $0x7c] sm:$0xf] %vm754_vm1, %v1072_v28 }
 0x198   : > { %v1356_v29 = vpop.f32.mrf.mxu2 }
 0x199   : > { %v1357_v24 = vadd.f32 %v2832_v23, %v1356_v29  ;;  %v1674_v8 = vpop.f32.mrf.mxu3 }
 0x19a   : > { %v1675_v0 = vadd.f32 %v2840_v21, %v1674_v8 }
 0x19b   : > { %v1390_v25 = vpack.c.bf16 %v1357_v24, %v1357_v24 }
 0x19c   : > { %1708 = vst.msk [vmem:[%s2446_s19 + $0xf8] sm:$0xff] %vm584_vm0, %v1675_v0 }
 0x19d   : > { %1422 = vst.msk [vmem:[%s2436_s15 + $0x7c] sm:$0xf] %vm754_vm1, %v1390_v25 }
 0x19e PF: > { %s19_s27 = sadd.s32 1, %s2096_s27  }
 0x19f   : > { %p16_p4 = scmp.ge.s32.totalorder %s19_s27, 5  }
 0x1a1   :  { %18 = sbr.rel (!%p16_p4) target bundleno = 1 (0x1), region = 112 }

// kernel: tpu_custom_call.1
= control target key start
LH: loop header
LB: loop body
LE: loop exit
PB: predicated region body
PF: predicated region fallthrough
CT: control target
= control target key end

     0   :  { %s2143_s27 = smov 0   ;;  %s2980_s0 = inlined_call_operand.vmem [shape: f32[768,64], index: 0, kind: input, shape index: {}]   ;;  %s2981_s1 = inlined_call_operand.vmem [shape: f32[768,64], index: 1, kind: input, shape index: {}]   ;;  %s2982_s2 = inlined_call_operand.vmem [shape: f32[4,64], index: 2, kind: input, shape index: {}]   ;;  %s2983_s3 = inlined_call_operand.vmem [shape: bf16[4,64,64], index: 3, kind: input, shape index: {}]   ;;  %s2984_s4 = inlined_call_operand.vmem [shape: f32[4,64], index: 4, kind: input, shape index: {}]   ;;  %s2985_s5 = inlined_call_operand.vmem [shape: bf16[768,64], index: 5, kind: output, shape index: {0}]   ;;  %s2986_s6 = inlined_call_operand.vmem [shape: bf16[768,64], index: 6, kind: output, shape index: {1}]   ;;  %s2987_s7 = inlined_call_operand.vmem [shape: bf16[768,64], index: 7, kind: output, shape index: {2}]   ;;  %s2988_s8 = inlined_call_operand.vmem [shape: f32[768,64], index: 8, kind: output, shape index: {3}]  }
   0x1 LB: > { %s1879_s28 = sadd.s32 4294967295, %s2096_s27   ;;  %p1883_p0 = scmp.ge.s32.totalorder %s2096_s27, 1  ;;  %s2096_s27 = sphi %s2143_s27, %s19_s27  }
   0x2   : > { %p281_p1 = scmp.lt.s32.totalorder %s2096_s27, 4 }
   0x4   : > { %p282_p2 = pnand %p1883_p0, %p281_p1 }
   0x5   : > { %s1884_s13 = sshll.u32 (!%p282_p2), %s1879_s28, 5 }
   0x6   : > { %285 = sbr.rel (%p282_p2) target bundleno = 414 (0x19e), region = 40  ;;  %p336_p3 = scmp.lt.s32.totalorder (!%p282_p2), %s1884_s13, 95 }
   0xb   : > { %v2053_v0 = vld [vmem:[%s2983_s3 + $0x18] sm:$0xff]  ;;  %v2052_v4 = vld [vmem:[%s2983_s3 + $0x10] sm:$0xff]  ;;  %s2990_s13 = smov (!%p336_p3, %s1884_s13), 95  ;;  %v2051_v8 = vld [vmem:[%s2983_s3 + $0x8] sm:$0xff]  ;;  %vm584_vm0 = vcmask 523264   ;;  %vm754_vm1 = vcmask 519168  }
   0xc   : > { %v2057_v1 = vld [vmem:[%s2983_s3 + $0x38] sm:$0xff]  ;;  %637 = vmatpush.bf16.msra.mxu0 %v2053_v0  ;;  %v2056_v5 = vld [vmem:[%s2983_s3 + $0x30] sm:$0xff]  ;;  %v2055_v9 = vld [vmem:[%s2983_s3 + $0x28] sm:$0xff]  ;;  %s2190_s11 = sshll.u32 %s2990_s13, 3  ;;  %s2387_s22 = sshll.u32 %s2990_s13, 2 }
   0xd   : > { %v2061_v2 = vld [vmem:[%s2983_s3 + $0x58] sm:$0xff]  ;;  %956 = vmatpush.bf16.msra.mxu1 %v2057_v1  ;;  %v2060_v6 = vld [vmem:[%s2983_s3 + $0x50] sm:$0xff]  ;;  %v2059_v10 = vld [vmem:[%s2983_s3 + $0x48] sm:$0xff]  ;;  %s2201_s17 = scalar_lea.vmem %s2980_s0, %s2190_s11  ;;  %s2207_s20 = scalar_lea.vmem %s2981_s1, %s2190_s11 }
   0xe   : > { %v2065_v3 = vld [vmem:[%s2983_s3 + $0x78] sm:$0xff]  ;;  %1274 = vmatpush.bf16.msra.mxu2 %v2061_v2  ;;  %v2064_v7 = vld [vmem:[%s2983_s3 + $0x70] sm:$0xff]  ;;  %v2063_v11 = vld [vmem:[%s2983_s3 + $0x68] sm:$0xff]  ;;  %s2399_s13 = scalar_lea.vmem %s2985_s5, %s2387_s22  ;;  %s2405_s28 = scalar_lea.vmem %s2986_s6, %s2387_s22 }
   0xf   : > { %1592 = vmatpush.bf16.msra.mxu3 %v2065_v3  ;;  %v2195_v12 = vld [vmem:[%s2982_s2] ss:$0 sm:$0xff]  ;;  %v2212_v13 = vld [vmem:[%s2982_s2 + $0x1] ss:$0 sm:$0xff]  ;;  %v373_v15 = vld [vmem:[%s2201_s17 + $0x8] sm:$0xff]  ;;  %s2436_s15 = scalar_lea.vmem %s2987_s7, %s2387_s22  ;;  %s2446_s19 = scalar_lea.vmem %s2988_s8, %s2190_s11 }
  0x10   : > { %638 = vmatpush.bf16.msra.mxu0 %v2052_v4  ;;  %v372_v14 = vld [vmem:[%s2201_s17] sm:$0xff]  ;;  %v405_v17 = vld [vmem:[%s2207_s20 + $0x8] sm:$0xff]  ;;  %v374_v40 = vld [vmem:[%s2201_s17 + $0x10] sm:$0xff] }
  0x11   : > { %957 = vmatpush.bf16.msra.mxu1 %v2056_v5  ;;  %v404_v16 = vld [vmem:[%s2207_s20] sm:$0xff]  ;;  %v437_v20 = vsub.f32 %v405_v17, %v373_v15  ;;  %v375_v42 = vld [vmem:[%s2201_s17 + $0x18] sm:$0xff]  ;;  %v406_v43 = vld [vmem:[%s2207_s20 + $0x10] sm:$0xff] }
  0x12   : > { %1275 = vmatpush.bf16.msra.mxu2 %v2060_v6  ;;  %v436_v18 = vsub.f32 %v404_v16, %v372_v14  ;;  %v2221_v19 = vld [vmem:[%s2982_s2 + $0x2] ss:$0 sm:$0xff]  ;;  %v2226_v21 = vld [vmem:[%s2982_s2 + $0x3] ss:$0 sm:$0xff]  ;;  %v407_v44 = vld [vmem:[%s2207_s20 + $0x18] sm:$0xff]  ;;  %v438_v49 = vsub.f32 %v406_v43, %v374_v40 }
  0x13   : > { %1593 = vmatpush.bf16.msra.mxu3 %v2064_v7  ;;  %v2050_v22 = vld [vmem:[%s2983_s3] sm:$0xff]  ;;  %v471_v29 = vmul.f32 %v2195_v12, %v437_v20  ;;  %v790_v30 = vmul.f32 %v2212_v13, %v437_v20  ;;  %v1108_v31 = vmul.f32 %v2221_v19, %v437_v20  ;;  %v1426_v39 = vmul.f32 %v2226_v21, %v437_v20 }
  0x14   : > { %639 = vmatpush.bf16.msra.mxu0 %v2051_v8  ;;  %v2054_v23 = vld [vmem:[%s2983_s3 + $0x20] sm:$0xff]  ;;  %v470_v24 = vmul.f32 %v2195_v12, %v436_v18  ;;  %v789_v25 = vmul.f32 %v2212_v13, %v436_v18  ;;  %v1107_v26 = vmul.f32 %v2221_v19, %v436_v18  ;;  %v1425_v35 = vmul.f32 %v2226_v21, %v436_v18  ;;  %v377_v8 = vld [vmem:[%s2201_s17 + $0x28] sm:$0xff] }
  0x15   : > { %958 = vmatpush.bf16.msra.mxu1 %v2055_v9  ;;  %v2058_v27 = vld [vmem:[%s2983_s3 + $0x40] sm:$0xff]  ;;  %v503_v36 = vadd.f32 %v471_v29, %v373_v15  ;;  %v822_v37 = vadd.f32 %v790_v30, %v373_v15  ;;  %v1140_v38 = vadd.f32 %v1108_v31, %v373_v15  ;;  %v1458_v48 = vadd.f32 %v1426_v39, %v373_v15  ;;  %v410_v39 = vld [vmem:[%s2207_s20 + $0x30] sm:$0xff] }
  0x16   : > { %1276 = vmatpush.bf16.msra.mxu2 %v2059_v10  ;;  %v2062_v28 = vld [vmem:[%s2983_s3 + $0x60] sm:$0xff]  ;;  %v502_v32 = vadd.f32 %v470_v24, %v372_v14  ;;  %v821_v33 = vadd.f32 %v789_v25, %v372_v14  ;;  %v1139_v34 = vadd.f32 %v1107_v26, %v372_v14  ;;  %v1457_v41 = vadd.f32 %v1425_v35, %v372_v14  ;;  %v409_v10 = vld [vmem:[%s2207_s20 + $0x28] sm:$0xff] }
  0x17   : > { %1594 = vmatpush.bf16.msra.mxu3 %v2063_v11  ;;  %v439_v50 = vsub.f32 %v407_v44, %v375_v42  ;;  %v472_v52 = vmul.f32 %v2195_v12, %v438_v49  ;;  %v791_v54 = vmul.f32 %v2212_v13, %v438_v49  ;;  %v1109_v56 = vmul.f32 %v2221_v19, %v438_v49  ;;  %v376_v6 = vld [vmem:[%s2201_s17 + $0x20] sm:$0xff] }
  0x18   : > { %640 = vmatpush.bf16.msra.mxu0 %v2050_v22  ;;  %v534_v45 = vpack.c.bf16 %v503_v36, %v502_v32  ;;  %v853_v46 = vpack.c.bf16 %v822_v37, %v821_v33  ;;  %v1171_v47 = vpack.c.bf16 %v1140_v38, %v1139_v34  ;;  %v1489_v51 = vpack.c.bf16 %v1458_v48, %v1457_v41  ;;  %v408_v9 = vld [vmem:[%s2207_s20 + $0x20] sm:$0xff]  ;;  %v378_v36 = vld [vmem:[%s2201_s17 + $0x30] sm:$0xff]  ;;  %v379_v38 = vld [vmem:[%s2201_s17 + $0x38] sm:$0xff] }
  0x19   : > { %959 = vmatpush.bf16.msra.mxu1 %v2054_v23  ;;  %v473_v53 = vmul.f32 %v2195_v12, %v439_v50  ;;  %v792_v55 = vmul.f32 %v2212_v13, %v439_v50  ;;  %v1110_v57 = vmul.f32 %v2221_v19, %v439_v50  ;;  %v1427_v58 = vmul.f32 %v2226_v21, %v438_v49 }
  0x1a   : > { %1277 = vmatpush.bf16.msra.mxu2 %v2058_v27  ;;  %v1428_v59 = vmul.f32 %v2226_v21, %v439_v50  ;;  %v504_v60 = vadd.f32 %v472_v52, %v374_v40  ;;  %v823_v62 = vadd.f32 %v791_v54, %v374_v40  ;;  %v1141_v0 = vadd.f32 %v1109_v56, %v374_v40 }
  0x1b   : > { %1595 = vmatpush.bf16.msra.mxu3 %v2062_v28  ;;  %1912 = vmatmul.msk.bf16.vlgmr.msra.gmra.mxu0 %vm584_vm0, %v534_v45  ;;  %v505_v61 = vadd.f32 %v473_v53, %v375_v42  ;;  %v824_v63 = vadd.f32 %v792_v55, %v375_v42  ;;  %v1142_v1 = vadd.f32 %v1110_v57, %v375_v42 }
  0x1c   : > { %1952 = vmatmul.msk.bf16.vlgmr.msra.gmra.mxu1 %vm584_vm0, %v853_v46  ;;  %v1459_v2 = vadd.f32 %v1427_v58, %v374_v40  ;;  %v1460_v3 = vadd.f32 %v1428_v59, %v375_v42  ;;  %v440_v14 = vsub.f32 %v408_v9, %v376_v6  ;;  %v441_v15 = vsub.f32 %v409_v10, %v377_v8  ;;  %v411_v40 = vld [vmem:[%s2207_s20 + $0x38] sm:$0xff] }
  0x1d   : > { %1992 = vmatmul.msk.bf16.vlgmr.msra.gmra.mxu2 %vm584_vm0, %v1171_v47  ;;  %v535_v4 = vpack.c.bf16 %v505_v61, %v504_v60  ;;  %v854_v5 = vpack.c.bf16 %v824_v63, %v823_v62  ;;  %v1172_v7 = vpack.c.bf16 %v1142_v1, %v1141_v0  ;;  %v442_v42 = vsub.f32 %v410_v39, %v378_v36  ;;  %v380_v62 = vld [vmem:[%s2201_s17 + $0x40] sm:$0xff]  ;;  %v381_v0 = vld [vmem:[%s2201_s17 + $0x48] sm:$0xff] }
  0x1e   : > { %2032 = vmatmul.msk.bf16.vlgmr.msra.gmra.mxu3 %vm584_vm0, %v1489_v51  ;;  %v1490_v11 = vpack.c.bf16 %v1460_v3, %v1459_v2  ;;  %v474_v16 = vmul.f32 %v2195_v12, %v440_v14  ;;  %v475_v17 = vmul.f32 %v2195_v12, %v441_v15  ;;  %v793_v18 = vmul.f32 %v2212_v13, %v440_v14  ;;  %v412_v1 = vld [vmem:[%s2207_s20 + $0x40] sm:$0xff]  ;;  %v413_v2 = vld [vmem:[%s2207_s20 + $0x48] sm:$0xff] }
  0x1f   : > { %v794_v20 = vmul.f32 %v2212_v13, %v441_v15  ;;  %v1111_v22 = vmul.f32 %v2221_v19, %v440_v14  ;;  %v1112_v23 = vmul.f32 %v2221_v19, %v441_v15  ;;  %v1429_v24 = vmul.f32 %v2226_v21, %v440_v14 }
  0x20   : > { %v1430_v25 = vmul.f32 %v2226_v21, %v441_v15  ;;  %v506_v26 = vadd.f32 %v474_v16, %v376_v6  ;;  %v507_v27 = vadd.f32 %v475_v17, %v377_v8  ;;  %v825_v28 = vadd.f32 %v793_v18, %v376_v6 }
  0x21   : > { %v826_v29 = vadd.f32 %v794_v20, %v377_v8  ;;  %v1143_v30 = vadd.f32 %v1111_v22, %v376_v6  ;;  %v1144_v31 = vadd.f32 %v1112_v23, %v377_v8  ;;  %v1461_v32 = vadd.f32 %v1429_v24, %v376_v6 }
  0x22   : > { %v1462_v33 = vadd.f32 %v1430_v25, %v377_v8  ;;  %v536_v34 = vpack.c.bf16 %v507_v27, %v506_v26  ;;  %v443_v43 = vsub.f32 %v411_v40, %v379_v38  ;;  %v476_v44 = vmul.f32 %v2195_v12, %v442_v42 }
  0x23   : > { %v855_v35 = vpack.c.bf16 %v826_v29, %v825_v28  ;;  %v1173_v37 = vpack.c.bf16 %v1144_v31, %v1143_v30  ;;  %v795_v46 = vmul.f32 %v2212_v13, %v442_v42  ;;  %v1113_v48 = vmul.f32 %v2221_v19, %v442_v42  ;;  %v382_v28 = vld [vmem:[%s2201_s17 + $0x50] sm:$0xff]  ;;  %v383_v30 = vld [vmem:[%s2201_s17 + $0x58] sm:$0xff] }
  0x24   : > { %v1491_v41 = vpack.c.bf16 %v1462_v33, %v1461_v32  ;;  %v477_v45 = vmul.f32 %v2195_v12, %v443_v43  ;;  %v796_v47 = vmul.f32 %v2212_v13, %v443_v43  ;;  %v1114_v49 = vmul.f32 %v2221_v19, %v443_v43  ;;  %v414_v31 = vld [vmem:[%s2207_s20 + $0x50] sm:$0xff]  ;;  %v415_v32 = vld [vmem:[%s2207_s20 + $0x58] sm:$0xff] }
  0x25   : > { %v1431_v50 = vmul.f32 %v2226_v21, %v442_v42  ;;  %v1432_v51 = vmul.f32 %v2226_v21, %v443_v43  ;;  %v508_v52 = vadd.f32 %v476_v44, %v378_v36  ;;  %v827_v54 = vadd.f32 %v795_v46, %v378_v36 }
  0x26   : > { %v509_v53 = vadd.f32 %v477_v45, %v379_v38  ;;  %v828_v55 = vadd.f32 %v796_v47, %v379_v38  ;;  %v1145_v56 = vadd.f32 %v1113_v48, %v378_v36  ;;  %v1146_v57 = vadd.f32 %v1114_v49, %v379_v38 }
  0x27   : > { %v1463_v58 = vadd.f32 %v1431_v50, %v378_v36  ;;  %v1464_v59 = vadd.f32 %v1432_v51, %v379_v38 }
  0x28   : > { %v537_v60 = vpack.c.bf16 %v509_v53, %v508_v52  ;;  %v856_v61 = vpack.c.bf16 %v828_v55, %v827_v54  ;;  %v1174_v63 = vpack.c.bf16 %v1146_v57, %v1145_v56  ;;  %v384_v54 = vld [vmem:[%s2201_s17 + $0x60] sm:$0xff]  ;;  %v385_v56 = vld [vmem:[%s2201_s17 + $0x68] sm:$0xff] }
  0x29   : > { %v1492_v3 = vpack.c.bf16 %v1464_v59, %v1463_v58  ;;  %v416_v57 = vld [vmem:[%s2207_s20 + $0x60] sm:$0xff]  ;;  %v417_v58 = vld [vmem:[%s2207_s20 + $0x68] sm:$0xff] }
  0x2b   : > { %1913 = vmatmul.msk.bf16.gmra.mxu0 %vm584_vm0, %v535_v4  ;;  %v444_v4 = vsub.f32 %v412_v1, %v380_v62 }
  0x2c   : > { %1953 = vmatmul.msk.bf16.gmra.mxu1 %vm584_vm0, %v854_v5  ;;  %v445_v5 = vsub.f32 %v413_v2, %v381_v0 }
  0x2d   : > { %1993 = vmatmul.msk.bf16.gmra.mxu2 %vm584_vm0, %v1172_v7  ;;  %v478_v6 = vmul.f32 %v2195_v12, %v444_v4  ;;  %v797_v8 = vmul.f32 %v2212_v13, %v444_v4  ;;  %v1115_v10 = vmul.f32 %v2221_v19, %v444_v4  ;;  %v1433_v14 = vmul.f32 %v2226_v21, %v444_v4 }
  0x2e   : > { %2033 = vmatmul.msk.bf16.gmra.mxu3 %vm584_vm0, %v1490_v11  ;;  %v479_v7 = vmul.f32 %v2195_v12, %v445_v5  ;;  %v798_v9 = vmul.f32 %v2212_v13, %v445_v5  ;;  %v1116_v11 = vmul.f32 %v2221_v19, %v445_v5  ;;  %v1434_v15 = vmul.f32 %v2226_v21, %v445_v5 }
  0x2f   : > { %v510_v16 = vadd.f32 %v478_v6, %v380_v62  ;;  %v829_v18 = vadd.f32 %v797_v8, %v380_v62  ;;  %v1147_v22 = vadd.f32 %v1115_v10, %v380_v62  ;;  %v1465_v24 = vadd.f32 %v1433_v14, %v380_v62 }
  0x30   : > { %v511_v17 = vadd.f32 %v479_v7, %v381_v0  ;;  %v830_v20 = vadd.f32 %v798_v9, %v381_v0  ;;  %v1148_v23 = vadd.f32 %v1116_v11, %v381_v0  ;;  %v1466_v25 = vadd.f32 %v1434_v15, %v381_v0 }
  0x32   : > { %v538_v26 = vpack.c.bf16 %v511_v17, %v510_v16  ;;  %v857_v27 = vpack.c.bf16 %v830_v20, %v829_v18  ;;  %v1175_v29 = vpack.c.bf16 %v1148_v23, %v1147_v22  ;;  %v1493_v33 = vpack.c.bf16 %v1466_v25, %v1465_v24  ;;  %v386_v18 = vld [vmem:[%s2201_s17 + $0x70] sm:$0xff]  ;;  %v387_v22 = vld [vmem:[%s2201_s17 + $0x78] sm:$0xff] }
  0x33   : > { %v418_v23 = vld [vmem:[%s2207_s20 + $0x70] sm:$0xff]  ;;  %v419_v24 = vld [vmem:[%s2207_s20 + $0x78] sm:$0xff] }
  0x3b   : > { %1914 = vmatmul.msk.bf16.gmra.mxu0 %vm584_vm0, %v536_v34  ;;  %v446_v34 = vsub.f32 %v414_v31, %v382_v28 }
  0x3c   : > { %1954 = vmatmul.msk.bf16.gmra.mxu1 %vm584_vm0, %v855_v35  ;;  %v447_v35 = vsub.f32 %v415_v32, %v383_v30 }
  0x3d   : > { %1994 = vmatmul.msk.bf16.gmra.mxu2 %vm584_vm0, %v1173_v37  ;;  %v480_v36 = vmul.f32 %v2195_v12, %v446_v34  ;;  %v799_v38 = vmul.f32 %v2212_v13, %v446_v34  ;;  %v1117_v40 = vmul.f32 %v2221_v19, %v446_v34  ;;  %v1435_v42 = vmul.f32 %v2226_v21, %v446_v34 }
  0x3e   : > { %2034 = vmatmul.msk.bf16.gmra.mxu3 %vm584_vm0, %v1491_v41  ;;  %v481_v37 = vmul.f32 %v2195_v12, %v447_v35  ;;  %v800_v39 = vmul.f32 %v2212_v13, %v447_v35  ;;  %v1118_v41 = vmul.f32 %v2221_v19, %v447_v35  ;;  %v1436_v43 = vmul.f32 %v2226_v21, %v447_v35 }
  0x3f   : > { %v512_v44 = vadd.f32 %v480_v36, %v382_v28  ;;  %v831_v46 = vadd.f32 %v799_v38, %v382_v28  ;;  %v1149_v48 = vadd.f32 %v1117_v40, %v382_v28  ;;  %v1467_v50 = vadd.f32 %v1435_v42, %v382_v28 }
  0x40   : > { %v513_v45 = vadd.f32 %v481_v37, %v383_v30  ;;  %v832_v47 = vadd.f32 %v800_v39, %v383_v30  ;;  %v1150_v49 = vadd.f32 %v1118_v41, %v383_v30  ;;  %v1468_v51 = vadd.f32 %v1436_v43, %v383_v30 }
  0x42   : > { %v539_v52 = vpack.c.bf16 %v513_v45, %v512_v44  ;;  %v858_v53 = vpack.c.bf16 %v832_v47, %v831_v46  ;;  %v1176_v55 = vpack.c.bf16 %v1150_v49, %v1149_v48  ;;  %v1494_v59 = vpack.c.bf16 %v1468_v51, %v1467_v50  ;;  %v388_v46 = vld [vmem:[%s2201_s17 + $0x80] sm:$0xff]  ;;  %v389_v48 = vld [vmem:[%s2201_s17 + $0x88] sm:$0xff] }
  0x43   : > { %v420_v49 = vld [vmem:[%s2207_s20 + $0x80] sm:$0xff]  ;;  %v421_v50 = vld [vmem:[%s2207_s20 + $0x88] sm:$0xff] }
  0x4b   : > { %1915 = vmatmul.msk.bf16.gmra.mxu0 %vm584_vm0, %v537_v60  ;;  %v448_v60 = vsub.f32 %v416_v57, %v384_v54 }
  0x4c   : > { %1955 = vmatmul.msk.bf16.gmra.mxu1 %vm584_vm0, %v856_v61  ;;  %v449_v61 = vsub.f32 %v417_v58, %v385_v56 }
  0x4d   : > { %1995 = vmatmul.msk.bf16.gmra.mxu2 %vm584_vm0, %v1174_v63  ;;  %v482_v62 = vmul.f32 %v2195_v12, %v448_v60  ;;  %v801_v0 = vmul.f32 %v2212_v13, %v448_v60  ;;  %v1119_v2 = vmul.f32 %v2221_v19, %v448_v60  ;;  %v1437_v4 = vmul.f32 %v2226_v21, %v448_v60 }
  0x4e   : > { %2035 = vmatmul.msk.bf16.gmra.mxu3 %vm584_vm0, %v1492_v3  ;;  %v483_v63 = vmul.f32 %v2195_v12, %v449_v61  ;;  %v802_v1 = vmul.f32 %v2212_v13, %v449_v61  ;;  %v1120_v3 = vmul.f32 %v2221_v19, %v449_v61  ;;  %v1438_v5 = vmul.f32 %v2226_v21, %v449_v61 }
  0x4f   : > { %v514_v6 = vadd.f32 %v482_v62, %v384_v54  ;;  %v833_v8 = vadd.f32 %v801_v0, %v384_v54  ;;  %v1151_v10 = vadd.f32 %v1119_v2, %v384_v54  ;;  %v1469_v14 = vadd.f32 %v1437_v4, %v384_v54  ;;  %v2379_v4 = vld [vmem:[%s2984_s4] ss:$0 sm:$0xff] }
  0x50   : > { %v515_v7 = vadd.f32 %v483_v63, %v385_v56  ;;  %v834_v9 = vadd.f32 %v802_v1, %v385_v56  ;;  %v1152_v11 = vadd.f32 %v1120_v3, %v385_v56  ;;  %v1470_v15 = vadd.f32 %v1438_v5, %v385_v56  ;;  %v2384_v5 = vld [vmem:[%s2984_s4 + $0x1] ss:$0 sm:$0xff] }
  0x52   : > { %v540_v16 = vpack.c.bf16 %v515_v7, %v514_v6  ;;  %v859_v17 = vpack.c.bf16 %v834_v9, %v833_v8  ;;  %v1177_v20 = vpack.c.bf16 %v1152_v11, %v1151_v10  ;;  %v1495_v25 = vpack.c.bf16 %v1470_v15, %v1469_v14  ;;  %v390_v10 = vld [vmem:[%s2201_s17 + $0x90] sm:$0xff] }
  0x53   : > { %v422_v11 = vld [vmem:[%s2207_s20 + $0x90] sm:$0xff] }
  0x5b   : > { %1916 = vmatmul.msk.bf16.gmra.mxu0 %vm584_vm0, %v538_v26  ;;  %v450_v26 = vsub.f32 %v418_v23, %v386_v18 }
  0x5c   : > { %1956 = vmatmul.msk.bf16.gmra.mxu1 %vm584_vm0, %v857_v27  ;;  %v451_v27 = vsub.f32 %v419_v24, %v387_v22  ;;  %v454_v24 = vsub.f32 %v422_v11, %v390_v10 }
  0x5d   : > { %1996 = vmatmul.msk.bf16.gmra.mxu2 %vm584_vm0, %v1175_v29  ;;  %v484_v28 = vmul.f32 %v2195_v12, %v450_v26  ;;  %v803_v30 = vmul.f32 %v2212_v13, %v450_v26  ;;  %v1121_v32 = vmul.f32 %v2221_v19, %v450_v26  ;;  %v1439_v34 = vmul.f32 %v2226_v21, %v450_v26 }
  0x5e   : > { %2036 = vmatmul.msk.bf16.gmra.mxu3 %vm584_vm0, %v1493_v33  ;;  %v485_v29 = vmul.f32 %v2195_v12, %v451_v27  ;;  %v804_v31 = vmul.f32 %v2212_v13, %v451_v27  ;;  %v1122_v33 = vmul.f32 %v2221_v19, %v451_v27  ;;  %v1440_v35 = vmul.f32 %v2226_v21, %v451_v27 }
  0x5f   : > { %v516_v36 = vadd.f32 %v484_v28, %v386_v18  ;;  %v835_v38 = vadd.f32 %v803_v30, %v386_v18  ;;  %v1153_v40 = vadd.f32 %v1121_v32, %v386_v18  ;;  %v1471_v42 = vadd.f32 %v1439_v34, %v386_v18  ;;  %v423_v18 = vld [vmem:[%s2207_s20 + $0x98] sm:$0xff]  ;;  %v2413_v28 = vld [vmem:[%s2984_s4 + $0x2] ss:$0 sm:$0xff] }
  0x60   : > { %v517_v37 = vadd.f32 %v485_v29, %v387_v22  ;;  %v836_v39 = vadd.f32 %v804_v31, %v387_v22  ;;  %v1154_v41 = vadd.f32 %v1122_v33, %v387_v22  ;;  %v1472_v43 = vadd.f32 %v1440_v35, %v387_v22  ;;  %v2423_v29 = vld [vmem:[%s2984_s4 + $0x3] ss:$0 sm:$0xff] }
  0x61   : > { %v488_v30 = vmul.f32 %v2195_v12, %v454_v24  ;;  %v807_v31 = vmul.f32 %v2212_v13, %v454_v24 }
  0x62   : > { %v541_v44 = vpack.c.bf16 %v517_v37, %v516_v36  ;;  %v860_v45 = vpack.c.bf16 %v836_v39, %v835_v38  ;;  %v1178_v47 = vpack.c.bf16 %v1154_v41, %v1153_v40  ;;  %v1496_v51 = vpack.c.bf16 %v1472_v43, %v1471_v42 }
  0x63   : > { %v1125_v38 = vmul.f32 %v2221_v19, %v454_v24  ;;  %v1443_v43 = vmul.f32 %v2226_v21, %v454_v24 }
  0x6b   : > { %1917 = vmatmul.msk.bf16.gmra.mxu0 %vm584_vm0, %v539_v52  ;;  %v452_v52 = vsub.f32 %v420_v49, %v388_v46 }
  0x6c   : > { %1957 = vmatmul.msk.bf16.gmra.mxu1 %vm584_vm0, %v858_v53  ;;  %v453_v53 = vsub.f32 %v421_v50, %v389_v48 }
  0x6d   : > { %1997 = vmatmul.msk.bf16.gmra.mxu2 %vm584_vm0, %v1176_v55  ;;  %v486_v54 = vmul.f32 %v2195_v12, %v452_v52  ;;  %v805_v56 = vmul.f32 %v2212_v13, %v452_v52  ;;  %v1123_v58 = vmul.f32 %v2221_v19, %v452_v52  ;;  %v1441_v60 = vmul.f32 %v2226_v21, %v452_v52 }
  0x6e   : > { %2037 = vmatmul.msk.bf16.gmra.mxu3 %vm584_vm0, %v1494_v59  ;;  %v487_v55 = vmul.f32 %v2195_v12, %v453_v53  ;;  %v806_v57 = vmul.f32 %v2212_v13, %v453_v53  ;;  %v1124_v59 = vmul.f32 %v2221_v19, %v453_v53  ;;  %v1442_v61 = vmul.f32 %v2226_v21, %v453_v53 }
  0x6f   : > { %v518_v62 = vadd.f32 %v486_v54, %v388_v46  ;;  %v837_v0 = vadd.f32 %v805_v56, %v388_v46  ;;  %v1155_v2 = vadd.f32 %v1123_v58, %v388_v46  ;;  %v1473_v6 = vadd.f32 %v1441_v60, %v388_v46  ;;  %v393_v58 = vld [vmem:[%s2201_s17 + $0xa8] sm:$0xff] }
  0x70   : > { %v519_v63 = vadd.f32 %v487_v55, %v389_v48  ;;  %v838_v1 = vadd.f32 %v806_v57, %v389_v48  ;;  %v1156_v3 = vadd.f32 %v1124_v59, %v389_v48  ;;  %v1474_v7 = vadd.f32 %v1442_v61, %v389_v48  ;;  %v392_v55 = vld [vmem:[%s2201_s17 + $0xa0] sm:$0xff]  ;;  %v425_v60 = vld [vmem:[%s2207_s20 + $0xa8] sm:$0xff] }
  0x71   : > { %v839_v48 = vadd.f32 %v807_v31, %v390_v10  ;;  %v1157_v53 = vadd.f32 %v1125_v38, %v390_v10  ;;  %v1475_v56 = vadd.f32 %v1443_v43, %v390_v10  ;;  %v424_v59 = vld [vmem:[%s2207_s20 + $0xa0] sm:$0xff] }
  0x72   : > { %v542_v8 = vpack.c.bf16 %v519_v63, %v518_v62  ;;  %v861_v9 = vpack.c.bf16 %v838_v1, %v837_v0  ;;  %v1497_v23 = vpack.c.bf16 %v1474_v7, %v1473_v6 }
  0x7b   : > { %1918 = vmatmul.msk.bf16.gmra.mxu0 %vm584_vm0, %v540_v16  ;;  %v1179_v16 = vpack.c.bf16 %v1156_v3, %v1155_v2 }
  0x7c   : > { %1958 = vmatmul.msk.bf16.gmra.mxu1 %vm584_vm0, %v859_v17  ;;  %v391_v17 = vld [vmem:[%s2201_s17 + $0x98] sm:$0xff] }
  0x7d   : > { %1998 = vmatmul.msk.bf16.gmra.mxu2 %vm584_vm0, %v1177_v20  ;;  %v455_v27 = vsub.f32 %v423_v18, %v391_v17 }
  0x7e   : > { %2038 = vmatmul.msk.bf16.gmra.mxu3 %vm584_vm0, %v1495_v25 }
  0x7f   : > { %v489_v33 = vmul.f32 %v2195_v12, %v455_v27  ;;  %v808_v34 = vmul.f32 %v2212_v13, %v455_v27  ;;  %v1126_v39 = vmul.f32 %v2221_v19, %v455_v27 }
  0x81   : > { %v840_v52 = vadd.f32 %v808_v34, %v391_v17  ;;  %v1158_v54 = vadd.f32 %v1126_v39, %v391_v17 }
  0x83   : > { %v862_v63 = vpack.c.bf16 %v840_v52, %v839_v48  ;;  %v1180_v3 = vpack.c.bf16 %v1158_v54, %v1157_v53  ;;  %v427_v52 = vld [vmem:[%s2207_s20 + $0xb8] sm:$0xff] }
  0x8b   : > { %1919 = vmatmul.msk.bf16.gmra.mxu0 %vm584_vm0, %v541_v44  ;;  %v1444_v44 = vmul.f32 %v2226_v21, %v455_v27 }
  0x8c   : > { %1959 = vmatmul.msk.bf16.gmra.mxu1 %vm584_vm0, %v860_v45 }
  0x8d   : > { %1999 = vmatmul.msk.bf16.gmra.mxu2 %vm584_vm0, %v1178_v47  ;;  %v520_v47 = vadd.f32 %v488_v30, %v390_v10  ;;  %v1476_v57 = vadd.f32 %v1444_v44, %v391_v17  ;;  %v457_v10 = vsub.f32 %v425_v60, %v393_v58 }
  0x8e   : > { %2039 = vmatmul.msk.bf16.gmra.mxu3 %vm584_vm0, %v1496_v51  ;;  %v521_v51 = vadd.f32 %v489_v33, %v391_v17 }
  0x8f   : > { %v810_v24 = vmul.f32 %v2212_v13, %v457_v10  ;;  %v1128_v31 = vmul.f32 %v2221_v19, %v457_v10 }
  0x90   : > { %v543_v62 = vpack.c.bf16 %v521_v51, %v520_v47  ;;  %v394_v47 = vld [vmem:[%s2201_s17 + $0xb0] sm:$0xff] }
  0x91   : > { %v842_v44 = vadd.f32 %v810_v24, %v393_v58  ;;  %v426_v51 = vld [vmem:[%s2207_s20 + $0xb0] sm:$0xff] }
  0x98   : > { %v642_v14 = vpop.f32.mrf.mxu0 }
  0x99   : > { %v961_v15 = vpop.f32.mrf.mxu1  ;;  %v643_v20 = vadd.f32 %v2379_v4, %v642_v14 }
  0x9a   : > { %v962_v22 = vadd.f32 %v2384_v5, %v961_v15  ;;  %v1498_v15 = vpack.c.bf16 %v1476_v57, %v1475_v56 }
  0x9b   : > { %v722_v25 = vpack.c.bf16 %v643_v20, %v643_v20  ;;  %1920 = vmatmul.msk.bf16.gmra.mxu0 %vm584_vm0, %v542_v8  ;;  %v491_v20 = vmul.f32 %v2195_v12, %v457_v10 }
  0x9c   : > { %v1041_v26 = vpack.c.bf16 %v962_v22, %v962_v22  ;;  %1960 = vmatmul.msk.bf16.gmra.mxu1 %vm584_vm0, %v861_v9  ;;  %v456_v9 = vsub.f32 %v424_v59, %v392_v55 }
  0x9d   : > { %2000 = vmatmul.msk.bf16.gmra.mxu2 %vm584_vm0, %v1179_v16  ;;  %755 = vst.msk [vmem:[%s2399_s13] sm:$0xf] %vm754_vm1, %v722_v25 }
  0x9e   : > { %1073 = vst.msk [vmem:[%s2405_s28] sm:$0xf] %vm754_vm1, %v1041_v26  ;;  %2040 = vmatmul.msk.bf16.gmra.mxu3 %vm584_vm0, %v1497_v23  ;;  %v490_v18 = vmul.f32 %v2195_v12, %v456_v9  ;;  %v809_v23 = vmul.f32 %v2212_v13, %v456_v9  ;;  %v1127_v30 = vmul.f32 %v2221_v19, %v456_v9 }
  0x9f   : > { %v1445_v39 = vmul.f32 %v2226_v21, %v456_v9 }
  0xa0   : > { %v1279_v32 = vpop.f32.mrf.mxu2  ;;  %v644_v36 = vpop.f32.mrf.mxu0  ;;  %v841_v43 = vadd.f32 %v809_v23, %v392_v55 }
  0xa1   : > { %v1280_v35 = vadd.f32 %v2413_v28, %v1279_v32  ;;  %v963_v37 = vpop.f32.mrf.mxu1  ;;  %v1597_v40 = vpop.f32.mrf.mxu3  ;;  %v645_v41 = vadd.f32 %v2379_v4, %v644_v36  ;;  %v523_v36 = vadd.f32 %v491_v20, %v393_v58  ;;  %v1477_v48 = vadd.f32 %v1445_v39, %v392_v55  ;;  %v396_v39 = vld [vmem:[%s2201_s17 + $0xc0] sm:$0xff] }
  0xa2   : > { %v964_v42 = vadd.f32 %v2384_v5, %v963_v37  ;;  %v1598_v46 = vadd.f32 %v2423_v29, %v1597_v40  ;;  %v1446_v40 = vmul.f32 %v2226_v21, %v457_v10  ;;  %v863_v56 = vpack.c.bf16 %v842_v44, %v841_v43  ;;  %v428_v43 = vld [vmem:[%s2207_s20 + $0xc0] sm:$0xff]  ;;  %v429_v44 = vld [vmem:[%s2207_s20 + $0xc8] sm:$0xff] }
  0xa3   : > { %v1359_v45 = vpack.c.bf16 %v1280_v35, %v1280_v35  ;;  %v723_v49 = vpack.c.bf16 %v645_v41, %v645_v41  ;;  %v522_v35 = vadd.f32 %v490_v18, %v392_v55 }
  0xa4   : > { %v1042_v50 = vpack.c.bf16 %v964_v42, %v964_v42  ;;  %1677 = vst.msk [vmem:[%s2446_s19] sm:$0xff] %vm584_vm0, %v1598_v46  ;;  %v1160_v46 = vadd.f32 %v1128_v31, %v393_v58 }
  0xa5   : > { %1391 = vst.msk [vmem:[%s2436_s15] sm:$0xf] %vm754_vm1, %v1359_v45  ;;  %v1159_v45 = vadd.f32 %v1127_v30, %v392_v55  ;;  %v544_v54 = vpack.c.bf16 %v523_v36, %v522_v35 }
  0xa6   : > { %756 = vst.msk [vmem:[%s2399_s13 + $0x4] sm:$0xf] %vm754_vm1, %v723_v49  ;;  %v1478_v49 = vadd.f32 %v1446_v40, %v393_v58  ;;  %v458_v58 = vsub.f32 %v426_v51, %v394_v47 }
  0xa7   : > { %1074 = vst.msk [vmem:[%s2405_s28 + $0x4] sm:$0xf] %vm754_vm1, %v1042_v50  ;;  %v395_v50 = vld [vmem:[%s2201_s17 + $0xb8] sm:$0xff] }
  0xa8   : > { %v1281_v61 = vpop.f32.mrf.mxu2  ;;  %v647_v1 = vpop.f32.mrf.mxu0  ;;  %v1129_v18 = vmul.f32 %v2221_v19, %v458_v58  ;;  %v1447_v31 = vmul.f32 %v2226_v21, %v458_v58 }
  0xa9   : > { %v1282_v0 = vadd.f32 %v2413_v28, %v1281_v61  ;;  %v966_v2 = vpop.f32.mrf.mxu1  ;;  %v1599_v6 = vpop.f32.mrf.mxu3  ;;  %v648_v7 = vadd.f32 %v2379_v4, %v647_v1  ;;  %v1181_v61 = vpack.c.bf16 %v1160_v46, %v1159_v45 }
  0xaa   : > { %v967_v8 = vadd.f32 %v2384_v5, %v966_v2  ;;  %v1600_v14 = vadd.f32 %v2423_v29, %v1599_v6  ;;  %v1479_v40 = vadd.f32 %v1447_v31, %v394_v47  ;;  %v2579_v31 = vld [vmem:[%s2201_s17 + $0xd8] sm:$0xff] }
  0xab   : > { %v1360_v11 = vpack.c.bf16 %v1282_v0, %v1282_v0  ;;  %v724_v16 = vpack.c.bf16 %v648_v7, %v648_v7  ;;  %1921 = vmatmul.msk.bf16.gmra.mxu0 %vm584_vm0, %v543_v62  ;;  %v459_v0 = vsub.f32 %v427_v52, %v395_v50 }
  0xac   : > { %v1043_v17 = vpack.c.bf16 %v967_v8, %v967_v8  ;;  %1961 = vmatmul.msk.bf16.gmra.mxu1 %vm584_vm0, %v862_v63  ;;  %1678 = vst.msk [vmem:[%s2446_s19 + $0x8] sm:$0xff] %vm584_vm0, %v1600_v14  ;;  %v492_v8 = vmul.f32 %v2195_v12, %v458_v58 }
  0xad   : > { %1392 = vst.msk [vmem:[%s2436_s15 + $0x4] sm:$0xf] %vm754_vm1, %v1360_v11  ;;  %2001 = vmatmul.msk.bf16.gmra.mxu2 %vm584_vm0, %v1180_v3  ;;  %v1499_v3 = vpack.c.bf16 %v1478_v49, %v1477_v48  ;;  %v493_v9 = vmul.f32 %v2195_v12, %v459_v0  ;;  %v811_v11 = vmul.f32 %v2212_v13, %v458_v58 }
  0xae   : > { %757 = vst.msk [vmem:[%s2399_s13 + $0x8] sm:$0xf] %vm754_vm1, %v724_v16  ;;  %2041 = vmatmul.msk.bf16.gmra.mxu3 %vm584_vm0, %v1498_v15  ;;  %v812_v14 = vmul.f32 %v2212_v13, %v459_v0  ;;  %v1130_v20 = vmul.f32 %v2221_v19, %v459_v0 }
  0xaf   : > { %1075 = vst.msk [vmem:[%s2405_s28 + $0x8] sm:$0xf] %vm754_vm1, %v1043_v17  ;;  %v843_v35 = vadd.f32 %v811_v11, %v394_v47 }
  0xb0   : > { %v1284_v22 = vpop.f32.mrf.mxu2  ;;  %v649_v26 = vpop.f32.mrf.mxu0  ;;  %v844_v36 = vadd.f32 %v812_v14, %v395_v50 }
  0xb1   : > { %v1285_v25 = vadd.f32 %v2413_v28, %v1284_v22  ;;  %v968_v27 = vpop.f32.mrf.mxu1  ;;  %v1602_v32 = vpop.f32.mrf.mxu3  ;;  %v650_v33 = vadd.f32 %v2379_v4, %v649_v26  ;;  %v525_v26 = vadd.f32 %v493_v9, %v395_v50 }
  0xb2   : > { %v969_v34 = vadd.f32 %v2384_v5, %v968_v27  ;;  %v1603_v38 = vadd.f32 %v2423_v29, %v1602_v32  ;;  %v1448_v32 = vmul.f32 %v2226_v21, %v459_v0  ;;  %v864_v48 = vpack.c.bf16 %v844_v36, %v843_v35 }
  0xb3   : > { %v1361_v37 = vpack.c.bf16 %v1285_v25, %v1285_v25  ;;  %v725_v41 = vpack.c.bf16 %v650_v33, %v650_v33  ;;  %v524_v25 = vadd.f32 %v492_v8, %v394_v47 }
  0xb4   : > { %v1044_v42 = vpack.c.bf16 %v969_v34, %v969_v34  ;;  %1679 = vst.msk [vmem:[%s2446_s19 + $0x10] sm:$0xff] %vm584_vm0, %v1603_v38  ;;  %v1162_v38 = vadd.f32 %v1130_v20, %v395_v50 }
  0xb5   : > { %1393 = vst.msk [vmem:[%s2436_s15 + $0x8] sm:$0xf] %vm754_vm1, %v1361_v37  ;;  %v1161_v37 = vadd.f32 %v1129_v18, %v394_v47  ;;  %v545_v46 = vpack.c.bf16 %v525_v26, %v524_v25  ;;  %v2574_v26 = vld [vmem:[%s2201_s17 + $0xd0] sm:$0xff] }
  0xb6   : > { %758 = vst.msk [vmem:[%s2399_s13 + $0xc] sm:$0xf] %vm754_vm1, %v725_v41  ;;  %v1480_v41 = vadd.f32 %v1448_v32, %v395_v50  ;;  %v460_v50 = vsub.f32 %v428_v43, %v396_v39  ;;  %v431_v32 = vld [vmem:[%s2207_s20 + $0xd8] sm:$0xff] }
  0xb7   : > { %1076 = vst.msk [vmem:[%s2405_s28 + $0xc] sm:$0xf] %vm754_vm1, %v1044_v42  ;;  %v397_v42 = vld [vmem:[%s2201_s17 + $0xc8] sm:$0xff] }
  0xb8   : > { %v1286_v53 = vpop.f32.mrf.mxu2  ;;  %v652_v59 = vpop.f32.mrf.mxu0  ;;  %v1131_v8 = vmul.f32 %v2221_v19, %v460_v50 }
  0xb9   : > { %v1287_v57 = vadd.f32 %v2413_v28, %v1286_v53  ;;  %v971_v60 = vpop.f32.mrf.mxu1  ;;  %v1604_v62 = vpop.f32.mrf.mxu3  ;;  %v653_v63 = vadd.f32 %v2379_v4, %v652_v59  ;;  %v1182_v53 = vpack.c.bf16 %v1162_v38, %v1161_v37 }
  0xba   : > { %v972_v55 = vadd.f32 %v2384_v5, %v971_v60  ;;  %v1605_v2 = vadd.f32 %v2423_v29, %v1604_v62 }
  0xbb   : > { %v1362_v1 = vpack.c.bf16 %v1287_v57, %v1287_v57  ;;  %v726_v6 = vpack.c.bf16 %v653_v63, %v653_v63  ;;  %1922 = vmatmul.msk.bf16.gmra.mxu0 %vm584_vm0, %v544_v54  ;;  %v461_v57 = vsub.f32 %v429_v44, %v397_v42  ;;  %v463_v44 = vsub.f32 %v431_v32, %v2579_v31 }
  0xbc   : > { %v1045_v7 = vpack.c.bf16 %v972_v55, %v972_v55  ;;  %1962 = vmatmul.msk.bf16.gmra.mxu1 %vm584_vm0, %v863_v56  ;;  %1680 = vst.msk [vmem:[%s2446_s19 + $0x18] sm:$0xff] %vm584_vm0, %v1605_v2  ;;  %v494_v55 = vmul.f32 %v2195_v12, %v460_v50 }
  0xbd   : > { %1394 = vst.msk [vmem:[%s2436_s15 + $0xc] sm:$0xf] %vm754_vm1, %v1362_v1  ;;  %2002 = vmatmul.msk.bf16.gmra.mxu2 %vm584_vm0, %v1181_v61  ;;  %v1500_v61 = vpack.c.bf16 %v1480_v41, %v1479_v40  ;;  %v495_v58 = vmul.f32 %v2195_v12, %v461_v57  ;;  %v813_v1 = vmul.f32 %v2212_v13, %v460_v50 }
  0xbe   : > { %759 = vst.msk [vmem:[%s2399_s13 + $0x10] sm:$0xf] %vm754_vm1, %v726_v6  ;;  %2042 = vmatmul.msk.bf16.gmra.mxu3 %vm584_vm0, %v1499_v3  ;;  %v814_v2 = vmul.f32 %v2212_v13, %v461_v57  ;;  %v1132_v12 = vmul.f32 %v2221_v19, %v461_v57  ;;  %v526_v14 = vadd.f32 %v494_v55, %v396_v39 }
  0xbf   : > { %1077 = vst.msk [vmem:[%s2405_s28 + $0x10] sm:$0xf] %vm754_vm1, %v1045_v7  ;;  %v1450_v19 = vmul.f32 %v2226_v21, %v461_v57 }
  0xc0   : > { %v1289_v10 = vpop.f32.mrf.mxu2  ;;  %v654_v16 = vpop.f32.mrf.mxu0  ;;  %v1164_v25 = vadd.f32 %v1132_v12, %v397_v42 }
  0xc1   : > { %v1290_v15 = vadd.f32 %v2413_v28, %v1289_v10  ;;  %v973_v17 = vpop.f32.mrf.mxu1  ;;  %v1607_v22 = vpop.f32.mrf.mxu3  ;;  %v655_v23 = vadd.f32 %v2379_v4, %v654_v16 }
  0xc2   : > { %v974_v24 = vadd.f32 %v2384_v5, %v973_v17  ;;  %v1608_v30 = vadd.f32 %v2423_v29, %v1607_v22  ;;  %v1449_v17 = vmul.f32 %v2226_v21, %v460_v50  ;;  %v845_v22 = vadd.f32 %v813_v1, %v396_v39  ;;  %v430_v21 = vld [vmem:[%s2207_s20 + $0xd0] sm:$0xff] }
  0xc3   : > { %v1363_v27 = vpack.c.bf16 %v1290_v15, %v1290_v15  ;;  %v727_v33 = vpack.c.bf16 %v655_v23, %v655_v23  ;;  %v527_v15 = vadd.f32 %v495_v58, %v397_v42  ;;  %v846_v23 = vadd.f32 %v814_v2, %v397_v42 }
  0xc4   : > { %v1046_v34 = vpack.c.bf16 %v974_v24, %v974_v24  ;;  %1681 = vst.msk [vmem:[%s2446_s19 + $0x20] sm:$0xff] %vm584_vm0, %v1608_v30  ;;  %v1163_v24 = vadd.f32 %v1131_v8, %v396_v39  ;;  %v1482_v30 = vadd.f32 %v1450_v19, %v397_v42  ;;  %v462_v43 = vsub.f32 %v430_v21, %v2574_v26  ;;  %v2633_v8 = vld [vmem:[%s2982_s2 + $0x3] ss:$0 sm:$0xff] }
  0xc5   : > { %1395 = vst.msk [vmem:[%s2436_s15 + $0x10] sm:$0xf] %vm754_vm1, %v1363_v27  ;;  %v1481_v27 = vadd.f32 %v1449_v17, %v396_v39  ;;  %v865_v35 = vpack.c.bf16 %v846_v23, %v845_v22  ;;  %v400_v17 = vld [vmem:[%s2201_s17 + $0xe0] sm:$0xff]  ;;  %v433_v23 = vld [vmem:[%s2207_s20 + $0xe8] sm:$0xff] }
  0xc6   : > { %760 = vst.msk [vmem:[%s2399_s13 + $0x14] sm:$0xf] %vm754_vm1, %v727_v33  ;;  %v1183_v40 = vpack.c.bf16 %v1164_v25, %v1163_v24  ;;  %v1451_v12 = vmul.f32 %v2633_v8, %v462_v43  ;;  %v432_v22 = vld [vmem:[%s2207_s20 + $0xe0] sm:$0xff] }
  0xc7   : > { %1078 = vst.msk [vmem:[%s2405_s28 + $0x14] sm:$0xf] %vm754_vm1, %v1046_v34  ;;  %v546_v34 = vpack.c.bf16 %v527_v15, %v526_v14 }
  0xc8   : > { %v1291_v45 = vpop.f32.mrf.mxu2  ;;  %v657_v51 = vpop.f32.mrf.mxu0  ;;  %v1483_v19 = vadd.f32 %v1451_v12, %v2574_v26  ;;  %v402_v12 = vld [vmem:[%s2201_s17 + $0xf0] sm:$0xff] }
  0xc9   : > { %v1292_v49 = vadd.f32 %v2413_v28, %v1291_v45  ;;  %v976_v52 = vpop.f32.mrf.mxu1  ;;  %v1609_v54 = vpop.f32.mrf.mxu3  ;;  %v658_v56 = vadd.f32 %v2379_v4, %v657_v51 }
  0xca   : > { %v977_v47 = vadd.f32 %v2384_v5, %v976_v52  ;;  %v1610_v60 = vadd.f32 %v2423_v29, %v1609_v54  ;;  %v2601_v52 = vld [vmem:[%s2982_s2] ss:$0 sm:$0xff] }
  0xcb   : > { %v1364_v59 = vpack.c.bf16 %v1292_v49, %v1292_v49  ;;  %v728_v62 = vpack.c.bf16 %v658_v56, %v658_v56  ;;  %1923 = vmatmul.msk.bf16.gmra.mxu0 %vm584_vm0, %v545_v46  ;;  %v497_v54 = vmul.f32 %v2601_v52, %v463_v44 }
  0xcc   : > { %v1047_v63 = vpack.c.bf16 %v977_v47, %v977_v47  ;;  %1963 = vmatmul.msk.bf16.gmra.mxu1 %vm584_vm0, %v864_v48  ;;  %1682 = vst.msk [vmem:[%s2446_s19 + $0x28] sm:$0xff] %vm584_vm0, %v1610_v60  ;;  %v1501_v48 = vpack.c.bf16 %v1482_v30, %v1481_v27  ;;  %v2613_v47 = vld [vmem:[%s2982_s2 + $0x1] ss:$0 sm:$0xff] }
  0xcd   : > { %1396 = vst.msk [vmem:[%s2436_s15 + $0x14] sm:$0xf] %vm754_vm1, %v1364_v59  ;;  %2003 = vmatmul.msk.bf16.gmra.mxu2 %vm584_vm0, %v1182_v53  ;;  %v496_v53 = vmul.f32 %v2601_v52, %v462_v43  ;;  %v815_v50 = vmul.f32 %v2613_v47, %v462_v43  ;;  %v816_v57 = vmul.f32 %v2613_v47, %v463_v44 }
  0xce   : > { %761 = vst.msk [vmem:[%s2399_s13 + $0x18] sm:$0xf] %vm754_vm1, %v728_v62  ;;  %2043 = vmatmul.msk.bf16.gmra.mxu3 %vm584_vm0, %v1500_v61  ;;  %v2621_v62 = vld [vmem:[%s2982_s2 + $0x2] ss:$0 sm:$0xff] }
  0xcf   : > { %1079 = vst.msk [vmem:[%s2405_s28 + $0x18] sm:$0xf] %vm754_vm1, %v1047_v63  ;;  %v1133_v63 = vmul.f32 %v2621_v62, %v462_v43  ;;  %v1134_v55 = vmul.f32 %v2621_v62, %v463_v44  ;;  %v528_v2 = vadd.f32 %v496_v53, %v2574_v26  ;;  %v847_v14 = vadd.f32 %v815_v50, %v2574_v26 }
  0xd0   : > { %v1294_v0 = vpop.f32.mrf.mxu2  ;;  %v659_v6 = vpop.f32.mrf.mxu0  ;;  %v848_v15 = vadd.f32 %v816_v57, %v2579_v31 }
  0xd1   : > { %v1295_v3 = vadd.f32 %v2413_v28, %v1294_v0  ;;  %v978_v7 = vpop.f32.mrf.mxu1  ;;  %v1612_v9 = vpop.f32.mrf.mxu3  ;;  %v660_v10 = vadd.f32 %v2379_v4, %v659_v6 }
  0xd2   : > { %v979_v11 = vadd.f32 %v2384_v5, %v978_v7  ;;  %v1613_v16 = vadd.f32 %v2423_v29, %v1612_v9  ;;  %v1452_v9 = vmul.f32 %v2633_v8, %v463_v44  ;;  %v866_v27 = vpack.c.bf16 %v848_v15, %v847_v14  ;;  %v434_v14 = vld [vmem:[%s2207_s20 + $0xf0] sm:$0xff]  ;;  %v435_v15 = vld [vmem:[%s2207_s20 + $0xf8] sm:$0xff] }
  0xd3   : > { %v1365_v13 = vpack.c.bf16 %v1295_v3, %v1295_v3  ;;  %v729_v18 = vpack.c.bf16 %v660_v10, %v660_v10  ;;  %v529_v3 = vadd.f32 %v497_v54, %v2579_v31 }
  0xd4   : > { %v1048_v20 = vpack.c.bf16 %v979_v11, %v979_v11  ;;  %1683 = vst.msk [vmem:[%s2446_s19 + $0x30] sm:$0xff] %vm584_vm0, %v1613_v16  ;;  %v1166_v16 = vadd.f32 %v1134_v55, %v2579_v31 }
  0xd5   : > { %1397 = vst.msk [vmem:[%s2436_s15 + $0x18] sm:$0xf] %vm754_vm1, %v1365_v13  ;;  %v1165_v13 = vadd.f32 %v1133_v63, %v2574_v26  ;;  %v547_v25 = vpack.c.bf16 %v529_v3, %v528_v2 }
  0xd6   : > { %762 = vst.msk [vmem:[%s2399_s13 + $0x1c] sm:$0xf] %vm754_vm1, %v729_v18  ;;  %v1484_v18 = vadd.f32 %v1452_v9, %v2579_v31 }
  0xd7   : > { %1080 = vst.msk [vmem:[%s2405_s28 + $0x1c] sm:$0xf] %vm754_vm1, %v1048_v20  ;;  %v401_v20 = vld [vmem:[%s2201_s17 + $0xe8] sm:$0xff] }
  0xd8   : > { %v1296_v33 = vpop.f32.mrf.mxu2  ;;  %v662_v37 = vpop.f32.mrf.mxu0 }
  0xd9   : > { %v1297_v36 = vadd.f32 %v2413_v28, %v1296_v33  ;;  %v981_v38 = vpop.f32.mrf.mxu1  ;;  %v1614_v41 = vpop.f32.mrf.mxu3  ;;  %v663_v39 = vadd.f32 %v2379_v4, %v662_v37  ;;  %v1184_v33 = vpack.c.bf16 %v1166_v16, %v1165_v13 }
  0xda   : > { %v982_v42 = vadd.f32 %v2384_v5, %v981_v38  ;;  %v1615_v46 = vadd.f32 %v2423_v29, %v1614_v41 }
  0xdb   : > { %v1366_v45 = vpack.c.bf16 %v1297_v36, %v1297_v36  ;;  %v730_v49 = vpack.c.bf16 %v663_v39, %v663_v39  ;;  %1924 = vmatmul.msk.bf16.gmra.mxu0 %vm584_vm0, %v546_v34  ;;  %v465_v36 = vsub.f32 %v433_v23, %v401_v20 }
  0xdc   : > { %v1049_v51 = vpack.c.bf16 %v982_v42, %v982_v42  ;;  %1964 = vmatmul.msk.bf16.gmra.mxu1 %vm584_vm0, %v865_v35  ;;  %1684 = vst.msk [vmem:[%s2446_s19 + $0x38] sm:$0xff] %vm584_vm0, %v1615_v46  ;;  %v464_v35 = vsub.f32 %v432_v22, %v400_v17 }
  0xdd   : > { %1398 = vst.msk [vmem:[%s2436_s15 + $0x1c] sm:$0xf] %vm754_vm1, %v1366_v45  ;;  %2004 = vmatmul.msk.bf16.gmra.mxu2 %vm584_vm0, %v1183_v40  ;;  %v1502_v40 = vpack.c.bf16 %v1484_v18, %v1483_v19  ;;  %v499_v43 = vmul.f32 %v2601_v52, %v465_v36  ;;  %v818_v46 = vmul.f32 %v2613_v47, %v465_v36 }
  0xde   : > { %763 = vst.msk [vmem:[%s2399_s13 + $0x20] sm:$0xf] %vm754_vm1, %v730_v49  ;;  %2044 = vmatmul.msk.bf16.gmra.mxu3 %vm584_vm0, %v1501_v48  ;;  %v498_v42 = vmul.f32 %v2601_v52, %v464_v35  ;;  %v817_v45 = vmul.f32 %v2613_v47, %v464_v35  ;;  %v1135_v53 = vmul.f32 %v2621_v62, %v464_v35 }
  0xdf   : > { %1081 = vst.msk [vmem:[%s2405_s28 + $0x20] sm:$0xf] %vm754_vm1, %v1049_v51  ;;  %v1136_v54 = vmul.f32 %v2621_v62, %v465_v36  ;;  %v1453_v55 = vmul.f32 %v2633_v8, %v464_v35  ;;  %v850_v3 = vadd.f32 %v818_v46, %v401_v20 }
  0xe0   : > { %v1299_v56 = vpop.f32.mrf.mxu2  ;;  %v664_v60 = vpop.f32.mrf.mxu0  ;;  %v849_v2 = vadd.f32 %v817_v45, %v400_v17 }
  0xe1   : > { %v1300_v59 = vadd.f32 %v2413_v28, %v1299_v56  ;;  %v983_v61 = vpop.f32.mrf.mxu1  ;;  %v1617_v58 = vpop.f32.mrf.mxu3  ;;  %v665_v0 = vadd.f32 %v2379_v4, %v664_v60  ;;  %v531_v60 = vadd.f32 %v499_v43, %v401_v20  ;;  %v1485_v9 = vadd.f32 %v1453_v55, %v400_v17 }
  0xe2   : > { %v984_v1 = vadd.f32 %v2384_v5, %v983_v61  ;;  %v1618_v7 = vadd.f32 %v2423_v29, %v1617_v58  ;;  %v1454_v58 = vmul.f32 %v2633_v8, %v465_v36  ;;  %v867_v19 = vpack.c.bf16 %v850_v3, %v849_v2 }
  0xe3   : > { %v1367_v6 = vpack.c.bf16 %v1300_v59, %v1300_v59  ;;  %v731_v10 = vpack.c.bf16 %v665_v0, %v665_v0  ;;  %v530_v59 = vadd.f32 %v498_v42, %v400_v17 }
  0xe4   : > { %v1050_v11 = vpack.c.bf16 %v984_v1, %v984_v1  ;;  %1685 = vst.msk [vmem:[%s2446_s19 + $0x40] sm:$0xff] %vm584_vm0, %v1618_v7  ;;  %v1168_v7 = vadd.f32 %v1136_v54, %v401_v20 }
  0xe5   : > { %1399 = vst.msk [vmem:[%s2436_s15 + $0x20] sm:$0xf] %vm754_vm1, %v1367_v6  ;;  %v1167_v6 = vadd.f32 %v1135_v53, %v400_v17  ;;  %v548_v16 = vpack.c.bf16 %v531_v60, %v530_v59 }
  0xe6   : > { %764 = vst.msk [vmem:[%s2399_s13 + $0x24] sm:$0xf] %vm754_vm1, %v731_v10  ;;  %v1486_v10 = vadd.f32 %v1454_v58, %v401_v20  ;;  %v466_v20 = vsub.f32 %v434_v14, %v402_v12 }
  0xe7   : > { %1082 = vst.msk [vmem:[%s2405_s28 + $0x24] sm:$0xf] %vm754_vm1, %v1050_v11  ;;  %v403_v11 = vld [vmem:[%s2201_s17 + $0xf8] sm:$0xff] }
  0xe8   : > { %v1301_v24 = vpop.f32.mrf.mxu2  ;;  %v667_v21 = vpop.f32.mrf.mxu0  ;;  %v1137_v42 = vmul.f32 %v2621_v62, %v466_v20 }
  0xe9   : > { %v1302_v30 = vadd.f32 %v2413_v28, %v1301_v24  ;;  %v986_v32 = vpop.f32.mrf.mxu1  ;;  %v1619_v34 = vpop.f32.mrf.mxu3  ;;  %v668_v26 = vadd.f32 %v2379_v4, %v667_v21  ;;  %v1185_v24 = vpack.c.bf16 %v1168_v7, %v1167_v6 }
  0xea   : > { %v987_v31 = vadd.f32 %v2384_v5, %v986_v32  ;;  %v1620_v38 = vadd.f32 %v2423_v29, %v1619_v34 }
  0xeb   : > { %v1368_v37 = vpack.c.bf16 %v1302_v30, %v1302_v30  ;;  %v732_v41 = vpack.c.bf16 %v668_v26, %v668_v26  ;;  %1925 = vmatmul.msk.bf16.gmra.mxu0 %vm584_vm0, %v547_v25  ;;  %v467_v30 = vsub.f32 %v435_v15, %v403_v11 }
  0xec   : > { %v1051_v39 = vpack.c.bf16 %v987_v31, %v987_v31  ;;  %1965 = vmatmul.msk.bf16.gmra.mxu1 %vm584_vm0, %v866_v27  ;;  %1686 = vst.msk [vmem:[%s2446_s19 + $0x48] sm:$0xff] %vm584_vm0, %v1620_v38  ;;  %v500_v31 = vmul.f32 %v2601_v52, %v466_v20 }
  0xed   : > { %1400 = vst.msk [vmem:[%s2436_s15 + $0x24] sm:$0xf] %vm754_vm1, %v1368_v37  ;;  %2005 = vmatmul.msk.bf16.gmra.mxu2 %vm584_vm0, %v1184_v33  ;;  %v1503_v33 = vpack.c.bf16 %v1486_v10, %v1485_v9  ;;  %v501_v35 = vmul.f32 %v2601_v52, %v467_v30  ;;  %v819_v37 = vmul.f32 %v2613_v47, %v466_v20 }
  0xee   : > { %765 = vst.msk [vmem:[%s2399_s13 + $0x28] sm:$0xf] %vm754_vm1, %v732_v41  ;;  %2045 = vmatmul.msk.bf16.gmra.mxu3 %vm584_vm0, %v1502_v40  ;;  %v820_v38 = vmul.f32 %v2613_v47, %v467_v30  ;;  %v1138_v52 = vmul.f32 %v2621_v62, %v467_v30  ;;  %v532_v46 = vadd.f32 %v500_v31, %v402_v12 }
  0xef   : > { %1083 = vst.msk [vmem:[%s2405_s28 + $0x28] sm:$0xf] %vm754_vm1, %v1051_v39  ;;  %v1456_v53 = vmul.f32 %v2633_v8, %v467_v30  ;;  %v851_v62 = vadd.f32 %v819_v37, %v402_v12 }
  0xf0   : > { %v1304_v44 = vpop.f32.mrf.mxu2  ;;  %v669_v49 = vpop.f32.mrf.mxu0  ;;  %v1170_v59 = vadd.f32 %v1138_v52, %v403_v11 }
  0xf1   : > { %v1305_v48 = vadd.f32 %v2413_v28, %v1304_v44  ;;  %v988_v51 = vpop.f32.mrf.mxu1  ;;  %v1622_v56 = vpop.f32.mrf.mxu3  ;;  %v670_v50 = vadd.f32 %v2379_v4, %v669_v49 }
  0xf2   : > { %v989_v57 = vadd.f32 %v2384_v5, %v988_v51  ;;  %v1623_v63 = vadd.f32 %v2423_v29, %v1622_v56  ;;  %v1455_v51 = vmul.f32 %v2633_v8, %v466_v20 }
  0xf3   : > { %v1369_v61 = vpack.c.bf16 %v1305_v48, %v1305_v48  ;;  %v733_v0 = vpack.c.bf16 %v670_v50, %v670_v50  ;;  %v533_v48 = vadd.f32 %v501_v35, %v403_v11  ;;  %v852_v50 = vadd.f32 %v820_v38, %v403_v11 }
  0xf4   : > { %v1052_v1 = vpack.c.bf16 %v989_v57, %v989_v57  ;;  %1687 = vst.msk [vmem:[%s2446_s19 + $0x50] sm:$0xff] %vm584_vm0, %v1623_v63  ;;  %v1169_v57 = vadd.f32 %v1137_v42, %v402_v12  ;;  %v1487_v60 = vadd.f32 %v1455_v51, %v402_v12 }
  0xf5   : > { %1401 = vst.msk [vmem:[%s2436_s15 + $0x28] sm:$0xf] %vm754_vm1, %v1369_v61  ;;  %v1488_v61 = vadd.f32 %v1456_v53, %v403_v11  ;;  %v549_v55 = vpack.c.bf16 %v533_v48, %v532_v46  ;;  %v868_v8 = vpack.c.bf16 %v852_v50, %v851_v62 }
  0xf6   : > { %766 = vst.msk [vmem:[%s2399_s13 + $0x2c] sm:$0xf] %vm754_vm1, %v733_v0  ;;  %v1186_v2 = vpack.c.bf16 %v1170_v59, %v1169_v57 }
  0xf7   : > { %1084 = vst.msk [vmem:[%s2405_s28 + $0x2c] sm:$0xf] %vm754_vm1, %v1052_v1  ;;  %v1504_v10 = vpack.c.bf16 %v1488_v61, %v1487_v60 }
  0xf8   : > { %v1306_v13 = vpop.f32.mrf.mxu2  ;;  %v672_v22 = vpop.f32.mrf.mxu0 }
  0xf9   : > { %v1307_v18 = vadd.f32 %v2413_v28, %v1306_v13  ;;  %v991_v23 = vpop.f32.mrf.mxu1  ;;  %v1624_v25 = vpop.f32.mrf.mxu3  ;;  %v673_v27 = vadd.f32 %v2379_v4, %v672_v22 }
  0xfa   : > { %v992_v17 = vadd.f32 %v2384_v5, %v991_v23  ;;  %v1625_v32 = vadd.f32 %v2423_v29, %v1624_v25 }
  0xfb   : > { %v1370_v21 = vpack.c.bf16 %v1307_v18, %v1307_v18  ;;  %v734_v34 = vpack.c.bf16 %v673_v27, %v673_v27  ;;  %1926 = vmatmul.msk.bf16.gmra.mxu0 %vm584_vm0, %v548_v16 }
  0xfc   : > { %v1053_v26 = vpack.c.bf16 %v992_v17, %v992_v17  ;;  %1966 = vmatmul.msk.bf16.gmra.mxu1 %vm584_vm0, %v867_v19  ;;  %1688 = vst.msk [vmem:[%s2446_s19 + $0x58] sm:$0xff] %vm584_vm0, %v1625_v32 }
  0xfd   : > { %1402 = vst.msk [vmem:[%s2436_s15 + $0x2c] sm:$0xf] %vm754_vm1, %v1370_v21  ;;  %2006 = vmatmul.msk.bf16.gmra.mxu2 %vm584_vm0, %v1185_v24 }
  0xfe   : > { %767 = vst.msk [vmem:[%s2399_s13 + $0x30] sm:$0xf] %vm754_vm1, %v734_v34  ;;  %2046 = vmatmul.msk.bf16.gmra.mxu3 %vm584_vm0, %v1503_v33 }
  0xff   : > { %1085 = vst.msk [vmem:[%s2405_s28 + $0x30] sm:$0xf] %vm754_vm1, %v1053_v26 }
 0x100   : > { %v1309_v36 = vpop.f32.mrf.mxu2  ;;  %v674_v41 = vpop.f32.mrf.mxu0 }
 0x101   : > { %v1310_v40 = vadd.f32 %v2413_v28, %v1309_v36  ;;  %v993_v39 = vpop.f32.mrf.mxu1  ;;  %v1627_v43 = vpop.f32.mrf.mxu3  ;;  %v675_v44 = vadd.f32 %v2379_v4, %v674_v41 }
 0x102   : > { %v994_v45 = vadd.f32 %v2384_v5, %v993_v39  ;;  %v1628_v49 = vadd.f32 %v2423_v29, %v1627_v43 }
 0x103   : > { %v1371_v47 = vpack.c.bf16 %v1310_v40, %v1310_v40  ;;  %v735_v54 = vpack.c.bf16 %v675_v44, %v675_v44 }
 0x104   : > { %v1054_v56 = vpack.c.bf16 %v994_v45, %v994_v45  ;;  %1689 = vst.msk [vmem:[%s2446_s19 + $0x60] sm:$0xff] %vm584_vm0, %v1628_v49 }
 0x105   : > { %1403 = vst.msk [vmem:[%s2436_s15 + $0x30] sm:$0xf] %vm754_vm1, %v1371_v47 }
 0x106   : > { %768 = vst.msk [vmem:[%s2399_s13 + $0x34] sm:$0xf] %vm754_vm1, %v735_v54 }
 0x107   : > { %1086 = vst.msk [vmem:[%s2405_s28 + $0x34] sm:$0xf] %vm754_vm1, %v1054_v56 }
 0x108   : > { %v1311_v63 = vpop.f32.mrf.mxu2  ;;  %v677_v0 = vpop.f32.mrf.mxu0 }
 0x109   : > { %v1312_v58 = vadd.f32 %v2413_v28, %v1311_v63  ;;  %v996_v1 = vpop.f32.mrf.mxu1  ;;  %v1629_v3 = vpop.f32.mrf.mxu3  ;;  %v678_v6 = vadd.f32 %v2379_v4, %v677_v0  ;;  %v2805_v0 = vld [vmem:[%s2984_s4 + $0x1] ss:$0 sm:$0xff] }
 0x10a   : > { %v997_v7 = vadd.f32 %v2384_v5, %v996_v1  ;;  %v1630_v9 = vadd.f32 %v2423_v29, %v1629_v3 }
 0x10b   : > { %v1372_v12 = vpack.c.bf16 %v1312_v58, %v1312_v58  ;;  %v736_v11 = vpack.c.bf16 %v678_v6, %v678_v6  ;;  %1927 = vmatmul.msk.bf16.gmra.mxu0 %vm584_vm0, %v549_v55 }
 0x10c   : > { %v1055_v14 = vpack.c.bf16 %v997_v7, %v997_v7  ;;  %1967 = vmatmul.msk.bf16.gmra.mxu1 %vm584_vm0, %v868_v8  ;;  %1690 = vst.msk [vmem:[%s2446_s19 + $0x68] sm:$0xff] %vm584_vm0, %v1630_v9  ;;  %v2799_v8 = vld [vmem:[%s2984_s4] ss:$0 sm:$0xff] }
 0x10d   : > { %1404 = vst.msk [vmem:[%s2436_s15 + $0x34] sm:$0xf] %vm754_vm1, %v1372_v12  ;;  %2007 = vmatmul.msk.bf16.gmra.mxu2 %vm584_vm0, %v1186_v2 }
 0x10e   : > { %769 = vst.msk [vmem:[%s2399_s13 + $0x38] sm:$0xf] %vm754_vm1, %v736_v11  ;;  %2047 = vmatmul.msk.bf16.gmra.mxu3 %vm584_vm0, %v1504_v10 }
 0x10f   : > { %1087 = vst.msk [vmem:[%s2405_s28 + $0x38] sm:$0xf] %vm754_vm1, %v1055_v14 }
 0x110   : > { %v1314_v15 = vpop.f32.mrf.mxu2  ;;  %v679_v16 = vpop.f32.mrf.mxu0 }
 0x111   : > { %v1315_v13 = vadd.f32 %v2413_v28, %v1314_v15  ;;  %v998_v19 = vpop.f32.mrf.mxu1  ;;  %v1632_v18 = vpop.f32.mrf.mxu3  ;;  %v680_v22 = vadd.f32 %v2379_v4, %v679_v16 }
 0x112   : > { %v999_v23 = vadd.f32 %v2384_v5, %v998_v19  ;;  %v1633_v25 = vadd.f32 %v2423_v29, %v1632_v18 }
 0x113   : > { %v1373_v24 = vpack.c.bf16 %v1315_v13, %v1315_v13  ;;  %v737_v27 = vpack.c.bf16 %v680_v22, %v680_v22 }
 0x114   : > { %v1056_v17 = vpack.c.bf16 %v999_v23, %v999_v23  ;;  %1691 = vst.msk [vmem:[%s2446_s19 + $0x70] sm:$0xff] %vm584_vm0, %v1633_v25  ;;  %v2832_v23 = vld [vmem:[%s2984_s4 + $0x2] ss:$0 sm:$0xff] }
 0x115   : > { %1405 = vst.msk [vmem:[%s2436_s15 + $0x38] sm:$0xf] %vm754_vm1, %v1373_v24 }
 0x116   : > { %770 = vst.msk [vmem:[%s2399_s13 + $0x3c] sm:$0xf] %vm754_vm1, %v737_v27 }
 0x117   : > { %1088 = vst.msk [vmem:[%s2405_s28 + $0x3c] sm:$0xf] %vm754_vm1, %v1056_v17 }
 0x118   : > { %v1316_v20 = vpop.f32.mrf.mxu2  ;;  %v682_v21 = vpop.f32.mrf.mxu0 }
 0x119   : > { %v1317_v30 = vadd.f32 %v2413_v28, %v1316_v20  ;;  %v1001_v32 = vpop.f32.mrf.mxu1  ;;  %v1634_v33 = vpop.f32.mrf.mxu3  ;;  %v683_v34 = vadd.f32 %v2379_v4, %v682_v21  ;;  %v2840_v21 = vld [vmem:[%s2984_s4 + $0x3] ss:$0 sm:$0xff] }
 0x11a   : > { %v1002_v26 = vadd.f32 %v2384_v5, %v1001_v32  ;;  %v1635_v35 = vadd.f32 %v2423_v29, %v1634_v33 }
 0x11b   : > { %v1374_v31 = vpack.c.bf16 %v1317_v30, %v1317_v30  ;;  %v738_v36 = vpack.c.bf16 %v683_v34, %v683_v34 }
 0x11c   : > { %v1057_v37 = vpack.c.bf16 %v1002_v26, %v1002_v26  ;;  %1692 = vst.msk [vmem:[%s2446_s19 + $0x78] sm:$0xff] %vm584_vm0, %v1635_v35 }
 0x11d   : > { %1406 = vst.msk [vmem:[%s2436_s15 + $0x3c] sm:$0xf] %vm754_vm1, %v1374_v31 }
 0x11e   : > { %771 = vst.msk [vmem:[%s2399_s13 + $0x40] sm:$0xf] %vm754_vm1, %v738_v36 }
 0x11f   : > { %1089 = vst.msk [vmem:[%s2405_s28 + $0x40] sm:$0xf] %vm754_vm1, %v1057_v37 }
 0x120   : > { %v1319_v38 = vpop.f32.mrf.mxu2  ;;  %v684_v41 = vpop.f32.mrf.mxu0 }
 0x121   : > { %v1320_v40 = vadd.f32 %v2413_v28, %v1319_v38  ;;  %v1003_v39 = vpop.f32.mrf.mxu1  ;;  %v1637_v42 = vpop.f32.mrf.mxu3  ;;  %v685_v52 = vadd.f32 %v2379_v4, %v684_v41 }
 0x122   : > { %v1004_v43 = vadd.f32 %v2384_v5, %v1003_v39  ;;  %v1638_v45 = vadd.f32 %v2423_v29, %v1637_v42 }
 0x123   : > { %v1375_v44 = vpack.c.bf16 %v1320_v40, %v1320_v40  ;;  %v739_v46 = vpack.c.bf16 %v685_v52, %v685_v52 }
 0x124   : > { %v1058_v48 = vpack.c.bf16 %v1004_v43, %v1004_v43  ;;  %1693 = vst.msk [vmem:[%s2446_s19 + $0x80] sm:$0xff] %vm584_vm0, %v1638_v45 }
 0x125   : > { %1407 = vst.msk [vmem:[%s2436_s15 + $0x40] sm:$0xf] %vm754_vm1, %v1375_v44 }
 0x126   : > { %772 = vst.msk [vmem:[%s2399_s13 + $0x44] sm:$0xf] %vm754_vm1, %v739_v46 }
 0x127   : > { %1090 = vst.msk [vmem:[%s2405_s28 + $0x44] sm:$0xf] %vm754_vm1, %v1058_v48 }
 0x128   : > { %v1321_v47 = vpop.f32.mrf.mxu2  ;;  %v687_v51 = vpop.f32.mrf.mxu0 }
 0x129   : > { %v1322_v49 = vadd.f32 %v2413_v28, %v1321_v47  ;;  %v1006_v53 = vpop.f32.mrf.mxu1  ;;  %v1639_v54 = vpop.f32.mrf.mxu3  ;;  %v688_v56 = vadd.f32 %v2379_v4, %v687_v51 }
 0x12a   : > { %v1007_v62 = vadd.f32 %v2384_v5, %v1006_v53  ;;  %v1640_v57 = vadd.f32 %v2423_v29, %v1639_v54 }
 0x12b   : > { %v1376_v50 = vpack.c.bf16 %v1322_v49, %v1322_v49  ;;  %v740_v59 = vpack.c.bf16 %v688_v56, %v688_v56 }
 0x12c   : > { %v1059_v60 = vpack.c.bf16 %v1007_v62, %v1007_v62  ;;  %1694 = vst.msk [vmem:[%s2446_s19 + $0x88] sm:$0xff] %vm584_vm0, %v1640_v57 }
 0x12d   : > { %1408 = vst.msk [vmem:[%s2436_s15 + $0x44] sm:$0xf] %vm754_vm1, %v1376_v50 }
 0x12e   : > { %773 = vst.msk [vmem:[%s2399_s13 + $0x48] sm:$0xf] %vm754_vm1, %v740_v59 }
 0x12f   : > { %1091 = vst.msk [vmem:[%s2405_s28 + $0x48] sm:$0xf] %vm754_vm1, %v1059_v60 }
 0x130   : > { %v1324_v61 = vpop.f32.mrf.mxu2  ;;  %v689_v5 = vpop.f32.mrf.mxu0 }
 0x131   : > { %v1325_v4 = vadd.f32 %v2413_v28, %v1324_v61  ;;  %v1008_v63 = vpop.f32.mrf.mxu1  ;;  %v1642_v55 = vpop.f32.mrf.mxu3  ;;  %v690_v58 = vadd.f32 %v2799_v8, %v689_v5 }
 0x132   : > { %v1009_v1 = vadd.f32 %v2805_v0, %v1008_v63  ;;  %v1643_v3 = vadd.f32 %v2423_v29, %v1642_v55 }
 0x133   : > { %v1377_v2 = vpack.c.bf16 %v1325_v4, %v1325_v4  ;;  %v741_v6 = vpack.c.bf16 %v690_v58, %v690_v58 }
 0x134   : > { %v1060_v7 = vpack.c.bf16 %v1009_v1, %v1009_v1  ;;  %1695 = vst.msk [vmem:[%s2446_s19 + $0x90] sm:$0xff] %vm584_vm0, %v1643_v3 }
 0x135   : > { %1409 = vst.msk [vmem:[%s2436_s15 + $0x48] sm:$0xf] %vm754_vm1, %v1377_v2 }
 0x136   : > { %774 = vst.msk [vmem:[%s2399_s13 + $0x4c] sm:$0xf] %vm754_vm1, %v741_v6 }
 0x137   : > { %1092 = vst.msk [vmem:[%s2405_s28 + $0x4c] sm:$0xf] %vm754_vm1, %v1060_v7 }
 0x138   : > { %v1326_v12 = vpop.f32.mrf.mxu2  ;;  %v692_v10 = vpop.f32.mrf.mxu0 }
 0x139   : > { %v1327_v9 = vadd.f32 %v2413_v28, %v1326_v12  ;;  %v1011_v11 = vpop.f32.mrf.mxu1  ;;  %v1644_v14 = vpop.f32.mrf.mxu3  ;;  %v693_v15 = vadd.f32 %v2799_v8, %v692_v10 }
 0x13a   : > { %v1012_v13 = vadd.f32 %v2805_v0, %v1011_v11  ;;  %v1645_v19 = vadd.f32 %v2423_v29, %v1644_v14 }
 0x13b   : > { %v1378_v16 = vpack.c.bf16 %v1327_v9, %v1327_v9  ;;  %v742_v18 = vpack.c.bf16 %v693_v15, %v693_v15 }
 0x13c   : > { %v1061_v22 = vpack.c.bf16 %v1012_v13, %v1012_v13  ;;  %1696 = vst.msk [vmem:[%s2446_s19 + $0x98] sm:$0xff] %vm584_vm0, %v1645_v19 }
 0x13d   : > { %1410 = vst.msk [vmem:[%s2436_s15 + $0x4c] sm:$0xf] %vm754_vm1, %v1378_v16 }
 0x13e   : > { %775 = vst.msk [vmem:[%s2399_s13 + $0x50] sm:$0xf] %vm754_vm1, %v742_v18 }
 0x13f   : > { %1093 = vst.msk [vmem:[%s2405_s28 + $0x50] sm:$0xf] %vm754_vm1, %v1061_v22 }
 0x140   : > { %v1329_v28 = vpop.f32.mrf.mxu2  ;;  %v694_v24 = vpop.f32.mrf.mxu0 }
 0x141   : > { %v1330_v29 = vadd.f32 %v2832_v23, %v1329_v28  ;;  %v1013_v25 = vpop.f32.mrf.mxu1  ;;  %v1647_v27 = vpop.f32.mrf.mxu3  ;;  %v695_v17 = vadd.f32 %v2799_v8, %v694_v24 }
 0x142   : > { %v1014_v20 = vadd.f32 %v2805_v0, %v1013_v25  ;;  %v1648_v32 = vadd.f32 %v2840_v21, %v1647_v27 }
 0x143   : > { %v1379_v30 = vpack.c.bf16 %v1330_v29, %v1330_v29  ;;  %v743_v33 = vpack.c.bf16 %v695_v17, %v695_v17 }
 0x144   : > { %v1062_v34 = vpack.c.bf16 %v1014_v20, %v1014_v20  ;;  %1697 = vst.msk [vmem:[%s2446_s19 + $0xa0] sm:$0xff] %vm584_vm0, %v1648_v32 }
 0x145   : > { %1411 = vst.msk [vmem:[%s2436_s15 + $0x50] sm:$0xf] %vm754_vm1, %v1379_v30 }
 0x146   : > { %776 = vst.msk [vmem:[%s2399_s13 + $0x54] sm:$0xf] %vm754_vm1, %v743_v33 }
 0x147   : > { %1094 = vst.msk [vmem:[%s2405_s28 + $0x54] sm:$0xf] %vm754_vm1, %v1062_v34 }
 0x148   : > { %v1331_v26 = vpop.f32.mrf.mxu2  ;;  %v697_v35 = vpop.f32.mrf.mxu0 }
 0x149   : > { %v1332_v31 = vadd.f32 %v2832_v23, %v1331_v26  ;;  %v1016_v36 = vpop.f32.mrf.mxu1  ;;  %v1649_v37 = vpop.f32.mrf.mxu3  ;;  %v698_v38 = vadd.f32 %v2799_v8, %v697_v35 }
 0x14a   : > { %v1017_v40 = vadd.f32 %v2805_v0, %v1016_v36  ;;  %v1650_v39 = vadd.f32 %v2840_v21, %v1649_v37 }
 0x14b   : > { %v1380_v41 = vpack.c.bf16 %v1332_v31, %v1332_v31  ;;  %v744_v42 = vpack.c.bf16 %v698_v38, %v698_v38 }
 0x14c   : > { %v1063_v52 = vpack.c.bf16 %v1017_v40, %v1017_v40  ;;  %1698 = vst.msk [vmem:[%s2446_s19 + $0xa8] sm:$0xff] %vm584_vm0, %v1650_v39 }
 0x14d   : > { %1412 = vst.msk [vmem:[%s2436_s15 + $0x54] sm:$0xf] %vm754_vm1, %v1380_v41 }
 0x14e   : > { %777 = vst.msk [vmem:[%s2399_s13 + $0x58] sm:$0xf] %vm754_vm1, %v744_v42 }
 0x14f   : > { %1095 = vst.msk [vmem:[%s2405_s28 + $0x58] sm:$0xf] %vm754_vm1, %v1063_v52 }
 0x150   : > { %v1334_v43 = vpop.f32.mrf.mxu2  ;;  %v699_v45 = vpop.f32.mrf.mxu0 }
 0x151   : > { %v1335_v44 = vadd.f32 %v2832_v23, %v1334_v43  ;;  %v1018_v46 = vpop.f32.mrf.mxu1  ;;  %v1652_v48 = vpop.f32.mrf.mxu3  ;;  %v700_v47 = vadd.f32 %v2799_v8, %v699_v45 }
 0x152   : > { %v1019_v49 = vadd.f32 %v2805_v0, %v1018_v46  ;;  %v1653_v53 = vadd.f32 %v2840_v21, %v1652_v48 }
 0x153   : > { %v1381_v51 = vpack.c.bf16 %v1335_v44, %v1335_v44  ;;  %v745_v54 = vpack.c.bf16 %v700_v47, %v700_v47 }
 0x154   : > { %v1064_v56 = vpack.c.bf16 %v1019_v49, %v1019_v49  ;;  %1699 = vst.msk [vmem:[%s2446_s19 + $0xb0] sm:$0xff] %vm584_vm0, %v1653_v53 }
 0x155   : > { %1413 = vst.msk [vmem:[%s2436_s15 + $0x58] sm:$0xf] %vm754_vm1, %v1381_v51 }
 0x156   : > { %778 = vst.msk [vmem:[%s2399_s13 + $0x5c] sm:$0xf] %vm754_vm1, %v745_v54 }
 0x157   : > { %1096 = vst.msk [vmem:[%s2405_s28 + $0x5c] sm:$0xf] %vm754_vm1, %v1064_v56 }
 0x158   : > { %v1336_v62 = vpop.f32.mrf.mxu2  ;;  %v702_v57 = vpop.f32.mrf.mxu0 }
 0x159   : > { %v1337_v50 = vadd.f32 %v2832_v23, %v1336_v62  ;;  %v1021_v59 = vpop.f32.mrf.mxu1  ;;  %v1654_v60 = vpop.f32.mrf.mxu3  ;;  %v703_v61 = vadd.f32 %v2799_v8, %v702_v57 }
 0x15a   : > { %v1022_v4 = vadd.f32 %v2805_v0, %v1021_v59  ;;  %v1655_v63 = vadd.f32 %v2840_v21, %v1654_v60 }
 0x15b   : > { %v1382_v5 = vpack.c.bf16 %v1337_v50, %v1337_v50  ;;  %v746_v55 = vpack.c.bf16 %v703_v61, %v703_v61 }
 0x15c   : > { %v1065_v58 = vpack.c.bf16 %v1022_v4, %v1022_v4  ;;  %1700 = vst.msk [vmem:[%s2446_s19 + $0xb8] sm:$0xff] %vm584_vm0, %v1655_v63 }
 0x15d   : > { %1414 = vst.msk [vmem:[%s2436_s15 + $0x5c] sm:$0xf] %vm754_vm1, %v1382_v5 }
 0x15e   : > { %779 = vst.msk [vmem:[%s2399_s13 + $0x60] sm:$0xf] %vm754_vm1, %v746_v55 }
 0x15f   : > { %1097 = vst.msk [vmem:[%s2405_s28 + $0x60] sm:$0xf] %vm754_vm1, %v1065_v58 }
 0x160   : > { %v1339_v1 = vpop.f32.mrf.mxu2  ;;  %v704_v3 = vpop.f32.mrf.mxu0 }
 0x161   : > { %v1340_v2 = vadd.f32 %v2832_v23, %v1339_v1  ;;  %v1023_v6 = vpop.f32.mrf.mxu1  ;;  %v1657_v7 = vpop.f32.mrf.mxu3  ;;  %v705_v12 = vadd.f32 %v2799_v8, %v704_v3 }
 0x162   : > { %v1024_v9 = vadd.f32 %v2805_v0, %v1023_v6  ;;  %v1658_v11 = vadd.f32 %v2840_v21, %v1657_v7 }
 0x163   : > { %v1383_v10 = vpack.c.bf16 %v1340_v2, %v1340_v2  ;;  %v747_v14 = vpack.c.bf16 %v705_v12, %v705_v12 }
 0x164   : > { %v1066_v15 = vpack.c.bf16 %v1024_v9, %v1024_v9  ;;  %1701 = vst.msk [vmem:[%s2446_s19 + $0xc0] sm:$0xff] %vm584_vm0, %v1658_v11 }
 0x165   : > { %1415 = vst.msk [vmem:[%s2436_s15 + $0x60] sm:$0xf] %vm754_vm1, %v1383_v10 }
 0x166   : > { %780 = vst.msk [vmem:[%s2399_s13 + $0x64] sm:$0xf] %vm754_vm1, %v747_v14 }
 0x167   : > { %1098 = vst.msk [vmem:[%s2405_s28 + $0x64] sm:$0xf] %vm754_vm1, %v1066_v15 }
 0x168   : > { %v1341_v13 = vpop.f32.mrf.mxu2  ;;  %v707_v19 = vpop.f32.mrf.mxu0 }
 0x169   : > { %v1342_v16 = vadd.f32 %v2832_v23, %v1341_v13  ;;  %v1026_v18 = vpop.f32.mrf.mxu1  ;;  %v1659_v22 = vpop.f32.mrf.mxu3  ;;  %v708_v28 = vadd.f32 %v2799_v8, %v707_v19 }
 0x16a   : > { %v1027_v29 = vadd.f32 %v2805_v0, %v1026_v18  ;;  %v1660_v25 = vadd.f32 %v2840_v21, %v1659_v22 }
 0x16b   : > { %v1384_v24 = vpack.c.bf16 %v1342_v16, %v1342_v16  ;;  %v748_v27 = vpack.c.bf16 %v708_v28, %v708_v28 }
 0x16c   : > { %v1067_v17 = vpack.c.bf16 %v1027_v29, %v1027_v29  ;;  %1702 = vst.msk [vmem:[%s2446_s19 + $0xc8] sm:$0xff] %vm584_vm0, %v1660_v25 }
 0x16d   : > { %1416 = vst.msk [vmem:[%s2436_s15 + $0x64] sm:$0xf] %vm754_vm1, %v1384_v24 }
 0x16e   : > { %781 = vst.msk [vmem:[%s2399_s13 + $0x68] sm:$0xf] %vm754_vm1, %v748_v27 }
 0x16f   : > { %1099 = vst.msk [vmem:[%s2405_s28 + $0x68] sm:$0xf] %vm754_vm1, %v1067_v17 }
 0x170   : > { %v1344_v20 = vpop.f32.mrf.mxu2  ;;  %v709_v32 = vpop.f32.mrf.mxu0 }
 0x171   : > { %v1345_v30 = vadd.f32 %v2832_v23, %v1344_v20  ;;  %v1028_v33 = vpop.f32.mrf.mxu1  ;;  %v1662_v34 = vpop.f32.mrf.mxu3  ;;  %v710_v26 = vadd.f32 %v2799_v8, %v709_v32 }
 0x172   : > { %v1029_v31 = vadd.f32 %v2805_v0, %v1028_v33  ;;  %v1663_v36 = vadd.f32 %v2840_v21, %v1662_v34 }
 0x173   : > { %v1385_v35 = vpack.c.bf16 %v1345_v30, %v1345_v30  ;;  %v749_v37 = vpack.c.bf16 %v710_v26, %v710_v26 }
 0x174   : > { %v1068_v38 = vpack.c.bf16 %v1029_v31, %v1029_v31  ;;  %1703 = vst.msk [vmem:[%s2446_s19 + $0xd0] sm:$0xff] %vm584_vm0, %v1663_v36 }
 0x175   : > { %1417 = vst.msk [vmem:[%s2436_s15 + $0x68] sm:$0xf] %vm754_vm1, %v1385_v35 }
 0x176   : > { %782 = vst.msk [vmem:[%s2399_s13 + $0x6c] sm:$0xf] %vm754_vm1, %v749_v37 }
 0x177   : > { %1100 = vst.msk [vmem:[%s2405_s28 + $0x6c] sm:$0xf] %vm754_vm1, %v1068_v38 }
 0x178   : > { %v1346_v40 = vpop.f32.mrf.mxu2  ;;  %v712_v39 = vpop.f32.mrf.mxu0 }
 0x179   : > { %v1347_v41 = vadd.f32 %v2832_v23, %v1346_v40  ;;  %v1031_v42 = vpop.f32.mrf.mxu1  ;;  %v1664_v52 = vpop.f32.mrf.mxu3  ;;  %v713_v43 = vadd.f32 %v2799_v8, %v712_v39 }
 0x17a   : > { %v1032_v44 = vadd.f32 %v2805_v0, %v1031_v42  ;;  %v1665_v46 = vadd.f32 %v2840_v21, %v1664_v52 }
 0x17b   : > { %v1386_v45 = vpack.c.bf16 %v1347_v41, %v1347_v41  ;;  %v750_v48 = vpack.c.bf16 %v713_v43, %v713_v43 }
 0x17c   : > { %v1069_v47 = vpack.c.bf16 %v1032_v44, %v1032_v44  ;;  %1704 = vst.msk [vmem:[%s2446_s19 + $0xd8] sm:$0xff] %vm584_vm0, %v1665_v46 }
 0x17d   : > { %1418 = vst.msk [vmem:[%s2436_s15 + $0x6c] sm:$0xf] %vm754_vm1, %v1386_v45 }
 0x17e   : > { %783 = vst.msk [vmem:[%s2399_s13 + $0x70] sm:$0xf] %vm754_vm1, %v750_v48 }
 0x17f   : > { %1101 = vst.msk [vmem:[%s2405_s28 + $0x70] sm:$0xf] %vm754_vm1, %v1069_v47 }
 0x180   : > { %v1349_v49 = vpop.f32.mrf.mxu2  ;;  %v714_v53 = vpop.f32.mrf.mxu0 }
 0x181   : > { %v1350_v51 = vadd.f32 %v2832_v23, %v1349_v49  ;;  %v1033_v54 = vpop.f32.mrf.mxu1  ;;  %v1667_v56 = vpop.f32.mrf.mxu3  ;;  %v715_v62 = vadd.f32 %v2799_v8, %v714_v53 }
 0x182   : > { %v1034_v50 = vadd.f32 %v2805_v0, %v1033_v54  ;;  %v1668_v59 = vadd.f32 %v2840_v21, %v1667_v56 }
 0x183   : > { %v1387_v57 = vpack.c.bf16 %v1350_v51, %v1350_v51  ;;  %v751_v60 = vpack.c.bf16 %v715_v62, %v715_v62 }
 0x184   : > { %v1070_v61 = vpack.c.bf16 %v1034_v50, %v1034_v50  ;;  %1705 = vst.msk [vmem:[%s2446_s19 + $0xe0] sm:$0xff] %vm584_vm0, %v1668_v59 }
 0x185   : > { %1419 = vst.msk [vmem:[%s2436_s15 + $0x70] sm:$0xf] %vm754_vm1, %v1387_v57 }
 0x186   : > { %784 = vst.msk [vmem:[%s2399_s13 + $0x74] sm:$0xf] %vm754_vm1, %v751_v60 }
 0x187   : > { %1102 = vst.msk [vmem:[%s2405_s28 + $0x74] sm:$0xf] %vm754_vm1, %v1070_v61 }
 0x188   : > { %v1351_v4 = vpop.f32.mrf.mxu2  ;;  %v717_v63 = vpop.f32.mrf.mxu0 }
 0x189   : > { %v1352_v5 = vadd.f32 %v2832_v23, %v1351_v4  ;;  %v1036_v55 = vpop.f32.mrf.mxu1  ;;  %v1669_v58 = vpop.f32.mrf.mxu3  ;;  %v718_v1 = vadd.f32 %v2799_v8, %v717_v63 }
 0x18a   : > { %v1037_v2 = vadd.f32 %v2805_v0, %v1036_v55  ;;  %v1670_v6 = vadd.f32 %v2840_v21, %v1669_v58 }
 0x18b   : > { %v1388_v3 = vpack.c.bf16 %v1352_v5, %v1352_v5  ;;  %v752_v7 = vpack.c.bf16 %v718_v1, %v718_v1 }
 0x18c   : > { %v1071_v12 = vpack.c.bf16 %v1037_v2, %v1037_v2  ;;  %1706 = vst.msk [vmem:[%s2446_s19 + $0xe8] sm:$0xff] %vm584_vm0, %v1670_v6 }
 0x18d   : > { %1420 = vst.msk [vmem:[%s2436_s15 + $0x74] sm:$0xf] %vm754_vm1, %v1388_v3 }
 0x18e   : > { %785 = vst.msk [vmem:[%s2399_s13 + $0x78] sm:$0xf] %vm754_vm1, %v752_v7 }
 0x18f   : > { %1103 = vst.msk [vmem:[%s2405_s28 + $0x78] sm:$0xf] %vm754_vm1, %v1071_v12 }
 0x190   : > { %v1354_v9 = vpop.f32.mrf.mxu2  ;;  %v719_v11 = vpop.f32.mrf.mxu0 }
 0x191   : > { %v1355_v10 = vadd.f32 %v2832_v23, %v1354_v9  ;;  %v1038_v14 = vpop.f32.mrf.mxu1  ;;  %v1672_v15 = vpop.f32.mrf.mxu3  ;;  %v720_v13 = vadd.f32 %v2799_v8, %v719_v11 }
 0x192   : > { %v1039_v16 = vadd.f32 %v2805_v0, %v1038_v14  ;;  %v1673_v18 = vadd.f32 %v2840_v21, %v1672_v15 }
 0x193   : > { %v1389_v19 = vpack.c.bf16 %v1355_v10, %v1355_v10  ;;  %v753_v22 = vpack.c.bf16 %v720_v13, %v720_v13 }
 0x194   : > { %v1072_v28 = vpack.c.bf16 %v1039_v16, %v1039_v16  ;;  %1707 = vst.msk [vmem:[%s2446_s19 + $0xf0] sm:$0xff] %vm584_vm0, %v1673_v18 }
 0x195   : > { %1421 = vst.msk [vmem:[%s2436_s15 + $0x78] sm:$0xf] %vm754_vm1, %v1389_v19 }
 0x196   : > { %786 = vst.msk [vmem:[%s2399_s13 + $0x7c] sm:$0xf] %vm754_vm1, %v753_v22 }
 0x197   : > { %1104 = vst.msk [vmem:[%s2405_s28 + $0x7c] sm:$0xf] %vm754_vm1, %v1072_v28 }
 0x198   : > { %v1356_v29 = vpop.f32.mrf.mxu2 }
 0x199   : > { %v1357_v24 = vadd.f32 %v2832_v23, %v1356_v29  ;;  %v1674_v8 = vpop.f32.mrf.mxu3 }
 0x19a   : > { %v1675_v0 = vadd.f32 %v2840_v21, %v1674_v8 }
 0x19b   : > { %v1390_v25 = vpack.c.bf16 %v1357_v24, %v1357_v24 }
 0x19c   : > { %1708 = vst.msk [vmem:[%s2446_s19 + $0xf8] sm:$0xff] %vm584_vm0, %v1675_v0 }
 0x19d   : > { %1422 = vst.msk [vmem:[%s2436_s15 + $0x7c] sm:$0xf] %vm754_vm1, %v1390_v25 }
 0x19e PF: > { %s19_s27 = sadd.s32 1, %s2096_s27  }
 0x19f   : > { %p16_p4 = scmp.ge.s32.totalorder %s19_s27, 5  }
 0x1a1   :  { %18 = sbr.rel (!%p16_p4) target bundleno = 1 (0x1), region = 112 }

</bundles_post_ra>
